<compile_context>
chip_gen: v6e
topology: v6e:2x2x1
jax: 0.10.0
libtpu: 0.0.40
codegen_flags: <defaults>
</compile_context>

<pallas_src>
from functools import partial

import jax
import jax.numpy as jnp
from jax import lax
from jax.experimental import pallas as pl
from jax.experimental.pallas import tpu as pltpu

NUM_HEADS = 4
DIM_FF = 2048      # nn.TransformerEncoderLayer default dim_feedforward
EPS = 1e-5         # default layer_norm_eps


def _layer_norm(x, gamma, beta):
    # Normalize over the last dim; stats kept in f32 (biased variance, like PyTorch).
    mu = jnp.mean(x, axis=-1, keepdims=True)
    var = jnp.mean((x - mu) ** 2, axis=-1, keepdims=True)
    return (x - mu) * lax.rsqrt(var + EPS) * gamma + beta


def transformer_kernel(x_ref, wqkv_ref, wo_ref, w1_ref, w2_ref,
                       bias_ref, vec_ref, out_ref):
    # x_ref block: [Bl, S, D] (whole batch with the default single grid step).
    Bl, S, D = x_ref.shape
    L = wqkv_ref.shape[0]
    F = w2_ref.shape[1]
    H = NUM_HEADS
    Dh = D // H
    bf16 = jnp.bfloat16

    # Fold batch into the matmul M dimension (rows ordered b*S + s).
    h = x_ref[...].reshape(Bl * S, D).astype(jnp.float32)          # [Bl*S, D]

    # TODO(synk): dropout(p=0.1) inside MultiheadAttention and the FFN is
    # treated as identity (eval-mode semantics) to keep the forward deterministic.
    for l in range(L):
        last = (l == L - 1)

        # ---- fused QKV projection: ONE [M, D] x [D, 3D] matmul --------------
        # (1/sqrt(Dh) query scale already folded into wqkv / bias by pack_params)
        bqkv = bias_ref[l, :, F:F + 3 * D]                          # [1, 3D] f32
        qkv = jnp.dot(h.astype(bf16), wqkv_ref[l],
                      preferred_element_type=jnp.float32) + bqkv    # [Bl*S, 3D]

        # Residual / query rows: the model only returns the last sequence
        # position, so the final layer works on that row per batch element.
        if last:
            x_res = jnp.concatenate(
                [h[b * S + S - 1:b * S + S, :] for b in range(Bl)], axis=0)
        else:
            x_res = h                                               # [Bl*S, D]

        # ---- per-batch, per-head attention (tiny, FLOP-negligible) ----------
        ctx_rows = []
        for b in range(Bl):
            r0 = b * S
            if last:
                q_b = qkv[r0 + S - 1:r0 + S, 0:D]                   # [1, D]
            else:
                q_b = qkv[r0:r0 + S, 0:D]                           # [S, D]
            k_b = qkv[r0:r0 + S, D:2 * D]                           # [S, D]
            v_b = qkv[r0:r0 + S, 2 * D:3 * D]                       # [S, D]

            head_ctx = []
            for hd in range(H):
                c0 = hd * Dh
                qh = q_b[:, c0:c0 + Dh].astype(bf16)                # [Sq, Dh]
                kh = k_b[:, c0:c0 + Dh].astype(bf16)                # [S, Dh]
                vh = v_b[:, c0:c0 + Dh].astype(bf16)                # [S, Dh]
                s = lax.dot_general(qh, kh, (((1,), (1,)), ((), ())),
                                    preferred_element_type=jnp.float32)  # [Sq,S]
                s = s - jnp.max(s, axis=-1, keepdims=True)
                p = jnp.exp(s)
                p = p * pl.reciprocal(jnp.sum(p, axis=-1, keepdims=True),
                                      approx=True)
                head_ctx.append(jnp.dot(p.astype(bf16), vh,
                                        preferred_element_type=jnp.float32))
            ctx_rows.append(jnp.concatenate(head_ctx, axis=-1))     # [Sq, D]
        ctx = jnp.concatenate(ctx_rows, axis=0)                     # [M, D]

        # ---- out projection: ONE [M, D] x [D, D] matmul, residual, LN1 ------
        attn = jnp.dot(ctx.astype(bf16), wo_ref[l],
                       preferred_element_type=jnp.float32) + vec_ref[l, 0:1, :]
        y = _layer_norm(x_res + attn, vec_ref[l, 1:2, :], vec_ref[l, 2:3, :])

        # ---- FFN: Linear(F) -> ReLU -> Linear(D), one wide matmul pair ------
        b1 = bias_ref[l, :, 0:F]                                    # [1, F]
        h1 = jnp.dot(y.astype(bf16), w1_ref[l],
                     preferred_element_type=jnp.float32) + b1       # [M, F]
        h1 = jnp.maximum(h1, 0.0)
        ff = jnp.dot(h1.astype(bf16), w2_ref[l],
                     preferred_element_type=jnp.float32) + vec_ref[l, 3:4, :]
        h = _layer_norm(y + ff, vec_ref[l, 4:5, :], vec_ref[l, 5:6, :])  # [M, D]

    # h is [Bl, D] after the last layer (one row per batch element).
    for b in range(Bl):
        out_ref[b] = h[b:b + 1, :].astype(out_ref.dtype)            # [1, D]


@partial(jax.jit, static_argnames=("num_cores",))
def transformer_model(features_sbd, packed_params, *, num_cores=1):
    """features_sbd: [S, B, D] (PyTorch batch_first=False). Returns [B, D].

    num_cores=1 (default) runs everything in a single grid step (best for the
    single-TC v5e/v6e). On v7x pass num_cores=2 so each TensorCore takes half
    the batch via a "parallel" grid axis.
    """
    x = jnp.transpose(features_sbd, (1, 0, 2))                      # [B, S, D]
    B, S, D = x.shape
    nc = max(1, min(num_cores, B))
    if B % nc != 0:
        nc = 1
    Bc = B // nc

    in_specs = [pl.BlockSpec((Bc, S, D), lambda c: (c, 0, 0))]
    for p in packed_params:
        zeros = (0,) * p.ndim
        in_specs.append(pl.BlockSpec(p.shape, lambda c, z=zeros: z))

    out = pl.pallas_call(
        transformer_kernel,
        out_shape=jax.ShapeDtypeStruct((B, 1, D), jnp.float32),
        grid=(nc,),
        in_specs=in_specs,
        out_specs=pl.BlockSpec((Bc, 1, D), lambda c: (c, 0, 0)),
        compiler_params=pltpu.CompilerParams(
            dimension_semantics=("parallel",)),
    )(x, *packed_params)
    return out[:, 0, :]                                             # [B, D]


def init_layer_params(key, d_model, dim_ff):
    """Random params in the PyTorch nn.TransformerEncoderLayer layout."""
    ks = jax.random.split(key, 8)
    s = 0.05
    return dict(
        in_proj_w=jax.random.normal(ks[0], (3 * d_model, d_model), jnp.float32) * s,
        in_proj_b=jax.random.normal(ks[1], (3 * d_model,), jnp.float32) * s,
        out_proj_w=jax.random.normal(ks[2], (d_model, d_model), jnp.float32) * s,
        out_proj_b=jax.random.normal(ks[3], (d_model,), jnp.float32) * s,
        lin1_w=jax.random.normal(ks[4], (dim_ff, d_model), jnp.float32) * s,
        lin1_b=jax.random.normal(ks[5], (dim_ff,), jnp.float32) * s,
        lin2_w=jax.random.normal(ks[6], (d_model, dim_ff), jnp.float32) * s,
        lin2_b=jax.random.normal(ks[7], (d_model,), jnp.float32) * s,
        ln1_g=jnp.ones((d_model,), jnp.float32),
        ln1_b=jnp.zeros((d_model,), jnp.float32),
        ln2_g=jnp.ones((d_model,), jnp.float32),
        ln2_b=jnp.zeros((d_model,), jnp.float32),
    )


def pack_params(layer_params, num_heads):
    """Repack PyTorch-layout params into the kernel layout (one-time, free):

      wqkv : [L, D, 3D] bf16   natural-orientation fused QKV weight
      wo   : [L, D, D]  bf16   natural-orientation out-projection weight
      w1   : [L, D, F]  bf16   natural-orientation FFN up weight
      w2   : [L, F, D]  bf16   natural-orientation FFN down weight
      bias : [L, 1, F+3D] f32  [lin1_b | in_proj_b]  (q-part pre-scaled)
      vecs : [L, 6, D]  f32    rows: bo, ln1_g, ln1_b, lin2_b, ln2_g, ln2_b
    """
    D = layer_params[0]['out_proj_w'].shape[0]
    F = layer_params[0]['lin1_w'].shape[0]
    Dh = D // num_heads
    scale = float(Dh) ** -0.5
    bf = jnp.bfloat16

    wqkv, wo, w1, w2, bias_cat, vecs = [], [], [], [], [], []
    for p in layer_params:
        w_in = p['in_proj_w'].T                                     # [D, 3D]
        b_in = p['in_proj_b']                                       # [3D]
        # Fold the 1/sqrt(Dh) query scale into the q columns / q bias.
        w_in = jnp.concatenate([w_in[:, :D] * scale, w_in[:, D:]], axis=1)
        b_in = jnp.concatenate([b_in[:D] * scale, b_in[D:]])

        wqkv.append(w_in.astype(bf))
        wo.append(p['out_proj_w'].T.astype(bf))                     # [D, D]
        w1.append(p['lin1_w'].T.astype(bf))                         # [D, F]
        w2.append(p['lin2_w'].T.astype(bf))                         # [F, D]
        bias_cat.append(jnp.concatenate([p['lin1_b'], b_in]).reshape(1, F + 3 * D))
        vecs.append(jnp.stack([p['out_proj_b'], p['ln1_g'], p['ln1_b'],
                               p['lin2_b'], p['ln2_g'], p['ln2_b']]))  # [6, D]

    return (jnp.stack(wqkv), jnp.stack(wo), jnp.stack(w1), jnp.stack(w2),
            jnp.stack(bias_cat), jnp.stack(vecs))


def transformer_reference(features_sbd, layer_params, num_heads):
    """Pure-JAX eval-mode reference of the PyTorch module (f32 math)."""
    S, B, D = features_sbd.shape
    H = num_heads
    Dh = D // H
    x = features_sbd
    for p in layer_params:
        qkv = jnp.einsum('sbd,ed->sbe', x, p['in_proj_w']) + p['in_proj_b']
        q, k, v = jnp.split(qkv, 3, axis=-1)

        def to_heads(t):
            return t.reshape(S, B, H, Dh).transpose(1, 2, 0, 3)      # [B,H,S,Dh]

        qh, kh, vh = to_heads(q), to_heads(k), to_heads(v)
        s = jnp.einsum('bhqe,bhke->bhqk', qh, kh) * (float(Dh) ** -0.5)
        a = jax.nn.softmax(s, axis=-1)
        ctx = jnp.einsum('bhqk,bhke->bhqe', a, vh)
        ctx = ctx.transpose(2, 0, 1, 3).reshape(S, B, D)
        attn = jnp.einsum('sbd,ed->sbe', ctx, p['out_proj_w']) + p['out_proj_b']
        x = _layer_norm(x + attn, p['ln1_g'], p['ln1_b'])
        hh = jnp.maximum(jnp.einsum('sbd,fd->sbf', x, p['lin1_w']) + p['lin1_b'], 0.0)
        ff = jnp.einsum('sbf,df->sbd', hh, p['lin2_w']) + p['lin2_b']
        x = _layer_norm(x + ff, p['ln2_g'], p['ln2_b'])
    return x[-1]                                                     # [B, D]


if __name__ == "__main__":
    SEQ, BATCH, D_MODEL = 8, 2, 32          # d_model divisible by nhead=4
    NUM_LAYERS = 2

    key = jax.random.PRNGKey(0)
    k_feat, k0, k1 = jax.random.split(key, 3)

    features = jax.random.normal(k_feat, (SEQ, BATCH, D_MODEL), jnp.float32)
    layers = [init_layer_params(k0, D_MODEL, DIM_FF),
              init_layer_params(k1, D_MODEL, DIM_FF)][:NUM_LAYERS]
    packed = pack_params(layers, NUM_HEADS)

    out = transformer_model(features, packed)       # [BATCH, D_MODEL]
    out = jax.block_until_ready(out)

    assert out.shape == (BATCH, D_MODEL)
    assert bool(jnp.all(jnp.isfinite(out)))

    ref = transformer_reference(features, layers, NUM_HEADS)
    max_err = float(jnp.max(jnp.abs(out - ref)))
    assert max_err < 0.15, f"max |err| vs f32 reference = {max_err}"
    print("KERNEL_OK")
</pallas_src>

<mosaic_0001>
module attributes {stable_mosaic.version = 11 : i64} {
  func.func @transformer_kernel(%arg0: i32, %arg1: memref<2x8x32xf32, #tpu.memory_space<vmem>>, %arg2: memref<2x32x96xbf16, #tpu.memory_space<vmem>>, %arg3: memref<2x32x32xbf16, #tpu.memory_space<vmem>>, %arg4: memref<2x32x2048xbf16, #tpu.memory_space<vmem>>, %arg5: memref<2x2048x32xbf16, #tpu.memory_space<vmem>>, %arg6: memref<2x1x2144xf32, #tpu.memory_space<vmem>>, %arg7: memref<2x6x32xf32, #tpu.memory_space<vmem>>, %arg8: memref<2x1x32xf32, #tpu.memory_space<vmem>>) attributes {dimension_semantics = [#tpu.dimension_semantics<parallel>], iteration_bounds = array<i64: 1>, scalar_prefetch = 0 : i64, scratch_operands = 0 : i64, tpu.core_type = #tpu.core_type<tc>, window_params = [{transform_indices = @transform_0, window_bounds = array<i64: 2, 8, 32>}, {pipeline_mode = #tpu.pipeline_mode<synchronous>, transform_indices = @transform_1, window_bounds = array<i64: 2, 32, 96>}, {pipeline_mode = #tpu.pipeline_mode<synchronous>, transform_indices = @transform_2, window_bounds = array<i64: 2, 32, 32>}, {pipeline_mode = #tpu.pipeline_mode<synchronous>, transform_indices = @transform_3, window_bounds = array<i64: 2, 32, 2048>}, {pipeline_mode = #tpu.pipeline_mode<synchronous>, transform_indices = @transform_4, window_bounds = array<i64: 2, 2048, 32>}, {pipeline_mode = #tpu.pipeline_mode<synchronous>, transform_indices = @transform_5, window_bounds = array<i64: 2, 1, 2144>}, {pipeline_mode = #tpu.pipeline_mode<synchronous>, transform_indices = @transform_6, window_bounds = array<i64: 2, 6, 32>}, {transform_indices = @transform_7, window_bounds = array<i64: 2, 1, 32>}]} {
    %c0 = arith.constant 0 : index
    %c0_0 = arith.constant 0 : index
    %c0_1 = arith.constant 0 : index
    %0 = vector.load %arg1[%c0, %c0_0, %c0_1] : memref<2x8x32xf32, #tpu.memory_space<vmem>>, vector<2x8x32xf32>
    %1 = vector.shape_cast %0 : vector<2x8x32xf32> to vector<16x32xf32>
    %c0_2 = arith.constant 0 : index
    %c0_3 = arith.constant 0 : index
    %c2048 = arith.constant 2048 : index
    %2 = vector.load %arg6[%c0_2, %c0_3, %c2048] : memref<2x1x2144xf32, #tpu.memory_space<vmem>>, vector<1x1x96xf32>
    %3 = vector.shape_cast %2 : vector<1x1x96xf32> to vector<1x96xf32>
    %4 = arith.truncf %1 : vector<16x32xf32> to vector<16x32xbf16>
    %c0_4 = arith.constant 0 : index
    %c0_5 = arith.constant 0 : index
    %c0_6 = arith.constant 0 : index
    %5 = vector.load %arg2[%c0_4, %c0_5, %c0_6] : memref<2x32x96xbf16, #tpu.memory_space<vmem>>, vector<1x32x96xbf16>
    %6 = vector.shape_cast %5 : vector<1x32x96xbf16> to vector<32x96xbf16>
    %cst = arith.constant dense<0.000000e+00> : vector<16x96xf32>
    %7 = tpu.matmul %4, %6, %cst {dimension_numbers = #tpu.dot_dimension_numbers<[1], [0], [0], [1], [0, 0, 1, 1], [], []>} : vector<16x32xbf16>, vector<32x96xbf16>, vector<16x96xf32> -> vector<16x96xf32>
    %8 = vector.broadcast %3 : vector<1x96xf32> to vector<16x96xf32>
    %9 = arith.addf %7, %8 : vector<16x96xf32>
    %10 = vector.extract_strided_slice %9 {offsets = [0, 0], sizes = [8, 32], strides = [1, 1]} : vector<16x96xf32> to vector<8x32xf32>
    %11 = vector.extract_strided_slice %9 {offsets = [0, 32], sizes = [8, 32], strides = [1, 1]} : vector<16x96xf32> to vector<8x32xf32>
    %12 = vector.extract_strided_slice %9 {offsets = [0, 64], sizes = [8, 32], strides = [1, 1]} : vector<16x96xf32> to vector<8x32xf32>
    %13 = vector.extract_strided_slice %10 {offsets = [0, 0], sizes = [8, 8], strides = [1, 1]} : vector<8x32xf32> to vector<8x8xf32>
    %14 = arith.truncf %13 : vector<8x8xf32> to vector<8x8xbf16>
    %15 = vector.extract_strided_slice %11 {offsets = [0, 0], sizes = [8, 8], strides = [1, 1]} : vector<8x32xf32> to vector<8x8xf32>
    %16 = arith.truncf %15 : vector<8x8xf32> to vector<8x8xbf16>
    %17 = vector.extract_strided_slice %12 {offsets = [0, 0], sizes = [8, 8], strides = [1, 1]} : vector<8x32xf32> to vector<8x8xf32>
    %18 = arith.truncf %17 : vector<8x8xf32> to vector<8x8xbf16>
    %cst_7 = arith.constant dense<0.000000e+00> : vector<8x8xf32>
    %19 = tpu.matmul %14, %16, %cst_7 {dimension_numbers = #tpu.dot_dimension_numbers<[1], [1], [0], [0], [0, 0, 1, 0], [], []>} : vector<8x8xbf16>, vector<8x8xbf16>, vector<8x8xf32> -> vector<8x8xf32>
    %cst_8 = arith.constant dense<0xFF800000> : vector<8xf32>
    %20 = vector.multi_reduction <maximumf>, %19, %cst_8 [1] : vector<8x8xf32> to vector<8xf32>
    %21 = vector.shape_cast %20 : vector<8xf32> to vector<8x1xf32>
    %22 = vector.broadcast %21 : vector<8x1xf32> to vector<8x8xf32>
    %23 = arith.subf %19, %22 : vector<8x8xf32>
    %24 = math.exp %23 : vector<8x8xf32>
    %cst_9 = arith.constant dense<0.000000e+00> : vector<8xf32>
    %25 = vector.multi_reduction <add>, %24, %cst_9 [1] : vector<8x8xf32> to vector<8xf32>
    %26 = vector.shape_cast %25 : vector<8xf32> to vector<8x1xf32>
    %27 = tpu.reciprocal %26 {approx = true} : vector<8x1xf32> -> vector<8x1xf32>
    %28 = vector.broadcast %27 : vector<8x1xf32> to vector<8x8xf32>
    %29 = arith.mulf %24, %28 : vector<8x8xf32>
    %30 = arith.truncf %29 : vector<8x8xf32> to vector<8x8xbf16>
    %cst_10 = arith.constant dense<0.000000e+00> : vector<8x8xf32>
    %31 = tpu.matmul %30, %18, %cst_10 {dimension_numbers = #tpu.dot_dimension_numbers<[1], [0], [0], [1], [0, 0, 1, 1], [], []>} : vector<8x8xbf16>, vector<8x8xbf16>, vector<8x8xf32> -> vector<8x8xf32>
    %32 = vector.extract_strided_slice %10 {offsets = [0, 8], sizes = [8, 8], strides = [1, 1]} : vector<8x32xf32> to vector<8x8xf32>
    %33 = arith.truncf %32 : vector<8x8xf32> to vector<8x8xbf16>
    %34 = vector.extract_strided_slice %11 {offsets = [0, 8], sizes = [8, 8], strides = [1, 1]} : vector<8x32xf32> to vector<8x8xf32>
    %35 = arith.truncf %34 : vector<8x8xf32> to vector<8x8xbf16>
    %36 = vector.extract_strided_slice %12 {offsets = [0, 8], sizes = [8, 8], strides = [1, 1]} : vector<8x32xf32> to vector<8x8xf32>
    %37 = arith.truncf %36 : vector<8x8xf32> to vector<8x8xbf16>
    %cst_11 = arith.constant dense<0.000000e+00> : vector<8x8xf32>
    %38 = tpu.matmul %33, %35, %cst_11 {dimension_numbers = #tpu.dot_dimension_numbers<[1], [1], [0], [0], [0, 0, 1, 0], [], []>} : vector<8x8xbf16>, vector<8x8xbf16>, vector<8x8xf32> -> vector<8x8xf32>
    %cst_12 = arith.constant dense<0xFF800000> : vector<8xf32>
    %39 = vector.multi_reduction <maximumf>, %38, %cst_12 [1] : vector<8x8xf32> to vector<8xf32>
    %40 = vector.shape_cast %39 : vector<8xf32> to vector<8x1xf32>
    %41 = vector.broadcast %40 : vector<8x1xf32> to vector<8x8xf32>
    %42 = arith.subf %38, %41 : vector<8x8xf32>
    %43 = math.exp %42 : vector<8x8xf32>
    %cst_13 = arith.constant dense<0.000000e+00> : vector<8xf32>
    %44 = vector.multi_reduction <add>, %43, %cst_13 [1] : vector<8x8xf32> to vector<8xf32>
    %45 = vector.shape_cast %44 : vector<8xf32> to vector<8x1xf32>
    %46 = tpu.reciprocal %45 {approx = true} : vector<8x1xf32> -> vector<8x1xf32>
    %47 = vector.broadcast %46 : vector<8x1xf32> to vector<8x8xf32>
    %48 = arith.mulf %43, %47 : vector<8x8xf32>
    %49 = arith.truncf %48 : vector<8x8xf32> to vector<8x8xbf16>
    %cst_14 = arith.constant dense<0.000000e+00> : vector<8x8xf32>
    %50 = tpu.matmul %49, %37, %cst_14 {dimension_numbers = #tpu.dot_dimension_numbers<[1], [0], [0], [1], [0, 0, 1, 1], [], []>} : vector<8x8xbf16>, vector<8x8xbf16>, vector<8x8xf32> -> vector<8x8xf32>
    %51 = vector.extract_strided_slice %10 {offsets = [0, 16], sizes = [8, 8], strides = [1, 1]} : vector<8x32xf32> to vector<8x8xf32>
    %52 = arith.truncf %51 : vector<8x8xf32> to vector<8x8xbf16>
    %53 = vector.extract_strided_slice %11 {offsets = [0, 16], sizes = [8, 8], strides = [1, 1]} : vector<8x32xf32> to vector<8x8xf32>
    %54 = arith.truncf %53 : vector<8x8xf32> to vector<8x8xbf16>
    %55 = vector.extract_strided_slice %12 {offsets = [0, 16], sizes = [8, 8], strides = [1, 1]} : vector<8x32xf32> to vector<8x8xf32>
    %56 = arith.truncf %55 : vector<8x8xf32> to vector<8x8xbf16>
    %cst_15 = arith.constant dense<0.000000e+00> : vector<8x8xf32>
    %57 = tpu.matmul %52, %54, %cst_15 {dimension_numbers = #tpu.dot_dimension_numbers<[1], [1], [0], [0], [0, 0, 1, 0], [], []>} : vector<8x8xbf16>, vector<8x8xbf16>, vector<8x8xf32> -> vector<8x8xf32>
    %cst_16 = arith.constant dense<0xFF800000> : vector<8xf32>
    %58 = vector.multi_reduction <maximumf>, %57, %cst_16 [1] : vector<8x8xf32> to vector<8xf32>
    %59 = vector.shape_cast %58 : vector<8xf32> to vector<8x1xf32>
    %60 = vector.broadcast %59 : vector<8x1xf32> to vector<8x8xf32>
    %61 = arith.subf %57, %60 : vector<8x8xf32>
    %62 = math.exp %61 : vector<8x8xf32>
    %cst_17 = arith.constant dense<0.000000e+00> : vector<8xf32>
    %63 = vector.multi_reduction <add>, %62, %cst_17 [1] : vector<8x8xf32> to vector<8xf32>
    %64 = vector.shape_cast %63 : vector<8xf32> to vector<8x1xf32>
    %65 = tpu.reciprocal %64 {approx = true} : vector<8x1xf32> -> vector<8x1xf32>
    %66 = vector.broadcast %65 : vector<8x1xf32> to vector<8x8xf32>
    %67 = arith.mulf %62, %66 : vector<8x8xf32>
    %68 = arith.truncf %67 : vector<8x8xf32> to vector<8x8xbf16>
    %cst_18 = arith.constant dense<0.000000e+00> : vector<8x8xf32>
    %69 = tpu.matmul %68, %56, %cst_18 {dimension_numbers = #tpu.dot_dimension_numbers<[1], [0], [0], [1], [0, 0, 1, 1], [], []>} : vector<8x8xbf16>, vector<8x8xbf16>, vector<8x8xf32> -> vector<8x8xf32>
    %70 = vector.extract_strided_slice %10 {offsets = [0, 24], sizes = [8, 8], strides = [1, 1]} : vector<8x32xf32> to vector<8x8xf32>
    %71 = arith.truncf %70 : vector<8x8xf32> to vector<8x8xbf16>
    %72 = vector.extract_strided_slice %11 {offsets = [0, 24], sizes = [8, 8], strides = [1, 1]} : vector<8x32xf32> to vector<8x8xf32>
    %73 = arith.truncf %72 : vector<8x8xf32> to vector<8x8xbf16>
    %74 = vector.extract_strided_slice %12 {offsets = [0, 24], sizes = [8, 8], strides = [1, 1]} : vector<8x32xf32> to vector<8x8xf32>
    %75 = arith.truncf %74 : vector<8x8xf32> to vector<8x8xbf16>
    %cst_19 = arith.constant dense<0.000000e+00> : vector<8x8xf32>
    %76 = tpu.matmul %71, %73, %cst_19 {dimension_numbers = #tpu.dot_dimension_numbers<[1], [1], [0], [0], [0, 0, 1, 0], [], []>} : vector<8x8xbf16>, vector<8x8xbf16>, vector<8x8xf32> -> vector<8x8xf32>
    %cst_20 = arith.constant dense<0xFF800000> : vector<8xf32>
    %77 = vector.multi_reduction <maximumf>, %76, %cst_20 [1] : vector<8x8xf32> to vector<8xf32>
    %78 = vector.shape_cast %77 : vector<8xf32> to vector<8x1xf32>
    %79 = vector.broadcast %78 : vector<8x1xf32> to vector<8x8xf32>
    %80 = arith.subf %76, %79 : vector<8x8xf32>
    %81 = math.exp %80 : vector<8x8xf32>
    %cst_21 = arith.constant dense<0.000000e+00> : vector<8xf32>
    %82 = vector.multi_reduction <add>, %81, %cst_21 [1] : vector<8x8xf32> to vector<8xf32>
    %83 = vector.shape_cast %82 : vector<8xf32> to vector<8x1xf32>
    %84 = tpu.reciprocal %83 {approx = true} : vector<8x1xf32> -> vector<8x1xf32>
    %85 = vector.broadcast %84 : vector<8x1xf32> to vector<8x8xf32>
    %86 = arith.mulf %81, %85 : vector<8x8xf32>
    %87 = arith.truncf %86 : vector<8x8xf32> to vector<8x8xbf16>
    %cst_22 = arith.constant dense<0.000000e+00> : vector<8x8xf32>
    %88 = tpu.matmul %87, %75, %cst_22 {dimension_numbers = #tpu.dot_dimension_numbers<[1], [0], [0], [1], [0, 0, 1, 1], [], []>} : vector<8x8xbf16>, vector<8x8xbf16>, vector<8x8xf32> -> vector<8x8xf32>
    %89 = tpu.concatenate %31, %50, %69, %88 in 1 : vector<8x8xf32>, vector<8x8xf32>, vector<8x8xf32>, vector<8x8xf32> -> vector<8x32xf32>
    %90 = vector.extract_strided_slice %9 {offsets = [8, 0], sizes = [8, 32], strides = [1, 1]} : vector<16x96xf32> to vector<8x32xf32>
    %91 = vector.extract_strided_slice %9 {offsets = [8, 32], sizes = [8, 32], strides = [1, 1]} : vector<16x96xf32> to vector<8x32xf32>
    %92 = vector.extract_strided_slice %9 {offsets = [8, 64], sizes = [8, 32], strides = [1, 1]} : vector<16x96xf32> to vector<8x32xf32>
    %93 = vector.extract_strided_slice %90 {offsets = [0, 0], sizes = [8, 8], strides = [1, 1]} : vector<8x32xf32> to vector<8x8xf32>
    %94 = arith.truncf %93 : vector<8x8xf32> to vector<8x8xbf16>
    %95 = vector.extract_strided_slice %91 {offsets = [0, 0], sizes = [8, 8], strides = [1, 1]} : vector<8x32xf32> to vector<8x8xf32>
    %96 = arith.truncf %95 : vector<8x8xf32> to vector<8x8xbf16>
    %97 = vector.extract_strided_slice %92 {offsets = [0, 0], sizes = [8, 8], strides = [1, 1]} : vector<8x32xf32> to vector<8x8xf32>
    %98 = arith.truncf %97 : vector<8x8xf32> to vector<8x8xbf16>
    %cst_23 = arith.constant dense<0.000000e+00> : vector<8x8xf32>
    %99 = tpu.matmul %94, %96, %cst_23 {dimension_numbers = #tpu.dot_dimension_numbers<[1], [1], [0], [0], [0, 0, 1, 0], [], []>} : vector<8x8xbf16>, vector<8x8xbf16>, vector<8x8xf32> -> vector<8x8xf32>
    %cst_24 = arith.constant dense<0xFF800000> : vector<8xf32>
    %100 = vector.multi_reduction <maximumf>, %99, %cst_24 [1] : vector<8x8xf32> to vector<8xf32>
    %101 = vector.shape_cast %100 : vector<8xf32> to vector<8x1xf32>
    %102 = vector.broadcast %101 : vector<8x1xf32> to vector<8x8xf32>
    %103 = arith.subf %99, %102 : vector<8x8xf32>
    %104 = math.exp %103 : vector<8x8xf32>
    %cst_25 = arith.constant dense<0.000000e+00> : vector<8xf32>
    %105 = vector.multi_reduction <add>, %104, %cst_25 [1] : vector<8x8xf32> to vector<8xf32>
    %106 = vector.shape_cast %105 : vector<8xf32> to vector<8x1xf32>
    %107 = tpu.reciprocal %106 {approx = true} : vector<8x1xf32> -> vector<8x1xf32>
    %108 = vector.broadcast %107 : vector<8x1xf32> to vector<8x8xf32>
    %109 = arith.mulf %104, %108 : vector<8x8xf32>
    %110 = arith.truncf %109 : vector<8x8xf32> to vector<8x8xbf16>
    %cst_26 = arith.constant dense<0.000000e+00> : vector<8x8xf32>
    %111 = tpu.matmul %110, %98, %cst_26 {dimension_numbers = #tpu.dot_dimension_numbers<[1], [0], [0], [1], [0, 0, 1, 1], [], []>} : vector<8x8xbf16>, vector<8x8xbf16>, vector<8x8xf32> -> vector<8x8xf32>
    %112 = vector.extract_strided_slice %90 {offsets = [0, 8], sizes = [8, 8], strides = [1, 1]} : vector<8x32xf32> to vector<8x8xf32>
    %113 = arith.truncf %112 : vector<8x8xf32> to vector<8x8xbf16>
    %114 = vector.extract_strided_slice %91 {offsets = [0, 8], sizes = [8, 8], strides = [1, 1]} : vector<8x32xf32> to vector<8x8xf32>
    %115 = arith.truncf %114 : vector<8x8xf32> to vector<8x8xbf16>
    %116 = vector.extract_strided_slice %92 {offsets = [0, 8], sizes = [8, 8], strides = [1, 1]} : vector<8x32xf32> to vector<8x8xf32>
    %117 = arith.truncf %116 : vector<8x8xf32> to vector<8x8xbf16>
    %cst_27 = arith.constant dense<0.000000e+00> : vector<8x8xf32>
    %118 = tpu.matmul %113, %115, %cst_27 {dimension_numbers = #tpu.dot_dimension_numbers<[1], [1], [0], [0], [0, 0, 1, 0], [], []>} : vector<8x8xbf16>, vector<8x8xbf16>, vector<8x8xf32> -> vector<8x8xf32>
    %cst_28 = arith.constant dense<0xFF800000> : vector<8xf32>
    %119 = vector.multi_reduction <maximumf>, %118, %cst_28 [1] : vector<8x8xf32> to vector<8xf32>
    %120 = vector.shape_cast %119 : vector<8xf32> to vector<8x1xf32>
    %121 = vector.broadcast %120 : vector<8x1xf32> to vector<8x8xf32>
    %122 = arith.subf %118, %121 : vector<8x8xf32>
    %123 = math.exp %122 : vector<8x8xf32>
    %cst_29 = arith.constant dense<0.000000e+00> : vector<8xf32>
    %124 = vector.multi_reduction <add>, %123, %cst_29 [1] : vector<8x8xf32> to vector<8xf32>
    %125 = vector.shape_cast %124 : vector<8xf32> to vector<8x1xf32>
    %126 = tpu.reciprocal %125 {approx = true} : vector<8x1xf32> -> vector<8x1xf32>
    %127 = vector.broadcast %126 : vector<8x1xf32> to vector<8x8xf32>
    %128 = arith.mulf %123, %127 : vector<8x8xf32>
    %129 = arith.truncf %128 : vector<8x8xf32> to vector<8x8xbf16>
    %cst_30 = arith.constant dense<0.000000e+00> : vector<8x8xf32>
    %130 = tpu.matmul %129, %117, %cst_30 {dimension_numbers = #tpu.dot_dimension_numbers<[1], [0], [0], [1], [0, 0, 1, 1], [], []>} : vector<8x8xbf16>, vector<8x8xbf16>, vector<8x8xf32> -> vector<8x8xf32>
    %131 = vector.extract_strided_slice %90 {offsets = [0, 16], sizes = [8, 8], strides = [1, 1]} : vector<8x32xf32> to vector<8x8xf32>
    %132 = arith.truncf %131 : vector<8x8xf32> to vector<8x8xbf16>
    %133 = vector.extract_strided_slice %91 {offsets = [0, 16], sizes = [8, 8], strides = [1, 1]} : vector<8x32xf32> to vector<8x8xf32>
    %134 = arith.truncf %133 : vector<8x8xf32> to vector<8x8xbf16>
    %135 = vector.extract_strided_slice %92 {offsets = [0, 16], sizes = [8, 8], strides = [1, 1]} : vector<8x32xf32> to vector<8x8xf32>
    %136 = arith.truncf %135 : vector<8x8xf32> to vector<8x8xbf16>
    %cst_31 = arith.constant dense<0.000000e+00> : vector<8x8xf32>
    %137 = tpu.matmul %132, %134, %cst_31 {dimension_numbers = #tpu.dot_dimension_numbers<[1], [1], [0], [0], [0, 0, 1, 0], [], []>} : vector<8x8xbf16>, vector<8x8xbf16>, vector<8x8xf32> -> vector<8x8xf32>
    %cst_32 = arith.constant dense<0xFF800000> : vector<8xf32>
    %138 = vector.multi_reduction <maximumf>, %137, %cst_32 [1] : vector<8x8xf32> to vector<8xf32>
    %139 = vector.shape_cast %138 : vector<8xf32> to vector<8x1xf32>
    %140 = vector.broadcast %139 : vector<8x1xf32> to vector<8x8xf32>
    %141 = arith.subf %137, %140 : vector<8x8xf32>
    %142 = math.exp %141 : vector<8x8xf32>
    %cst_33 = arith.constant dense<0.000000e+00> : vector<8xf32>
    %143 = vector.multi_reduction <add>, %142, %cst_33 [1] : vector<8x8xf32> to vector<8xf32>
    %144 = vector.shape_cast %143 : vector<8xf32> to vector<8x1xf32>
    %145 = tpu.reciprocal %144 {approx = true} : vector<8x1xf32> -> vector<8x1xf32>
    %146 = vector.broadcast %145 : vector<8x1xf32> to vector<8x8xf32>
    %147 = arith.mulf %142, %146 : vector<8x8xf32>
    %148 = arith.truncf %147 : vector<8x8xf32> to vector<8x8xbf16>
    %cst_34 = arith.constant dense<0.000000e+00> : vector<8x8xf32>
    %149 = tpu.matmul %148, %136, %cst_34 {dimension_numbers = #tpu.dot_dimension_numbers<[1], [0], [0], [1], [0, 0, 1, 1], [], []>} : vector<8x8xbf16>, vector<8x8xbf16>, vector<8x8xf32> -> vector<8x8xf32>
    %150 = vector.extract_strided_slice %90 {offsets = [0, 24], sizes = [8, 8], strides = [1, 1]} : vector<8x32xf32> to vector<8x8xf32>
    %151 = arith.truncf %150 : vector<8x8xf32> to vector<8x8xbf16>
    %152 = vector.extract_strided_slice %91 {offsets = [0, 24], sizes = [8, 8], strides = [1, 1]} : vector<8x32xf32> to vector<8x8xf32>
    %153 = arith.truncf %152 : vector<8x8xf32> to vector<8x8xbf16>
    %154 = vector.extract_strided_slice %92 {offsets = [0, 24], sizes = [8, 8], strides = [1, 1]} : vector<8x32xf32> to vector<8x8xf32>
    %155 = arith.truncf %154 : vector<8x8xf32> to vector<8x8xbf16>
    %cst_35 = arith.constant dense<0.000000e+00> : vector<8x8xf32>
    %156 = tpu.matmul %151, %153, %cst_35 {dimension_numbers = #tpu.dot_dimension_numbers<[1], [1], [0], [0], [0, 0, 1, 0], [], []>} : vector<8x8xbf16>, vector<8x8xbf16>, vector<8x8xf32> -> vector<8x8xf32>
    %cst_36 = arith.constant dense<0xFF800000> : vector<8xf32>
    %157 = vector.multi_reduction <maximumf>, %156, %cst_36 [1] : vector<8x8xf32> to vector<8xf32>
    %158 = vector.shape_cast %157 : vector<8xf32> to vector<8x1xf32>
    %159 = vector.broadcast %158 : vector<8x1xf32> to vector<8x8xf32>
    %160 = arith.subf %156, %159 : vector<8x8xf32>
    %161 = math.exp %160 : vector<8x8xf32>
    %cst_37 = arith.constant dense<0.000000e+00> : vector<8xf32>
    %162 = vector.multi_reduction <add>, %161, %cst_37 [1] : vector<8x8xf32> to vector<8xf32>
    %163 = vector.shape_cast %162 : vector<8xf32> to vector<8x1xf32>
    %164 = tpu.reciprocal %163 {approx = true} : vector<8x1xf32> -> vector<8x1xf32>
    %165 = vector.broadcast %164 : vector<8x1xf32> to vector<8x8xf32>
    %166 = arith.mulf %161, %165 : vector<8x8xf32>
    %167 = arith.truncf %166 : vector<8x8xf32> to vector<8x8xbf16>
    %cst_38 = arith.constant dense<0.000000e+00> : vector<8x8xf32>
    %168 = tpu.matmul %167, %155, %cst_38 {dimension_numbers = #tpu.dot_dimension_numbers<[1], [0], [0], [1], [0, 0, 1, 1], [], []>} : vector<8x8xbf16>, vector<8x8xbf16>, vector<8x8xf32> -> vector<8x8xf32>
    %169 = tpu.concatenate %111, %130, %149, %168 in 1 : vector<8x8xf32>, vector<8x8xf32>, vector<8x8xf32>, vector<8x8xf32> -> vector<8x32xf32>
    %170 = tpu.concatenate %89, %169 in 0 : vector<8x32xf32>, vector<8x32xf32> -> vector<16x32xf32>
    %171 = arith.truncf %170 : vector<16x32xf32> to vector<16x32xbf16>
    %c0_39 = arith.constant 0 : index
    %c0_40 = arith.constant 0 : index
    %c0_41 = arith.constant 0 : index
    %172 = vector.load %arg3[%c0_39, %c0_40, %c0_41] : memref<2x32x32xbf16, #tpu.memory_space<vmem>>, vector<1x32x32xbf16>
    %173 = vector.shape_cast %172 : vector<1x32x32xbf16> to vector<32x32xbf16>
    %cst_42 = arith.constant dense<0.000000e+00> : vector<16x32xf32>
    %174 = tpu.matmul %171, %173, %cst_42 {dimension_numbers = #tpu.dot_dimension_numbers<[1], [0], [0], [1], [0, 0, 1, 1], [], []>} : vector<16x32xbf16>, vector<32x32xbf16>, vector<16x32xf32> -> vector<16x32xf32>
    %c0_43 = arith.constant 0 : index
    %c0_44 = arith.constant 0 : index
    %c0_45 = arith.constant 0 : index
    %175 = vector.load %arg7[%c0_43, %c0_44, %c0_45] : memref<2x6x32xf32, #tpu.memory_space<vmem>>, vector<1x1x32xf32>
    %176 = vector.shape_cast %175 : vector<1x1x32xf32> to vector<1x32xf32>
    %177 = vector.broadcast %176 : vector<1x32xf32> to vector<16x32xf32>
    %178 = arith.addf %174, %177 : vector<16x32xf32>
    %179 = arith.addf %1, %178 : vector<16x32xf32>
    %c0_46 = arith.constant 0 : index
    %c1 = arith.constant 1 : index
    %c0_47 = arith.constant 0 : index
    %180 = vector.load %arg7[%c0_46, %c1, %c0_47] : memref<2x6x32xf32, #tpu.memory_space<vmem>>, vector<1x1x32xf32>
    %181 = vector.shape_cast %180 : vector<1x1x32xf32> to vector<1x32xf32>
    %c0_48 = arith.constant 0 : index
    %c2 = arith.constant 2 : index
    %c0_49 = arith.constant 0 : index
    %182 = vector.load %arg7[%c0_48, %c2, %c0_49] : memref<2x6x32xf32, #tpu.memory_space<vmem>>, vector<1x1x32xf32>
    %183 = vector.shape_cast %182 : vector<1x1x32xf32> to vector<1x32xf32>
    %cst_50 = arith.constant dense<0.000000e+00> : vector<16xf32>
    %184 = vector.multi_reduction <add>, %179, %cst_50 [1] : vector<16x32xf32> to vector<16xf32>
    %185 = vector.shape_cast %184 : vector<16xf32> to vector<16x1xf32>
    %cst_51 = arith.constant 3.200000e+01 : f32
    %186 = vector.broadcast %cst_51 : f32 to vector<16x1xf32>
    %187 = arith.divf %185, %186 : vector<16x1xf32>
    %188 = vector.broadcast %187 : vector<16x1xf32> to vector<16x32xf32>
    %189 = arith.subf %179, %188 : vector<16x32xf32>
    %190 = arith.mulf %189, %189 : vector<16x32xf32>
    %cst_52 = arith.constant dense<0.000000e+00> : vector<16xf32>
    %191 = vector.multi_reduction <add>, %190, %cst_52 [1] : vector<16x32xf32> to vector<16xf32>
    %192 = vector.shape_cast %191 : vector<16xf32> to vector<16x1xf32>
    %cst_53 = arith.constant 3.200000e+01 : f32
    %193 = vector.broadcast %cst_53 : f32 to vector<16x1xf32>
    %194 = arith.divf %192, %193 : vector<16x1xf32>
    %195 = vector.broadcast %187 : vector<16x1xf32> to vector<16x32xf32>
    %196 = arith.subf %179, %195 : vector<16x32xf32>
    %cst_54 = arith.constant 9.99999974E-6 : f32
    %197 = vector.broadcast %cst_54 : f32 to vector<16x1xf32>
    %198 = arith.addf %194, %197 : vector<16x1xf32>
    %199 = math.rsqrt %198 : vector<16x1xf32>
    %200 = vector.broadcast %199 : vector<16x1xf32> to vector<16x32xf32>
    %201 = arith.mulf %196, %200 : vector<16x32xf32>
    %202 = vector.broadcast %181 : vector<1x32xf32> to vector<16x32xf32>
    %203 = arith.mulf %201, %202 : vector<16x32xf32>
    %204 = vector.broadcast %183 : vector<1x32xf32> to vector<16x32xf32>
    %205 = arith.addf %203, %204 : vector<16x32xf32>
    %c0_55 = arith.constant 0 : index
    %c0_56 = arith.constant 0 : index
    %c0_57 = arith.constant 0 : index
    %206 = vector.load %arg6[%c0_55, %c0_56, %c0_57] : memref<2x1x2144xf32, #tpu.memory_space<vmem>>, vector<1x1x2048xf32>
    %207 = vector.shape_cast %206 : vector<1x1x2048xf32> to vector<1x2048xf32>
    %208 = arith.truncf %205 : vector<16x32xf32> to vector<16x32xbf16>
    %c0_58 = arith.constant 0 : index
    %c0_59 = arith.constant 0 : index
    %c0_60 = arith.constant 0 : index
    %209 = vector.load %arg4[%c0_58, %c0_59, %c0_60] : memref<2x32x2048xbf16, #tpu.memory_space<vmem>>, vector<1x32x2048xbf16>
    %210 = vector.shape_cast %209 : vector<1x32x2048xbf16> to vector<32x2048xbf16>
    %cst_61 = arith.constant dense<0.000000e+00> : vector<16x2048xf32>
    %211 = tpu.matmul %208, %210, %cst_61 {dimension_numbers = #tpu.dot_dimension_numbers<[1], [0], [0], [1], [0, 0, 1, 1], [], []>} : vector<16x32xbf16>, vector<32x2048xbf16>, vector<16x2048xf32> -> vector<16x2048xf32>
    %212 = vector.broadcast %207 : vector<1x2048xf32> to vector<16x2048xf32>
    %213 = arith.addf %211, %212 : vector<16x2048xf32>
    %cst_62 = arith.constant 0.000000e+00 : f32
    %214 = vector.broadcast %cst_62 : f32 to vector<16x2048xf32>
    %215 = arith.maximumf %213, %214 : vector<16x2048xf32>
    %216 = arith.truncf %215 : vector<16x2048xf32> to vector<16x2048xbf16>
    %c0_63 = arith.constant 0 : index
    %c0_64 = arith.constant 0 : index
    %c0_65 = arith.constant 0 : index
    %217 = vector.load %arg5[%c0_63, %c0_64, %c0_65] : memref<2x2048x32xbf16, #tpu.memory_space<vmem>>, vector<1x2048x32xbf16>
    %218 = vector.shape_cast %217 : vector<1x2048x32xbf16> to vector<2048x32xbf16>
    %cst_66 = arith.constant dense<0.000000e+00> : vector<16x32xf32>
    %219 = tpu.matmul %216, %218, %cst_66 {dimension_numbers = #tpu.dot_dimension_numbers<[1], [0], [0], [1], [0, 0, 1, 1], [], []>} : vector<16x2048xbf16>, vector<2048x32xbf16>, vector<16x32xf32> -> vector<16x32xf32>
    %c0_67 = arith.constant 0 : index
    %c3 = arith.constant 3 : index
    %c0_68 = arith.constant 0 : index
    %220 = vector.load %arg7[%c0_67, %c3, %c0_68] : memref<2x6x32xf32, #tpu.memory_space<vmem>>, vector<1x1x32xf32>
    %221 = vector.shape_cast %220 : vector<1x1x32xf32> to vector<1x32xf32>
    %222 = vector.broadcast %221 : vector<1x32xf32> to vector<16x32xf32>
    %223 = arith.addf %219, %222 : vector<16x32xf32>
    %224 = arith.addf %205, %223 : vector<16x32xf32>
    %c0_69 = arith.constant 0 : index
    %c4 = arith.constant 4 : index
    %c0_70 = arith.constant 0 : index
    %225 = vector.load %arg7[%c0_69, %c4, %c0_70] : memref<2x6x32xf32, #tpu.memory_space<vmem>>, vector<1x1x32xf32>
    %226 = vector.shape_cast %225 : vector<1x1x32xf32> to vector<1x32xf32>
    %c0_71 = arith.constant 0 : index
    %c5 = arith.constant 5 : index
    %c0_72 = arith.constant 0 : index
    %227 = vector.load %arg7[%c0_71, %c5, %c0_72] : memref<2x6x32xf32, #tpu.memory_space<vmem>>, vector<1x1x32xf32>
    %228 = vector.shape_cast %227 : vector<1x1x32xf32> to vector<1x32xf32>
    %cst_73 = arith.constant dense<0.000000e+00> : vector<16xf32>
    %229 = vector.multi_reduction <add>, %224, %cst_73 [1] : vector<16x32xf32> to vector<16xf32>
    %230 = vector.shape_cast %229 : vector<16xf32> to vector<16x1xf32>
    %cst_74 = arith.constant 3.200000e+01 : f32
    %231 = vector.broadcast %cst_74 : f32 to vector<16x1xf32>
    %232 = arith.divf %230, %231 : vector<16x1xf32>
    %233 = vector.broadcast %232 : vector<16x1xf32> to vector<16x32xf32>
    %234 = arith.subf %224, %233 : vector<16x32xf32>
    %235 = arith.mulf %234, %234 : vector<16x32xf32>
    %cst_75 = arith.constant dense<0.000000e+00> : vector<16xf32>
    %236 = vector.multi_reduction <add>, %235, %cst_75 [1] : vector<16x32xf32> to vector<16xf32>
    %237 = vector.shape_cast %236 : vector<16xf32> to vector<16x1xf32>
    %cst_76 = arith.constant 3.200000e+01 : f32
    %238 = vector.broadcast %cst_76 : f32 to vector<16x1xf32>
    %239 = arith.divf %237, %238 : vector<16x1xf32>
    %240 = vector.broadcast %232 : vector<16x1xf32> to vector<16x32xf32>
    %241 = arith.subf %224, %240 : vector<16x32xf32>
    %cst_77 = arith.constant 9.99999974E-6 : f32
    %242 = vector.broadcast %cst_77 : f32 to vector<16x1xf32>
    %243 = arith.addf %239, %242 : vector<16x1xf32>
    %244 = math.rsqrt %243 : vector<16x1xf32>
    %245 = vector.broadcast %244 : vector<16x1xf32> to vector<16x32xf32>
    %246 = arith.mulf %241, %245 : vector<16x32xf32>
    %247 = vector.broadcast %226 : vector<1x32xf32> to vector<16x32xf32>
    %248 = arith.mulf %246, %247 : vector<16x32xf32>
    %249 = vector.broadcast %228 : vector<1x32xf32> to vector<16x32xf32>
    %250 = arith.addf %248, %249 : vector<16x32xf32>
    %c1_78 = arith.constant 1 : index
    %c0_79 = arith.constant 0 : index
    %c2048_80 = arith.constant 2048 : index
    %251 = vector.load %arg6[%c1_78, %c0_79, %c2048_80] : memref<2x1x2144xf32, #tpu.memory_space<vmem>>, vector<1x1x96xf32>
    %252 = vector.shape_cast %251 : vector<1x1x96xf32> to vector<1x96xf32>
    %253 = arith.truncf %250 : vector<16x32xf32> to vector<16x32xbf16>
    %c1_81 = arith.constant 1 : index
    %c0_82 = arith.constant 0 : index
    %c0_83 = arith.constant 0 : index
    %254 = vector.load %arg2[%c1_81, %c0_82, %c0_83] : memref<2x32x96xbf16, #tpu.memory_space<vmem>>, vector<1x32x96xbf16>
    %255 = vector.shape_cast %254 : vector<1x32x96xbf16> to vector<32x96xbf16>
    %cst_84 = arith.constant dense<0.000000e+00> : vector<16x96xf32>
    %256 = tpu.matmul %253, %255, %cst_84 {dimension_numbers = #tpu.dot_dimension_numbers<[1], [0], [0], [1], [0, 0, 1, 1], [], []>} : vector<16x32xbf16>, vector<32x96xbf16>, vector<16x96xf32> -> vector<16x96xf32>
    %257 = vector.broadcast %252 : vector<1x96xf32> to vector<16x96xf32>
    %258 = arith.addf %256, %257 : vector<16x96xf32>
    %259 = vector.extract_strided_slice %250 {offsets = [7, 0], sizes = [1, 32], strides = [1, 1]} : vector<16x32xf32> to vector<1x32xf32>
    %260 = vector.extract_strided_slice %250 {offsets = [15, 0], sizes = [1, 32], strides = [1, 1]} : vector<16x32xf32> to vector<1x32xf32>
    %261 = tpu.concatenate %259, %260 in 0 : vector<1x32xf32>, vector<1x32xf32> -> vector<2x32xf32>
    %262 = vector.extract_strided_slice %258 {offsets = [7, 0], sizes = [1, 32], strides = [1, 1]} : vector<16x96xf32> to vector<1x32xf32>
    %263 = vector.extract_strided_slice %258 {offsets = [0, 32], sizes = [8, 32], strides = [1, 1]} : vector<16x96xf32> to vector<8x32xf32>
    %264 = vector.extract_strided_slice %258 {offsets = [0, 64], sizes = [8, 32], strides = [1, 1]} : vector<16x96xf32> to vector<8x32xf32>
    %265 = vector.extract_strided_slice %262 {offsets = [0, 0], sizes = [1, 8], strides = [1, 1]} : vector<1x32xf32> to vector<1x8xf32>
    %266 = arith.truncf %265 : vector<1x8xf32> to vector<1x8xbf16>
    %267 = vector.extract_strided_slice %263 {offsets = [0, 0], sizes = [8, 8], strides = [1, 1]} : vector<8x32xf32> to vector<8x8xf32>
    %268 = arith.truncf %267 : vector<8x8xf32> to vector<8x8xbf16>
    %269 = vector.extract_strided_slice %264 {offsets = [0, 0], sizes = [8, 8], strides = [1, 1]} : vector<8x32xf32> to vector<8x8xf32>
    %270 = arith.truncf %269 : vector<8x8xf32> to vector<8x8xbf16>
    %cst_85 = arith.constant dense<0.000000e+00> : vector<1x8xf32>
    %271 = tpu.matmul %266, %268, %cst_85 {dimension_numbers = #tpu.dot_dimension_numbers<[1], [1], [0], [0], [0, 0, 1, 0], [], []>} : vector<1x8xbf16>, vector<8x8xbf16>, vector<1x8xf32> -> vector<1x8xf32>
    %cst_86 = arith.constant dense<0xFF800000> : vector<1xf32>
    %272 = vector.multi_reduction <maximumf>, %271, %cst_86 [1] : vector<1x8xf32> to vector<1xf32>
    %273 = vector.shape_cast %272 : vector<1xf32> to vector<1x1xf32>
    %274 = vector.broadcast %273 : vector<1x1xf32> to vector<1x8xf32>
    %275 = arith.subf %271, %274 : vector<1x8xf32>
    %276 = math.exp %275 : vector<1x8xf32>
    %cst_87 = arith.constant dense<0.000000e+00> : vector<1xf32>
    %277 = vector.multi_reduction <add>, %276, %cst_87 [1] : vector<1x8xf32> to vector<1xf32>
    %278 = vector.shape_cast %277 : vector<1xf32> to vector<1x1xf32>
    %279 = tpu.reciprocal %278 {approx = true} : vector<1x1xf32> -> vector<1x1xf32>
    %280 = vector.broadcast %279 : vector<1x1xf32> to vector<1x8xf32>
    %281 = arith.mulf %276, %280 : vector<1x8xf32>
    %282 = arith.truncf %281 : vector<1x8xf32> to vector<1x8xbf16>
    %cst_88 = arith.constant dense<0.000000e+00> : vector<1x8xf32>
    %283 = tpu.matmul %282, %270, %cst_88 {dimension_numbers = #tpu.dot_dimension_numbers<[1], [0], [0], [1], [0, 0, 1, 1], [], []>} : vector<1x8xbf16>, vector<8x8xbf16>, vector<1x8xf32> -> vector<1x8xf32>
    %284 = vector.extract_strided_slice %262 {offsets = [0, 8], sizes = [1, 8], strides = [1, 1]} : vector<1x32xf32> to vector<1x8xf32>
    %285 = arith.truncf %284 : vector<1x8xf32> to vector<1x8xbf16>
    %286 = vector.extract_strided_slice %263 {offsets = [0, 8], sizes = [8, 8], strides = [1, 1]} : vector<8x32xf32> to vector<8x8xf32>
    %287 = arith.truncf %286 : vector<8x8xf32> to vector<8x8xbf16>
    %288 = vector.extract_strided_slice %264 {offsets = [0, 8], sizes = [8, 8], strides = [1, 1]} : vector<8x32xf32> to vector<8x8xf32>
    %289 = arith.truncf %288 : vector<8x8xf32> to vector<8x8xbf16>
    %cst_89 = arith.constant dense<0.000000e+00> : vector<1x8xf32>
    %290 = tpu.matmul %285, %287, %cst_89 {dimension_numbers = #tpu.dot_dimension_numbers<[1], [1], [0], [0], [0, 0, 1, 0], [], []>} : vector<1x8xbf16>, vector<8x8xbf16>, vector<1x8xf32> -> vector<1x8xf32>
    %cst_90 = arith.constant dense<0xFF800000> : vector<1xf32>
    %291 = vector.multi_reduction <maximumf>, %290, %cst_90 [1] : vector<1x8xf32> to vector<1xf32>
    %292 = vector.shape_cast %291 : vector<1xf32> to vector<1x1xf32>
    %293 = vector.broadcast %292 : vector<1x1xf32> to vector<1x8xf32>
    %294 = arith.subf %290, %293 : vector<1x8xf32>
    %295 = math.exp %294 : vector<1x8xf32>
    %cst_91 = arith.constant dense<0.000000e+00> : vector<1xf32>
    %296 = vector.multi_reduction <add>, %295, %cst_91 [1] : vector<1x8xf32> to vector<1xf32>
    %297 = vector.shape_cast %296 : vector<1xf32> to vector<1x1xf32>
    %298 = tpu.reciprocal %297 {approx = true} : vector<1x1xf32> -> vector<1x1xf32>
    %299 = vector.broadcast %298 : vector<1x1xf32> to vector<1x8xf32>
    %300 = arith.mulf %295, %299 : vector<1x8xf32>
    %301 = arith.truncf %300 : vector<1x8xf32> to vector<1x8xbf16>
    %cst_92 = arith.constant dense<0.000000e+00> : vector<1x8xf32>
    %302 = tpu.matmul %301, %289, %cst_92 {dimension_numbers = #tpu.dot_dimension_numbers<[1], [0], [0], [1], [0, 0, 1, 1], [], []>} : vector<1x8xbf16>, vector<8x8xbf16>, vector<1x8xf32> -> vector<1x8xf32>
    %303 = vector.extract_strided_slice %262 {offsets = [0, 16], sizes = [1, 8], strides = [1, 1]} : vector<1x32xf32> to vector<1x8xf32>
    %304 = arith.truncf %303 : vector<1x8xf32> to vector<1x8xbf16>
    %305 = vector.extract_strided_slice %263 {offsets = [0, 16], sizes = [8, 8], strides = [1, 1]} : vector<8x32xf32> to vector<8x8xf32>
    %306 = arith.truncf %305 : vector<8x8xf32> to vector<8x8xbf16>
    %307 = vector.extract_strided_slice %264 {offsets = [0, 16], sizes = [8, 8], strides = [1, 1]} : vector<8x32xf32> to vector<8x8xf32>
    %308 = arith.truncf %307 : vector<8x8xf32> to vector<8x8xbf16>
    %cst_93 = arith.constant dense<0.000000e+00> : vector<1x8xf32>
    %309 = tpu.matmul %304, %306, %cst_93 {dimension_numbers = #tpu.dot_dimension_numbers<[1], [1], [0], [0], [0, 0, 1, 0], [], []>} : vector<1x8xbf16>, vector<8x8xbf16>, vector<1x8xf32> -> vector<1x8xf32>
    %cst_94 = arith.constant dense<0xFF800000> : vector<1xf32>
    %310 = vector.multi_reduction <maximumf>, %309, %cst_94 [1] : vector<1x8xf32> to vector<1xf32>
    %311 = vector.shape_cast %310 : vector<1xf32> to vector<1x1xf32>
    %312 = vector.broadcast %311 : vector<1x1xf32> to vector<1x8xf32>
    %313 = arith.subf %309, %312 : vector<1x8xf32>
    %314 = math.exp %313 : vector<1x8xf32>
    %cst_95 = arith.constant dense<0.000000e+00> : vector<1xf32>
    %315 = vector.multi_reduction <add>, %314, %cst_95 [1] : vector<1x8xf32> to vector<1xf32>
    %316 = vector.shape_cast %315 : vector<1xf32> to vector<1x1xf32>
    %317 = tpu.reciprocal %316 {approx = true} : vector<1x1xf32> -> vector<1x1xf32>
    %318 = vector.broadcast %317 : vector<1x1xf32> to vector<1x8xf32>
    %319 = arith.mulf %314, %318 : vector<1x8xf32>
    %320 = arith.truncf %319 : vector<1x8xf32> to vector<1x8xbf16>
    %cst_96 = arith.constant dense<0.000000e+00> : vector<1x8xf32>
    %321 = tpu.matmul %320, %308, %cst_96 {dimension_numbers = #tpu.dot_dimension_numbers<[1], [0], [0], [1], [0, 0, 1, 1], [], []>} : vector<1x8xbf16>, vector<8x8xbf16>, vector<1x8xf32> -> vector<1x8xf32>
    %322 = vector.extract_strided_slice %262 {offsets = [0, 24], sizes = [1, 8], strides = [1, 1]} : vector<1x32xf32> to vector<1x8xf32>
    %323 = arith.truncf %322 : vector<1x8xf32> to vector<1x8xbf16>
    %324 = vector.extract_strided_slice %263 {offsets = [0, 24], sizes = [8, 8], strides = [1, 1]} : vector<8x32xf32> to vector<8x8xf32>
    %325 = arith.truncf %324 : vector<8x8xf32> to vector<8x8xbf16>
    %326 = vector.extract_strided_slice %264 {offsets = [0, 24], sizes = [8, 8], strides = [1, 1]} : vector<8x32xf32> to vector<8x8xf32>
    %327 = arith.truncf %326 : vector<8x8xf32> to vector<8x8xbf16>
    %cst_97 = arith.constant dense<0.000000e+00> : vector<1x8xf32>
    %328 = tpu.matmul %323, %325, %cst_97 {dimension_numbers = #tpu.dot_dimension_numbers<[1], [1], [0], [0], [0, 0, 1, 0], [], []>} : vector<1x8xbf16>, vector<8x8xbf16>, vector<1x8xf32> -> vector<1x8xf32>
    %cst_98 = arith.constant dense<0xFF800000> : vector<1xf32>
    %329 = vector.multi_reduction <maximumf>, %328, %cst_98 [1] : vector<1x8xf32> to vector<1xf32>
    %330 = vector.shape_cast %329 : vector<1xf32> to vector<1x1xf32>
    %331 = vector.broadcast %330 : vector<1x1xf32> to vector<1x8xf32>
    %332 = arith.subf %328, %331 : vector<1x8xf32>
    %333 = math.exp %332 : vector<1x8xf32>
    %cst_99 = arith.constant dense<0.000000e+00> : vector<1xf32>
    %334 = vector.multi_reduction <add>, %333, %cst_99 [1] : vector<1x8xf32> to vector<1xf32>
    %335 = vector.shape_cast %334 : vector<1xf32> to vector<1x1xf32>
    %336 = tpu.reciprocal %335 {approx = true} : vector<1x1xf32> -> vector<1x1xf32>
    %337 = vector.broadcast %336 : vector<1x1xf32> to vector<1x8xf32>
    %338 = arith.mulf %333, %337 : vector<1x8xf32>
    %339 = arith.truncf %338 : vector<1x8xf32> to vector<1x8xbf16>
    %cst_100 = arith.constant dense<0.000000e+00> : vector<1x8xf32>
    %340 = tpu.matmul %339, %327, %cst_100 {dimension_numbers = #tpu.dot_dimension_numbers<[1], [0], [0], [1], [0, 0, 1, 1], [], []>} : vector<1x8xbf16>, vector<8x8xbf16>, vector<1x8xf32> -> vector<1x8xf32>
    %341 = tpu.concatenate %283, %302, %321, %340 in 1 : vector<1x8xf32>, vector<1x8xf32>, vector<1x8xf32>, vector<1x8xf32> -> vector<1x32xf32>
    %342 = vector.extract_strided_slice %258 {offsets = [15, 0], sizes = [1, 32], strides = [1, 1]} : vector<16x96xf32> to vector<1x32xf32>
    %343 = vector.extract_strided_slice %258 {offsets = [8, 32], sizes = [8, 32], strides = [1, 1]} : vector<16x96xf32> to vector<8x32xf32>
    %344 = vector.extract_strided_slice %258 {offsets = [8, 64], sizes = [8, 32], strides = [1, 1]} : vector<16x96xf32> to vector<8x32xf32>
    %345 = vector.extract_strided_slice %342 {offsets = [0, 0], sizes = [1, 8], strides = [1, 1]} : vector<1x32xf32> to vector<1x8xf32>
    %346 = arith.truncf %345 : vector<1x8xf32> to vector<1x8xbf16>
    %347 = vector.extract_strided_slice %343 {offsets = [0, 0], sizes = [8, 8], strides = [1, 1]} : vector<8x32xf32> to vector<8x8xf32>
    %348 = arith.truncf %347 : vector<8x8xf32> to vector<8x8xbf16>
    %349 = vector.extract_strided_slice %344 {offsets = [0, 0], sizes = [8, 8], strides = [1, 1]} : vector<8x32xf32> to vector<8x8xf32>
    %350 = arith.truncf %349 : vector<8x8xf32> to vector<8x8xbf16>
    %cst_101 = arith.constant dense<0.000000e+00> : vector<1x8xf32>
    %351 = tpu.matmul %346, %348, %cst_101 {dimension_numbers = #tpu.dot_dimension_numbers<[1], [1], [0], [0], [0, 0, 1, 0], [], []>} : vector<1x8xbf16>, vector<8x8xbf16>, vector<1x8xf32> -> vector<1x8xf32>
    %cst_102 = arith.constant dense<0xFF800000> : vector<1xf32>
    %352 = vector.multi_reduction <maximumf>, %351, %cst_102 [1] : vector<1x8xf32> to vector<1xf32>
    %353 = vector.shape_cast %352 : vector<1xf32> to vector<1x1xf32>
    %354 = vector.broadcast %353 : vector<1x1xf32> to vector<1x8xf32>
    %355 = arith.subf %351, %354 : vector<1x8xf32>
    %356 = math.exp %355 : vector<1x8xf32>
    %cst_103 = arith.constant dense<0.000000e+00> : vector<1xf32>
    %357 = vector.multi_reduction <add>, %356, %cst_103 [1] : vector<1x8xf32> to vector<1xf32>
    %358 = vector.shape_cast %357 : vector<1xf32> to vector<1x1xf32>
    %359 = tpu.reciprocal %358 {approx = true} : vector<1x1xf32> -> vector<1x1xf32>
    %360 = vector.broadcast %359 : vector<1x1xf32> to vector<1x8xf32>
    %361 = arith.mulf %356, %360 : vector<1x8xf32>
    %362 = arith.truncf %361 : vector<1x8xf32> to vector<1x8xbf16>
    %cst_104 = arith.constant dense<0.000000e+00> : vector<1x8xf32>
    %363 = tpu.matmul %362, %350, %cst_104 {dimension_numbers = #tpu.dot_dimension_numbers<[1], [0], [0], [1], [0, 0, 1, 1], [], []>} : vector<1x8xbf16>, vector<8x8xbf16>, vector<1x8xf32> -> vector<1x8xf32>
    %364 = vector.extract_strided_slice %342 {offsets = [0, 8], sizes = [1, 8], strides = [1, 1]} : vector<1x32xf32> to vector<1x8xf32>
    %365 = arith.truncf %364 : vector<1x8xf32> to vector<1x8xbf16>
    %366 = vector.extract_strided_slice %343 {offsets = [0, 8], sizes = [8, 8], strides = [1, 1]} : vector<8x32xf32> to vector<8x8xf32>
    %367 = arith.truncf %366 : vector<8x8xf32> to vector<8x8xbf16>
    %368 = vector.extract_strided_slice %344 {offsets = [0, 8], sizes = [8, 8], strides = [1, 1]} : vector<8x32xf32> to vector<8x8xf32>
    %369 = arith.truncf %368 : vector<8x8xf32> to vector<8x8xbf16>
    %cst_105 = arith.constant dense<0.000000e+00> : vector<1x8xf32>
    %370 = tpu.matmul %365, %367, %cst_105 {dimension_numbers = #tpu.dot_dimension_numbers<[1], [1], [0], [0], [0, 0, 1, 0], [], []>} : vector<1x8xbf16>, vector<8x8xbf16>, vector<1x8xf32> -> vector<1x8xf32>
    %cst_106 = arith.constant dense<0xFF800000> : vector<1xf32>
    %371 = vector.multi_reduction <maximumf>, %370, %cst_106 [1] : vector<1x8xf32> to vector<1xf32>
    %372 = vector.shape_cast %371 : vector<1xf32> to vector<1x1xf32>
    %373 = vector.broadcast %372 : vector<1x1xf32> to vector<1x8xf32>
    %374 = arith.subf %370, %373 : vector<1x8xf32>
    %375 = math.exp %374 : vector<1x8xf32>
    %cst_107 = arith.constant dense<0.000000e+00> : vector<1xf32>
    %376 = vector.multi_reduction <add>, %375, %cst_107 [1] : vector<1x8xf32> to vector<1xf32>
    %377 = vector.shape_cast %376 : vector<1xf32> to vector<1x1xf32>
    %378 = tpu.reciprocal %377 {approx = true} : vector<1x1xf32> -> vector<1x1xf32>
    %379 = vector.broadcast %378 : vector<1x1xf32> to vector<1x8xf32>
    %380 = arith.mulf %375, %379 : vector<1x8xf32>
    %381 = arith.truncf %380 : vector<1x8xf32> to vector<1x8xbf16>
    %cst_108 = arith.constant dense<0.000000e+00> : vector<1x8xf32>
    %382 = tpu.matmul %381, %369, %cst_108 {dimension_numbers = #tpu.dot_dimension_numbers<[1], [0], [0], [1], [0, 0, 1, 1], [], []>} : vector<1x8xbf16>, vector<8x8xbf16>, vector<1x8xf32> -> vector<1x8xf32>
    %383 = vector.extract_strided_slice %342 {offsets = [0, 16], sizes = [1, 8], strides = [1, 1]} : vector<1x32xf32> to vector<1x8xf32>
    %384 = arith.truncf %383 : vector<1x8xf32> to vector<1x8xbf16>
    %385 = vector.extract_strided_slice %343 {offsets = [0, 16], sizes = [8, 8], strides = [1, 1]} : vector<8x32xf32> to vector<8x8xf32>
    %386 = arith.truncf %385 : vector<8x8xf32> to vector<8x8xbf16>
    %387 = vector.extract_strided_slice %344 {offsets = [0, 16], sizes = [8, 8], strides = [1, 1]} : vector<8x32xf32> to vector<8x8xf32>
    %388 = arith.truncf %387 : vector<8x8xf32> to vector<8x8xbf16>
    %cst_109 = arith.constant dense<0.000000e+00> : vector<1x8xf32>
    %389 = tpu.matmul %384, %386, %cst_109 {dimension_numbers = #tpu.dot_dimension_numbers<[1], [1], [0], [0], [0, 0, 1, 0], [], []>} : vector<1x8xbf16>, vector<8x8xbf16>, vector<1x8xf32> -> vector<1x8xf32>
    %cst_110 = arith.constant dense<0xFF800000> : vector<1xf32>
    %390 = vector.multi_reduction <maximumf>, %389, %cst_110 [1] : vector<1x8xf32> to vector<1xf32>
    %391 = vector.shape_cast %390 : vector<1xf32> to vector<1x1xf32>
    %392 = vector.broadcast %391 : vector<1x1xf32> to vector<1x8xf32>
    %393 = arith.subf %389, %392 : vector<1x8xf32>
    %394 = math.exp %393 : vector<1x8xf32>
    %cst_111 = arith.constant dense<0.000000e+00> : vector<1xf32>
    %395 = vector.multi_reduction <add>, %394, %cst_111 [1] : vector<1x8xf32> to vector<1xf32>
    %396 = vector.shape_cast %395 : vector<1xf32> to vector<1x1xf32>
    %397 = tpu.reciprocal %396 {approx = true} : vector<1x1xf32> -> vector<1x1xf32>
    %398 = vector.broadcast %397 : vector<1x1xf32> to vector<1x8xf32>
    %399 = arith.mulf %394, %398 : vector<1x8xf32>
    %400 = arith.truncf %399 : vector<1x8xf32> to vector<1x8xbf16>
    %cst_112 = arith.constant dense<0.000000e+00> : vector<1x8xf32>
    %401 = tpu.matmul %400, %388, %cst_112 {dimension_numbers = #tpu.dot_dimension_numbers<[1], [0], [0], [1], [0, 0, 1, 1], [], []>} : vector<1x8xbf16>, vector<8x8xbf16>, vector<1x8xf32> -> vector<1x8xf32>
    %402 = vector.extract_strided_slice %342 {offsets = [0, 24], sizes = [1, 8], strides = [1, 1]} : vector<1x32xf32> to vector<1x8xf32>
    %403 = arith.truncf %402 : vector<1x8xf32> to vector<1x8xbf16>
    %404 = vector.extract_strided_slice %343 {offsets = [0, 24], sizes = [8, 8], strides = [1, 1]} : vector<8x32xf32> to vector<8x8xf32>
    %405 = arith.truncf %404 : vector<8x8xf32> to vector<8x8xbf16>
    %406 = vector.extract_strided_slice %344 {offsets = [0, 24], sizes = [8, 8], strides = [1, 1]} : vector<8x32xf32> to vector<8x8xf32>
    %407 = arith.truncf %406 : vector<8x8xf32> to vector<8x8xbf16>
    %cst_113 = arith.constant dense<0.000000e+00> : vector<1x8xf32>
    %408 = tpu.matmul %403, %405, %cst_113 {dimension_numbers = #tpu.dot_dimension_numbers<[1], [1], [0], [0], [0, 0, 1, 0], [], []>} : vector<1x8xbf16>, vector<8x8xbf16>, vector<1x8xf32> -> vector<1x8xf32>
    %cst_114 = arith.constant dense<0xFF800000> : vector<1xf32>
    %409 = vector.multi_reduction <maximumf>, %408, %cst_114 [1] : vector<1x8xf32> to vector<1xf32>
    %410 = vector.shape_cast %409 : vector<1xf32> to vector<1x1xf32>
    %411 = vector.broadcast %410 : vector<1x1xf32> to vector<1x8xf32>
    %412 = arith.subf %408, %411 : vector<1x8xf32>
    %413 = math.exp %412 : vector<1x8xf32>
    %cst_115 = arith.constant dense<0.000000e+00> : vector<1xf32>
    %414 = vector.multi_reduction <add>, %413, %cst_115 [1] : vector<1x8xf32> to vector<1xf32>
    %415 = vector.shape_cast %414 : vector<1xf32> to vector<1x1xf32>
    %416 = tpu.reciprocal %415 {approx = true} : vector<1x1xf32> -> vector<1x1xf32>
    %417 = vector.broadcast %416 : vector<1x1xf32> to vector<1x8xf32>
    %418 = arith.mulf %413, %417 : vector<1x8xf32>
    %419 = arith.truncf %418 : vector<1x8xf32> to vector<1x8xbf16>
    %cst_116 = arith.constant dense<0.000000e+00> : vector<1x8xf32>
    %420 = tpu.matmul %419, %407, %cst_116 {dimension_numbers = #tpu.dot_dimension_numbers<[1], [0], [0], [1], [0, 0, 1, 1], [], []>} : vector<1x8xbf16>, vector<8x8xbf16>, vector<1x8xf32> -> vector<1x8xf32>
    %421 = tpu.concatenate %363, %382, %401, %420 in 1 : vector<1x8xf32>, vector<1x8xf32>, vector<1x8xf32>, vector<1x8xf32> -> vector<1x32xf32>
    %422 = tpu.concatenate %341, %421 in 0 : vector<1x32xf32>, vector<1x32xf32> -> vector<2x32xf32>
    %423 = arith.truncf %422 : vector<2x32xf32> to vector<2x32xbf16>
    %c1_117 = arith.constant 1 : index
    %c0_118 = arith.constant 0 : index
    %c0_119 = arith.constant 0 : index
    %424 = vector.load %arg3[%c1_117, %c0_118, %c0_119] : memref<2x32x32xbf16, #tpu.memory_space<vmem>>, vector<1x32x32xbf16>
    %425 = vector.shape_cast %424 : vector<1x32x32xbf16> to vector<32x32xbf16>
    %cst_120 = arith.constant dense<0.000000e+00> : vector<2x32xf32>
    %426 = tpu.matmul %423, %425, %cst_120 {dimension_numbers = #tpu.dot_dimension_numbers<[1], [0], [0], [1], [0, 0, 1, 1], [], []>} : vector<2x32xbf16>, vector<32x32xbf16>, vector<2x32xf32> -> vector<2x32xf32>
    %c1_121 = arith.constant 1 : index
    %c0_122 = arith.constant 0 : index
    %c0_123 = arith.constant 0 : index
    %427 = vector.load %arg7[%c1_121, %c0_122, %c0_123] : memref<2x6x32xf32, #tpu.memory_space<vmem>>, vector<1x1x32xf32>
    %428 = vector.shape_cast %427 : vector<1x1x32xf32> to vector<1x32xf32>
    %429 = vector.broadcast %428 : vector<1x32xf32> to vector<2x32xf32>
    %430 = arith.addf %426, %429 : vector<2x32xf32>
    %431 = arith.addf %261, %430 : vector<2x32xf32>
    %c1_124 = arith.constant 1 : index
    %c1_125 = arith.constant 1 : index
    %c0_126 = arith.constant 0 : index
    %432 = vector.load %arg7[%c1_124, %c1_125, %c0_126] : memref<2x6x32xf32, #tpu.memory_space<vmem>>, vector<1x1x32xf32>
    %433 = vector.shape_cast %432 : vector<1x1x32xf32> to vector<1x32xf32>
    %c1_127 = arith.constant 1 : index
    %c2_128 = arith.constant 2 : index
    %c0_129 = arith.constant 0 : index
    %434 = vector.load %arg7[%c1_127, %c2_128, %c0_129] : memref<2x6x32xf32, #tpu.memory_space<vmem>>, vector<1x1x32xf32>
    %435 = vector.shape_cast %434 : vector<1x1x32xf32> to vector<1x32xf32>
    %cst_130 = arith.constant dense<0.000000e+00> : vector<2xf32>
    %436 = vector.multi_reduction <add>, %431, %cst_130 [1] : vector<2x32xf32> to vector<2xf32>
    %437 = vector.shape_cast %436 : vector<2xf32> to vector<2x1xf32>
    %cst_131 = arith.constant 3.200000e+01 : f32
    %438 = vector.broadcast %cst_131 : f32 to vector<2x1xf32>
    %439 = arith.divf %437, %438 : vector<2x1xf32>
    %440 = vector.broadcast %439 : vector<2x1xf32> to vector<2x32xf32>
    %441 = arith.subf %431, %440 : vector<2x32xf32>
    %442 = arith.mulf %441, %441 : vector<2x32xf32>
    %cst_132 = arith.constant dense<0.000000e+00> : vector<2xf32>
    %443 = vector.multi_reduction <add>, %442, %cst_132 [1] : vector<2x32xf32> to vector<2xf32>
    %444 = vector.shape_cast %443 : vector<2xf32> to vector<2x1xf32>
    %cst_133 = arith.constant 3.200000e+01 : f32
    %445 = vector.broadcast %cst_133 : f32 to vector<2x1xf32>
    %446 = arith.divf %444, %445 : vector<2x1xf32>
    %447 = vector.broadcast %439 : vector<2x1xf32> to vector<2x32xf32>
    %448 = arith.subf %431, %447 : vector<2x32xf32>
    %cst_134 = arith.constant 9.99999974E-6 : f32
    %449 = vector.broadcast %cst_134 : f32 to vector<2x1xf32>
    %450 = arith.addf %446, %449 : vector<2x1xf32>
    %451 = math.rsqrt %450 : vector<2x1xf32>
    %452 = vector.broadcast %451 : vector<2x1xf32> to vector<2x32xf32>
    %453 = arith.mulf %448, %452 : vector<2x32xf32>
    %454 = vector.broadcast %433 : vector<1x32xf32> to vector<2x32xf32>
    %455 = arith.mulf %453, %454 : vector<2x32xf32>
    %456 = vector.broadcast %435 : vector<1x32xf32> to vector<2x32xf32>
    %457 = arith.addf %455, %456 : vector<2x32xf32>
    %c1_135 = arith.constant 1 : index
    %c0_136 = arith.constant 0 : index
    %c0_137 = arith.constant 0 : index
    %458 = vector.load %arg6[%c1_135, %c0_136, %c0_137] : memref<2x1x2144xf32, #tpu.memory_space<vmem>>, vector<1x1x2048xf32>
    %459 = vector.shape_cast %458 : vector<1x1x2048xf32> to vector<1x2048xf32>
    %460 = arith.truncf %457 : vector<2x32xf32> to vector<2x32xbf16>
    %c1_138 = arith.constant 1 : index
    %c0_139 = arith.constant 0 : index
    %c0_140 = arith.constant 0 : index
    %461 = vector.load %arg4[%c1_138, %c0_139, %c0_140] : memref<2x32x2048xbf16, #tpu.memory_space<vmem>>, vector<1x32x2048xbf16>
    %462 = vector.shape_cast %461 : vector<1x32x2048xbf16> to vector<32x2048xbf16>
    %cst_141 = arith.constant dense<0.000000e+00> : vector<2x2048xf32>
    %463 = tpu.matmul %460, %462, %cst_141 {dimension_numbers = #tpu.dot_dimension_numbers<[1], [0], [0], [1], [0, 0, 1, 1], [], []>} : vector<2x32xbf16>, vector<32x2048xbf16>, vector<2x2048xf32> -> vector<2x2048xf32>
    %464 = vector.broadcast %459 : vector<1x2048xf32> to vector<2x2048xf32>
    %465 = arith.addf %463, %464 : vector<2x2048xf32>
    %cst_142 = arith.constant 0.000000e+00 : f32
    %466 = vector.broadcast %cst_142 : f32 to vector<2x2048xf32>
    %467 = arith.maximumf %465, %466 : vector<2x2048xf32>
    %468 = arith.truncf %467 : vector<2x2048xf32> to vector<2x2048xbf16>
    %c1_143 = arith.constant 1 : index
    %c0_144 = arith.constant 0 : index
    %c0_145 = arith.constant 0 : index
    %469 = vector.load %arg5[%c1_143, %c0_144, %c0_145] : memref<2x2048x32xbf16, #tpu.memory_space<vmem>>, vector<1x2048x32xbf16>
    %470 = vector.shape_cast %469 : vector<1x2048x32xbf16> to vector<2048x32xbf16>
    %cst_146 = arith.constant dense<0.000000e+00> : vector<2x32xf32>
    %471 = tpu.matmul %468, %470, %cst_146 {dimension_numbers = #tpu.dot_dimension_numbers<[1], [0], [0], [1], [0, 0, 1, 1], [], []>} : vector<2x2048xbf16>, vector<2048x32xbf16>, vector<2x32xf32> -> vector<2x32xf32>
    %c1_147 = arith.constant 1 : index
    %c3_148 = arith.constant 3 : index
    %c0_149 = arith.constant 0 : index
    %472 = vector.load %arg7[%c1_147, %c3_148, %c0_149] : memref<2x6x32xf32, #tpu.memory_space<vmem>>, vector<1x1x32xf32>
    %473 = vector.shape_cast %472 : vector<1x1x32xf32> to vector<1x32xf32>
    %474 = vector.broadcast %473 : vector<1x32xf32> to vector<2x32xf32>
    %475 = arith.addf %471, %474 : vector<2x32xf32>
    %476 = arith.addf %457, %475 : vector<2x32xf32>
    %c1_150 = arith.constant 1 : index
    %c4_151 = arith.constant 4 : index
    %c0_152 = arith.constant 0 : index
    %477 = vector.load %arg7[%c1_150, %c4_151, %c0_152] : memref<2x6x32xf32, #tpu.memory_space<vmem>>, vector<1x1x32xf32>
    %478 = vector.shape_cast %477 : vector<1x1x32xf32> to vector<1x32xf32>
    %c1_153 = arith.constant 1 : index
    %c5_154 = arith.constant 5 : index
    %c0_155 = arith.constant 0 : index
    %479 = vector.load %arg7[%c1_153, %c5_154, %c0_155] : memref<2x6x32xf32, #tpu.memory_space<vmem>>, vector<1x1x32xf32>
    %480 = vector.shape_cast %479 : vector<1x1x32xf32> to vector<1x32xf32>
    %cst_156 = arith.constant dense<0.000000e+00> : vector<2xf32>
    %481 = vector.multi_reduction <add>, %476, %cst_156 [1] : vector<2x32xf32> to vector<2xf32>
    %482 = vector.shape_cast %481 : vector<2xf32> to vector<2x1xf32>
    %cst_157 = arith.constant 3.200000e+01 : f32
    %483 = vector.broadcast %cst_157 : f32 to vector<2x1xf32>
    %484 = arith.divf %482, %483 : vector<2x1xf32>
    %485 = vector.broadcast %484 : vector<2x1xf32> to vector<2x32xf32>
    %486 = arith.subf %476, %485 : vector<2x32xf32>
    %487 = arith.mulf %486, %486 : vector<2x32xf32>
    %cst_158 = arith.constant dense<0.000000e+00> : vector<2xf32>
    %488 = vector.multi_reduction <add>, %487, %cst_158 [1] : vector<2x32xf32> to vector<2xf32>
    %489 = vector.shape_cast %488 : vector<2xf32> to vector<2x1xf32>
    %cst_159 = arith.constant 3.200000e+01 : f32
    %490 = vector.broadcast %cst_159 : f32 to vector<2x1xf32>
    %491 = arith.divf %489, %490 : vector<2x1xf32>
    %492 = vector.broadcast %484 : vector<2x1xf32> to vector<2x32xf32>
    %493 = arith.subf %476, %492 : vector<2x32xf32>
    %cst_160 = arith.constant 9.99999974E-6 : f32
    %494 = vector.broadcast %cst_160 : f32 to vector<2x1xf32>
    %495 = arith.addf %491, %494 : vector<2x1xf32>
    %496 = math.rsqrt %495 : vector<2x1xf32>
    %497 = vector.broadcast %496 : vector<2x1xf32> to vector<2x32xf32>
    %498 = arith.mulf %493, %497 : vector<2x32xf32>
    %499 = vector.broadcast %478 : vector<1x32xf32> to vector<2x32xf32>
    %500 = arith.mulf %498, %499 : vector<2x32xf32>
    %501 = vector.broadcast %480 : vector<1x32xf32> to vector<2x32xf32>
    %502 = arith.addf %500, %501 : vector<2x32xf32>
    %503 = vector.extract_strided_slice %502 {offsets = [0, 0], sizes = [1, 32], strides = [1, 1]} : vector<2x32xf32> to vector<1x32xf32>
    %c0_161 = arith.constant 0 : index
    %c0_162 = arith.constant 0 : index
    %c0_163 = arith.constant 0 : index
    %504 = vector.load %arg8[%c0_161, %c0_162, %c0_163] : memref<2x1x32xf32, #tpu.memory_space<vmem>>, vector<1x1x32xf32>
    %505 = vector.shape_cast %504 : vector<1x1x32xf32> to vector<1x32xf32>
    %506 = vector.shape_cast %503 : vector<1x32xf32> to vector<1x1x32xf32>
    tpu.vector_store %arg8[%c0_161, %c0_162, %c0_163], %506 {strides = array<i32>} : memref<2x1x32xf32, #tpu.memory_space<vmem>>, vector<1x1x32xf32>,
    %507 = vector.extract_strided_slice %502 {offsets = [1, 0], sizes = [1, 32], strides = [1, 1]} : vector<2x32xf32> to vector<1x32xf32>
    %c1_164 = arith.constant 1 : index
    %c0_165 = arith.constant 0 : index
    %c0_166 = arith.constant 0 : index
    %508 = vector.load %arg8[%c1_164, %c0_165, %c0_166] : memref<2x1x32xf32, #tpu.memory_space<vmem>>, vector<1x1x32xf32>
    %509 = vector.shape_cast %508 : vector<1x1x32xf32> to vector<1x32xf32>
    %510 = vector.shape_cast %507 : vector<1x32xf32> to vector<1x1x32xf32>
    tpu.vector_store %arg8[%c1_164, %c0_165, %c0_166], %510 {strides = array<i32>} : memref<2x1x32xf32, #tpu.memory_space<vmem>>, vector<1x1x32xf32>,
    return
  }
  func.func @transform_0(%arg0: i32) -> (i32, i32, i32) {
    %c0_i32 = arith.constant 0 : i32
    %c0_i32_0 = arith.constant 0 : i32
    %c0_i32_1 = arith.constant 0 : i32
    return %arg0, %c0_i32, %c0_i32_0 : i32, i32, i32
  }
  func.func @transform_1(%arg0: i32) -> (i32, i32, i32) {
    %c0_i32 = arith.constant 0 : i32
    %c0_i32_0 = arith.constant 0 : i32
    %c0_i32_1 = arith.constant 0 : i32
    %c0_i32_2 = arith.constant 0 : i32
    return %c0_i32, %c0_i32_0, %c0_i32_1 : i32, i32, i32
  }
  func.func @transform_2(%arg0: i32) -> (i32, i32, i32) {
    %c0_i32 = arith.constant 0 : i32
    %c0_i32_0 = arith.constant 0 : i32
    %c0_i32_1 = arith.constant 0 : i32
    %c0_i32_2 = arith.constant 0 : i32
    return %c0_i32, %c0_i32_0, %c0_i32_1 : i32, i32, i32
  }
  func.func @transform_3(%arg0: i32) -> (i32, i32, i32) {
    %c0_i32 = arith.constant 0 : i32
    %c0_i32_0 = arith.constant 0 : i32
    %c0_i32_1 = arith.constant 0 : i32
    %c0_i32_2 = arith.constant 0 : i32
    return %c0_i32, %c0_i32_0, %c0_i32_1 : i32, i32, i32
  }
  func.func @transform_4(%arg0: i32) -> (i32, i32, i32) {
    %c0_i32 = arith.constant 0 : i32
    %c0_i32_0 = arith.constant 0 : i32
    %c0_i32_1 = arith.constant 0 : i32
    %c0_i32_2 = arith.constant 0 : i32
    return %c0_i32, %c0_i32_0, %c0_i32_1 : i32, i32, i32
  }
  func.func @transform_5(%arg0: i32) -> (i32, i32, i32) {
    %c0_i32 = arith.constant 0 : i32
    %c0_i32_0 = arith.constant 0 : i32
    %c0_i32_1 = arith.constant 0 : i32
    %c0_i32_2 = arith.constant 0 : i32
    return %c0_i32, %c0_i32_0, %c0_i32_1 : i32, i32, i32
  }
  func.func @transform_6(%arg0: i32) -> (i32, i32, i32) {
    %c0_i32 = arith.constant 0 : i32
    %c0_i32_0 = arith.constant 0 : i32
    %c0_i32_1 = arith.constant 0 : i32
    %c0_i32_2 = arith.constant 0 : i32
    return %c0_i32, %c0_i32_0, %c0_i32_1 : i32, i32, i32
  }
  func.func @transform_7(%arg0: i32) -> (i32, i32, i32) {
    %c0_i32 = arith.constant 0 : i32
    %c0_i32_0 = arith.constant 0 : i32
    %c0_i32_1 = arith.constant 0 : i32
    return %arg0, %c0_i32, %c0_i32_0 : i32, i32, i32
  }
}

</mosaic_0001>

<bundles_post_ra>
// kernel: transformer_model.1
= control target key start
LH: loop header
LB: loop body
LE: loop exit
PB: predicated region body
PF: predicated region fallthrough
CT: control target
= control target key end

     0   :  { %v8085_v1 = vmov 0.0   ;;  %vm8086_vm0 = vmmov 0   ;;  %vm54_vm1 = vcmask 261120   ;;  %s9844_s0 = inlined_call_operand.vmem [shape: f32[2,8,32], index: 0, kind: input, shape index: {}]   ;;  %s9845_s1 = inlined_call_operand.vmem [shape: bf16[2,32,96], index: 1, kind: input, shape index: {}]   ;;  %s9846_s2 = inlined_call_operand.vmem [shape: bf16[2,32,32], index: 2, kind: input, shape index: {}]   ;;  %s9847_s3 = inlined_call_operand.vmem [shape: bf16[2,32,2048], index: 3, kind: input, shape index: {}]   ;;  %s9848_s4 = inlined_call_operand.vmem [shape: bf16[2,2048,32], index: 4, kind: input, shape index: {}]   ;;  %s9849_s5 = inlined_call_operand.vmem [shape: f32[2,1,2144], index: 5, kind: input, shape index: {}]   ;;  %s9850_s6 = inlined_call_operand.vmem [shape: f32[2,6,32], index: 6, kind: input, shape index: {}]   ;;  %s9851_s7 = inlined_call_operand.hbm [shape: f32[2,1,32], index: 7, kind: output, shape index: {}]  }
   0x1   :  { %v7721_v0 = vld [vmem:[%s9845_s1 + $0x8] sm:$0xff]   ;;  %7453 = vmatprep.subr.bf16.mxu0 %v8085_v1  ;;  %7461 = vmatprep.subr.bf16.mxu1 %v8085_v1  ;;  %v7722_v2 = vld [vmem:[%s9845_s1] sm:$0xff]  }
   0x2   :  { %7454 = vmatpush3.bf16.msra.mxu0 %v7721_v0  ;;  %7457 = vmatprep.mubr.msk.bf16.mxu0 %vm8086_vm0, %v8085_v1  ;;  %v28_v3 = vld [vmem:[%s9844_s0] sm:$0xff]  ;;  %v29_v4 = vld [vmem:[%s9844_s0 + $0x8] sm:$0xff] }
   0x3   :  { %7455 = vmatprep.subr.bf16.mxu0 %v8085_v1  ;;  %7463 = vmatprep.mubr.msk.bf16.mxu1 %vm8086_vm0, %v8085_v1  ;;  %v31_v5 = vpack.c.bf16 %v29_v4, %v28_v3 }
   0x6   :  { %7456 = vmatpush3.bf16.msra.mxu0 %v7722_v2 }
   0x7   :  { %7467 = vmatprep.subr.bf16.mxu0 %v8085_v1 }
   0x9   :  { %7458 = vmatmul.mubr.msk.bf16.vlgmr.msra.gmra.mxu0 %vm54_vm1, %v31_v5 }
   0xa   :  { %7469 = vmatprep.mubr.msk.bf16.mxu0 %vm8086_vm0, %v8085_v1 }
   0xb   :  { %12 = vsyncpa [#allocation3], 0  ;;  %v6326_v6 = vld [vmem:[%s9849_s5 + $0x10] ss:$0 sm:$0xff]  ;;  %s8087_s11 = smov 120   ;;  %s8088_s12 = smov 96  }
   0xc   :  { %s8089_s13 = smov 80   ;;  %s8090_s14 = smov 88   ;;  %vm103_vm2 = vcmask 64512   ;;  %vm167_vm3 = vcmask 1043456   ;;  %vm554_vm4 = vcmask 130048   ;;  %vm556_vm5 = vcmask 195584  }
   0xd   :  { %s8091_s15 = smov 72   ;;  %s8092_s16 = smov 112   ;;  %vm3269_vm6 = vcmask 1040384   ;;  %vm3325_vm7 = vcmask 57344   ;;  %vm4264_vm8 = vcmask 254976   ;;  %vm6305_vm9 = vcmask 253952  }
   0xe   :  { %s8093_s17 = smov 104   ;;  %s8094_s18 = smov 56   ;;  %vm6308_vm10 = vcmask 254977  }
   0xf   :  { %s8095_s19 = smov 64   ;;  %s8096_s20 = smov 48  }
  0x10   :  { %s8097_s21 = smov 40   ;;  %s8098_s24 = smov 8  }
  0x11   :  { %s8099_s27 = smov 16   ;;  %s8100_s28 = smov 24  }
  0x12   :  { %s8102_s9 = smov [#allocation2]  }
  0xc9   :  { %v92_v7 = vpop.f32.mrf.mxu0 }
  0xca   :  { %v93_v8 = vadd.f32 %v6326_v6, %v92_v7 }
  0xcb   :  { %v7459_v9 = vpop.f32.mrf.mxu0 }
  0xcc   :  { %v8170_v10 = vpack.c.bf16 %v93_v8, %v93_v8 }
  0xcd   :  { %v95_v11 = vpop.f32.mrf.mxu0 }
  0xce   :  { %211 = vrot.lane.b32.xlu1 %v8170_v10, %s8087_s11  ;;  %101 = vrot.lane.b32.xlu0 %v8170_v10, %s8088_s12  ;;  %v96_v13 = vadd.f32 %v6326_v6, %v95_v11 }
  0xcf   :  { %v7460_v12 = vpop.f32.mrf.mxu0 }
  0xd0   :  { %v8184_v14 = vpack.c.bf16 %v96_v13, %v96_v13 }
  0xd2   :  { %323 = vrot.lane.b32.xlu1 %v8170_v10, %s8089_s13  ;;  %213 = vrot.lane.b32.xlu0 %v8170_v10, %s8090_s14 }
  0xd6   :  { %433 = vrot.lane.b32.xlu1 %v8170_v10, %s8091_s15  ;;  %321 = vrot.lane.b32.xlu0 %v8170_v10, %s8092_s16 }
  0xda   :  { %431 = vrot.lane.b32.xlu0 %v8170_v10, %s8093_s17  ;;  %560 = vrot.lane.b32.xlu1 %v8184_v14, %s8088_s12 }
  0xde   :  { %670 = vrot.lane.b32.xlu0 %v8184_v14, %s8090_s14  ;;  %668 = vrot.lane.b32.xlu1 %v8184_v14, %s8087_s11 }
  0xe2   :  { %780 = vrot.lane.b32.xlu0 %v8184_v14, %s8089_s13  ;;  %778 = vrot.lane.b32.xlu1 %v8184_v14, %s8092_s16 }
  0xe6   :  { %890 = vrot.lane.b32.xlu0 %v8184_v14, %s8091_s15  ;;  %888 = vrot.lane.b32.xlu1 %v8184_v14, %s8093_s17 }
 0x140   :  { %v102_v15 = vpop.permute.xlu0 %101  ;;  %v212_v18 = vpop.permute.xlu1 %211 }
 0x141   :  { %v108_v16 = vsel %vm103_vm2, %v102_v15, 0 }
 0x142   :  { %7462 = vmatpush3.bf16.xpose.msra.mxu1 %v108_v16 }
 0x143   :  { %7473 = vmatprep.subr.bf16.mxu1 %v8085_v1 }
 0x144   :  { %v214_v17 = vpop.permute.xlu0 %213  ;;  %v324_v20 = vpop.permute.xlu1 %323 }
 0x145   :  { %v219_v19 = vsel %vm103_vm2, %v214_v17, 0  ;;  %v329_v21 = vsel %vm103_vm2, %v324_v20, 0 }
 0x148   :  { %v434_v22 = vpop.permute.xlu1 %433  ;;  %v322_v23 = vpop.permute.xlu0 %321 }
 0x149   :  { %7464 = vmatmul.mubr.msk.bf16.vlgmr.msra.gmra.mxu1 %vm103_vm2, %v8170_v10  ;;  %v439_v24 = vsel %vm103_vm2, %v434_v22, 0 }
 0x14a   :  { %7474 = vmatpush3.bf16.xpose.msra.mxu1 %v219_v19  ;;  %7475 = vmatprep.mubr.msk.bf16.mxu1 %vm8086_vm0, %v8085_v1 }
 0x14b   :  { %7485 = vmatprep.subr.bf16.mxu1 %v8085_v1 }
 0x14c   :  { %v561_v25 = vpop.permute.xlu1 %560  ;;  %v432_v26 = vpop.permute.xlu0 %431 }
 0x14d   :  { %v566_v27 = vsel %vm103_vm2, %v561_v25, 0 }
 0x150   :  { %v671_v28 = vpop.permute.xlu0 %670  ;;  %v669_v31 = vpop.permute.xlu1 %668 }
 0x151   :  { %7476 = vmatmul.mubr.msk.bf16.vlgmr.msra.gmra.mxu1 %vm103_vm2, %v212_v18  ;;  %v676_v29 = vsel %vm103_vm2, %v671_v28, 0 }
 0x152   :  { %7486 = vmatpush3.bf16.xpose.msra.mxu1 %v329_v21  ;;  %7487 = vmatprep.mubr.msk.bf16.mxu1 %vm8086_vm0, %v8085_v1 }
 0x153   :  { %7497 = vmatprep.subr.bf16.mxu1 %v8085_v1 }
 0x154   :  { %v781_v30 = vpop.permute.xlu0 %780  ;;  %v779_v34 = vpop.permute.xlu1 %778 }
 0x155   :  { %v786_v32 = vsel %vm103_vm2, %v781_v30, 0 }
 0x158   :  { %v891_v33 = vpop.permute.xlu0 %890  ;;  %v889_v36 = vpop.permute.xlu1 %888 }
 0x159   :  { %7488 = vmatmul.mubr.msk.bf16.vlgmr.msra.gmra.mxu1 %vm103_vm2, %v322_v23  ;;  %v896_v35 = vsel %vm103_vm2, %v891_v33, 0 }
 0x15a   :  { %7498 = vmatpush3.bf16.xpose.msra.mxu1 %v439_v24  ;;  %7499 = vmatprep.mubr.msk.bf16.mxu1 %vm8086_vm0, %v8085_v1 }
 0x15b   :  { %7509 = vmatprep.subr.bf16.mxu1 %v8085_v1 }
 0x161   :  { %7500 = vmatmul.mubr.msk.bf16.vlgmr.msra.gmra.mxu1 %vm103_vm2, %v432_v26 }
 0x162   :  { %7510 = vmatpush3.bf16.xpose.msra.mxu1 %v566_v27  ;;  %7511 = vmatprep.mubr.msk.bf16.mxu1 %vm8086_vm0, %v8085_v1 }
 0x163   :  { %7521 = vmatprep.subr.bf16.mxu1 %v8085_v1 }
 0x169   :  { %7512 = vmatmul.mubr.msk.bf16.vlgmr.msra.gmra.mxu1 %vm103_vm2, %v8184_v14 }
 0x16a   :  { %7522 = vmatpush3.bf16.xpose.msra.mxu1 %v676_v29  ;;  %7523 = vmatprep.mubr.msk.bf16.mxu1 %vm8086_vm0, %v8085_v1 }
 0x16b   :  { %7533 = vmatprep.subr.bf16.mxu1 %v8085_v1 }
 0x171   :  { %7524 = vmatmul.mubr.msk.bf16.vlgmr.msra.gmra.mxu1 %vm103_vm2, %v669_v31 }
 0x172   :  { %7534 = vmatpush3.bf16.xpose.msra.mxu1 %v786_v32  ;;  %7535 = vmatprep.mubr.msk.bf16.mxu1 %vm8086_vm0, %v8085_v1 }
 0x173   :  { %7545 = vmatprep.subr.bf16.mxu1 %v8085_v1 }
 0x179   :  { %7536 = vmatmul.mubr.msk.bf16.vlgmr.msra.gmra.mxu1 %vm103_vm2, %v779_v34 }
 0x17a   :  { %7546 = vmatpush3.bf16.xpose.msra.mxu1 %v896_v35  ;;  %7547 = vmatprep.mubr.msk.bf16.mxu1 %vm8086_vm0, %v8085_v1 }
 0x17b   :  { %7557 = vmatprep.subr.bf16.mxu1 %v8085_v1 }
 0x181   :  { %7548 = vmatmul.mubr.msk.bf16.vlgmr.msra.gmra.mxu1 %vm103_vm2, %v889_v36 }
 0x182   :  { %7561 = vmatprep.mubr.msk.bf16.mxu1 %vm8086_vm0, %v8085_v1 }
 0x209   :  { %v144_v37 = vpop.f32.mrf.mxu1 }
 0x20a   :  { %v150_v38 = vsel %vm103_vm2, %v144_v37, -inf }
 0x20b   :  { %v7465_v39 = vpop.f32.mrf.mxu1  ;;  %151 = vmax.xlane.f32.xlu0 %v150_v38 }
 0x20d   :  { %v147_v40 = vpop.f32.mrf.mxu1 }
 0x20f   :  { %v7466_v41 = vpop.f32.mrf.mxu1 }
 0x211   :  { %v255_v42 = vpop.f32.mrf.mxu1 }
 0x212   :  { %v261_v43 = vsel %vm103_vm2, %v255_v42, -inf }
 0x213   :  { %v7477_v44 = vpop.f32.mrf.mxu1  ;;  %262 = vmax.xlane.f32.xlu1 %v261_v43 }
 0x215   :  { %v258_v45 = vpop.f32.mrf.mxu1 }
 0x217   :  { %v7478_v46 = vpop.f32.mrf.mxu1 }
 0x219   :  { %v365_v47 = vpop.f32.mrf.mxu1 }
 0x21a   :  { %v371_v48 = vsel %vm103_vm2, %v365_v47, -inf }
 0x21b   :  { %v7489_v49 = vpop.f32.mrf.mxu1  ;;  %372 = vmax.xlane.f32.xlu0 %v371_v48 }
 0x21d   :  { %v368_v50 = vpop.f32.mrf.mxu1 }
 0x21f   :  { %v7490_v51 = vpop.f32.mrf.mxu1 }
 0x221   :  { %v8247_v52 = vpop.f32.mrf.mxu1 }
 0x222   :  { %v481_v53 = vsel %vm103_vm2, %v8247_v52, -inf }
 0x223   :  { %v7501_v54 = vpop.f32.mrf.mxu1  ;;  %482 = vmax.xlane.f32.xlu0 %v481_v53 }
 0x225   :  { %v478_v55 = vpop.f32.mrf.mxu1 }
 0x227   :  { %v7502_v56 = vpop.f32.mrf.mxu1 }
 0x229   :  { %v8251_v57 = vpop.f32.mrf.mxu1 }
 0x22a   :  { %v608_v58 = vsel %vm103_vm2, %v8251_v57, -inf }
 0x22b   :  { %609 = vmax.xlane.f32.xlu1 %v608_v58  ;;  %v7513_v59 = vpop.f32.mrf.mxu1 }
 0x22d   :  { %v605_v60 = vpop.f32.mrf.mxu1 }
 0x22f   :  { %v7514_v61 = vpop.f32.mrf.mxu1 }
 0x231   :  { %v8255_v62 = vpop.f32.mrf.mxu1 }
 0x232   :  { %v718_v63 = vsel %vm103_vm2, %v8255_v62, -inf }
 0x233   :  { %719 = vmax.xlane.f32.xlu0 %v718_v63  ;;  %v7525_v0 = vpop.f32.mrf.mxu1 }
 0x235   :  { %v715_v2 = vpop.f32.mrf.mxu1 }
 0x237   :  { %v7526_v3 = vpop.f32.mrf.mxu1 }
 0x239   :  { %v822_v4 = vpop.f32.mrf.mxu1 }
 0x23a   :  { %v828_v5 = vsel %vm103_vm2, %v822_v4, -inf }
 0x23b   :  { %829 = vmax.xlane.f32.xlu1 %v828_v5  ;;  %v7537_v6 = vpop.f32.mrf.mxu1 }
 0x23d   :  { %v825_v7 = vpop.f32.mrf.mxu1 }
 0x23f   :  { %v7538_v8 = vpop.f32.mrf.mxu1 }
 0x241   :  { %v8260_v9 = vpop.f32.mrf.mxu1 }
 0x242   :  { %v938_v15 = vsel %vm103_vm2, %v8260_v9, -inf }
 0x243   :  { %v7549_v11 = vpop.f32.mrf.mxu1 }
 0x245   :  { %v935_v12 = vpop.f32.mrf.mxu1 }
 0x247   :  { %v7550_v13 = vpop.f32.mrf.mxu1 }
 0x249   :  { %273 = vrot.lane.b32.xlu0 %v8170_v10, %s8094_s18 }
 0x24c   :  { %162 = vrot.lane.b32.xlu1 %v8170_v10, %s8095_s19 }
 0x268   :  { %939 = vmax.xlane.f32.xlu0 %v938_v15 }
 0x294   :  { %v152_v16 = vpop.xlane.xlu0 %151 }
 0x295   :  { %v153_v17 = vsub.f32 %v144_v37, %v152_v16 }
 0x297   :  { %v154_v18 = vmul.f32 1.442695, %v153_v17 }
 0x299   :  { %7985 = vpow2.f32 %v154_v18 }
 0x29c   :  { %v263_v19 = vpop.xlane.xlu1 %262 }
 0x29d   :  { %v264_v20 = vsub.f32 %v255_v42, %v263_v19 }
 0x29f   :  { %v265_v21 = vmul.f32 1.442695, %v264_v20 }
 0x2a1   :  { %7987 = vpow2.f32 %v265_v21 }
 0x2a4   :  { %v373_v22 = vpop.xlane.xlu0 %372 }
 0x2a5   :  { %v374_v23 = vsub.f32 %v365_v47, %v373_v22 }
 0x2a6   :  { %v8268_v24 = vpop.eup %7985 }
 0x2a7   :  { %v375_v25 = vmul.f32 1.442695, %v374_v23  ;;  %v156_v26 = vsel %vm103_vm2, %v8268_v24, 0.0 }
 0x2a8   :  { %157 = vadd.xlane.f32.xlu1 %v156_v26 }
 0x2a9   :  { %7989 = vpow2.f32 %v375_v25 }
 0x2ac   :  { %v483_v34 = vpop.xlane.xlu0 %482 }
 0x2ad   :  { %v484_v36 = vsub.f32 %v8247_v52, %v483_v34 }
 0x2ae   :  { %v8272_v27 = vpop.eup %7987 }
 0x2af   :  { %v267_v28 = vsel %vm103_vm2, %v8272_v27, 0.0  ;;  %v485_v37 = vmul.f32 1.442695, %v484_v36 }
 0x2b0   :  { %268 = vadd.xlane.f32.xlu0 %v267_v28 }
 0x2b1   :  { %7991 = vpow2.f32 %v485_v37 }
 0x2b4   :  { %v610_v31 = vpop.xlane.xlu1 %609 }
 0x2b5   :  { %v611_v38 = vsub.f32 %v8251_v57, %v610_v31 }
 0x2b6   :  { %v8276_v29 = vpop.eup %7989 }
 0x2b7   :  { %v377_v30 = vsel %vm103_vm2, %v8276_v29, 0.0  ;;  %v612_v41 = vmul.f32 1.442695, %v611_v38 }
 0x2b8   :  { %378 = vadd.xlane.f32.xlu1 %v377_v30 }
 0x2b9   :  { %7993 = vpow2.f32 %v612_v41 }
 0x2bc   :  { %v720_v39 = vpop.xlane.xlu0 %719 }
 0x2bd   :  { %v721_v40 = vsub.f32 %v8255_v62, %v720_v39 }
 0x2bf   :  { %v722_v43 = vmul.f32 1.442695, %v721_v40 }
 0x2c0   :  { %v274_v52 = vpop.permute.xlu0 %273 }
 0x2c1   :  { %7995 = vpow2.f32 %v722_v43  ;;  %v279_v0 = vsel %vm167_vm3, %v274_v52, 0 }
 0x2c4   :  { %v830_v32 = vpop.xlane.xlu1 %829 }
 0x2c5   :  { %v831_v42 = vsub.f32 %v822_v4, %v830_v32 }
 0x2c6   :  { %383 = vrot.lane.b32.xlu0 %v8170_v10, %s8096_s20 }
 0x2c7   :  { %v832_v44 = vmul.f32 1.442695, %v831_v42 }
 0x2c8   :  { %v163_v33 = vpop.permute.xlu1 %162 }
 0x2c9   :  { %v169_v35 = vsel %vm167_vm3, %v163_v33, 0  ;;  %493 = vrot.lane.b32.xlu1 %v8170_v10, %s8097_s21  ;;  %7997 = vpow2.f32 %v832_v44  ;;  %v7992_v10 = vpop.eup %7991 }
 0x2ca   :  { %7468 = vmatpush3.bf16.msra.mxu0 %v169_v35  ;;  %v487_v45 = vsel %vm103_vm2, %v7992_v10, 0.0  ;;  %v8290_v46 = vpop.eup %7993 }
 0x2cb   :  { %7479 = vmatprep.subr.bf16.mxu0 %v8085_v1  ;;  %v614_v48 = vsel %vm103_vm2, %v8290_v46, 0.0 }
 0x2ce   :  { %v8292_v47 = vpop.eup %7995 }
 0x2cf   :  { %v724_v50 = vsel %vm103_vm2, %v8292_v47, 0.0 }
 0x2d6   :  { %v8296_v49 = vpop.eup %7997 }
 0x2d7   :  { %v834_v51 = vsel %vm103_vm2, %v8296_v49, 0.0 }
 0x2e5   :  { %488 = vadd.xlane.f32.xlu0 %v487_v45 }
 0x2e9   :  { %615 = vadd.xlane.f32.xlu0 %v614_v48 }
 0x2ed   :  { %725 = vadd.xlane.f32.xlu1 %v724_v50  ;;  %835 = vadd.xlane.f32.xlu0 %v834_v51 }
 0x2f1   :  { %v940_v53 = vpop.xlane.xlu0 %939 }
 0x2f2   :  { %v941_v54 = vsub.f32 %v8260_v9, %v940_v53 }
 0x2f4   :  { %v942_v55 = vmul.f32 1.442695, %v941_v54 }
 0x2f6   :  { %7999 = vpow2.f32 %v942_v55 }
 0x2fe   :  { %730 = vrot.lane.b32.xlu1 %v8184_v14, %s8094_s18 }
 0x302   :  { %840 = vrot.lane.b32.xlu1 %v8184_v14, %s8096_s20 }
 0x303   :  { %v8307_v56 = vpop.eup %7999 }
 0x304   :  { %v944_v57 = vsel %vm103_vm2, %v8307_v56, 0.0 }
 0x305   :  { %945 = vadd.xlane.f32.xlu0 %v944_v57 }
 0x306   :  { %950 = vrot.lane.b32.xlu1 %v8184_v14, %s8097_s21 }
 0x31b   :  { %620 = vrot.lane.b32.xlu0 %v8184_v14, %s8095_s19 }
 0x331   :  { %v158_v58 = vpop.xlane.xlu1 %157 }
 0x332   :  { %8001 = vrcp.f32 %v158_v58 }
 0x339   :  { %v269_v59 = vpop.xlane.xlu0 %268 }
 0x33a   :  { %8003 = vrcp.f32 %v269_v59 }
 0x33d   :  { %v384_v3 = vpop.permute.xlu0 %383 }
 0x33e   :  { %v389_v5 = vsel %vm167_vm3, %v384_v3, 0 }
 0x33f   :  { %v8002_v60 = vpop.eup %8001 }
 0x340   :  { %v160_v61 = vmul.f32 %v8002_v60, %v8268_v24 }
 0x341   :  { %v379_v62 = vpop.xlane.xlu1 %378 }
 0x342   :  { %8005 = vrcp.f32 %v379_v62  ;;  %v161_v63 = vpack.c.bf16 %v160_v61, %v160_v61  ;;  %v7723_v61 = vld [vmem:[%s9846_s2 + $0x8] sm:$0xff]  }
 0x343   :  { %7558 = vmatpush3.bf16.msra.mxu1 %v7723_v61  ;;  %v1125_v61 = vld [vmem:[%s9847_s3] sm:$0xff] }
 0x344   :  { %7470 = vmatmul.mubr.msk.bf16.vlgmr.msra.gmra.mxu0 %vm103_vm2, %v161_v63  ;;  %7559 = vmatprep.subr.bf16.mxu1 %v8085_v1 }
 0x345   :  { %7480 = vmatpush3.bf16.msra.mxu0 %v279_v0  ;;  %7481 = vmatprep.mubr.msk.bf16.mxu0 %vm8086_vm0, %v8085_v1  ;;  %v494_v8 = vpop.permute.xlu1 %493 }
 0x346   :  { %7491 = vmatprep.subr.bf16.mxu0 %v8085_v1  ;;  %v499_v11 = vsel %vm167_vm3, %v494_v8, 0 }
 0x347   :  { %v8004_v14 = vpop.eup %8003 }
 0x348   :  { %v271_v2 = vmul.f32 %v8004_v14, %v8272_v27 }
 0x34a   :  { %v272_v4 = vpack.c.bf16 %v271_v2, %v271_v2  ;;  %v7724_v2 = vld [vmem:[%s9846_s2] sm:$0xff]  }
 0x34b   :  { %7560 = vmatpush3.bf16.msra.mxu1 %v7724_v2 }
 0x34c   :  { %7482 = vmatmul.mubr.msk.bf16.vlgmr.msra.gmra.mxu0 %vm103_vm2, %v272_v4 }
 0x34d   :  { %7492 = vmatpush3.bf16.msra.mxu0 %v389_v5  ;;  %7493 = vmatprep.mubr.msk.bf16.mxu0 %vm8086_vm0, %v8085_v1 }
 0x34e   :  { %7503 = vmatprep.subr.bf16.mxu0 %v8085_v1 }
 0x34f   :  { %v8006_v6 = vpop.eup %8005 }
 0x350   :  { %v381_v7 = vmul.f32 %v8006_v6, %v8276_v29 }
 0x352   :  { %v382_v9 = vpack.c.bf16 %v381_v7, %v381_v7 }
 0x354   :  { %7494 = vmatmul.mubr.msk.bf16.vlgmr.msra.gmra.mxu0 %vm103_vm2, %v382_v9 }
 0x355   :  { %7504 = vmatpush3.bf16.msra.mxu0 %v499_v11  ;;  %7505 = vmatprep.mubr.msk.bf16.mxu0 %vm8086_vm0, %v8085_v1 }
 0x356   :  { %7515 = vmatprep.subr.bf16.mxu0 %v8085_v1 }
 0x36e   :  { %v489_v12 = vpop.xlane.xlu0 %488 }
 0x36f   :  { %8007 = vrcp.f32 %v489_v12 }
 0x372   :  { %v616_v16 = vpop.xlane.xlu0 %615 }
 0x373   :  { %8009 = vrcp.f32 %v616_v16 }
 0x376   :  { %v726_v18 = vpop.xlane.xlu1 %725  ;;  %v836_v19 = vpop.xlane.xlu0 %835 }
 0x377   :  { %8011 = vrcp.f32 %v726_v18 }
 0x378   :  { %8013 = vrcp.f32 %v836_v19 }
 0x37a   :  { %v731_v25 = vpop.permute.xlu1 %730 }
 0x37b   :  { %v736_v28 = vsel %vm167_vm3, %v731_v25, 0 }
 0x37c   :  { %v8008_v13 = vpop.eup %8007 }
 0x37d   :  { %v491_v15 = vmul.f32 %v8008_v13, %v7992_v10 }
 0x37e   :  { %v841_v30 = vpop.permute.xlu1 %840 }
 0x37f   :  { %v492_v17 = vpack.c.bf16 %v491_v15, %v491_v15  ;;  %v846_v33 = vsel %vm167_vm3, %v841_v30, 0 }
 0x380   :  { %v8010_v20 = vpop.eup %8009 }
 0x381   :  { %7506 = vmatmul.mubr.msk.bf16.vlgmr.msra.gmra.mxu0 %vm103_vm2, %v492_v17  ;;  %v618_v22 = vmul.f32 %v8010_v20, %v8290_v46 }
 0x382   :  { %7517 = vmatprep.mubr.msk.bf16.mxu0 %vm8086_vm0, %v8085_v1  ;;  %v951_v35 = vpop.permute.xlu1 %950 }
 0x383   :  { %v619_v26 = vpack.c.bf16 %v618_v22, %v618_v22  ;;  %v956_v38 = vsel %vm167_vm3, %v951_v35, 0  ;;  %v8061_v35 = vld [vmem:[%s9844_s0] sm:$0xff] }
 0x384   :  { %v8012_v27 = vpop.eup %8011 }
 0x385   :  { %v728_v29 = vmul.f32 %v8012_v27, %v8292_v47  ;;  %v8014_v32 = vpop.eup %8013 }
 0x386   :  { %v838_v34 = vmul.f32 %v8014_v32, %v8296_v49 }
 0x387   :  { %v729_v31 = vpack.c.bf16 %v728_v29, %v728_v29 }
 0x388   :  { %v839_v36 = vpack.c.bf16 %v838_v34, %v838_v34 }
 0x38e   :  { %v946_v21 = vpop.xlane.xlu0 %945 }
 0x38f   :  { %8015 = vrcp.f32 %v946_v21 }
 0x392   :  { %v621_v23 = vpop.permute.xlu0 %620 }
 0x393   :  { %v626_v24 = vsel %vm167_vm3, %v621_v23, 0 }
 0x394   :  { %7516 = vmatpush3.bf16.msra.mxu0 %v626_v24 }
 0x395   :  { %7527 = vmatprep.subr.bf16.mxu0 %v8085_v1 }
 0x397   :  { %7518 = vmatmul.mubr.msk.bf16.vlgmr.msra.gmra.mxu0 %vm103_vm2, %v619_v26 }
 0x398   :  { %7528 = vmatpush3.bf16.msra.mxu0 %v736_v28  ;;  %7529 = vmatprep.mubr.msk.bf16.mxu0 %vm8086_vm0, %v8085_v1 }
 0x399   :  { %7539 = vmatprep.subr.bf16.mxu0 %v8085_v1 }
 0x39c   :  { %v8016_v37 = vpop.eup %8015 }
 0x39d   :  { %v948_v39 = vmul.f32 %v8016_v37, %v8307_v56 }
 0x39f   :  { %7530 = vmatmul.mubr.msk.bf16.vlgmr.msra.gmra.mxu0 %vm103_vm2, %v729_v31  ;;  %v949_v40 = vpack.c.bf16 %v948_v39, %v948_v39  ;;  %v6346_v31 = vld [vmem:[%s9850_s6] ss:$0 sm:$0xff] }
 0x3a0   :  { %7540 = vmatpush3.bf16.msra.mxu0 %v846_v33  ;;  %7541 = vmatprep.mubr.msk.bf16.mxu0 %vm8086_vm0, %v8085_v1 }
 0x3a1   :  { %7551 = vmatprep.subr.bf16.mxu0 %v8085_v1 }
 0x3a7   :  { %7542 = vmatmul.mubr.msk.bf16.vlgmr.msra.gmra.mxu0 %vm103_vm2, %v839_v36 }
 0x3a8   :  { %7552 = vmatpush3.bf16.msra.mxu0 %v956_v38  ;;  %7553 = vmatprep.mubr.msk.bf16.mxu0 %vm8086_vm0, %v8085_v1 }
 0x3af   :  { %7554 = vmatmul.mubr.msk.bf16.vlgmr.msra.gmra.mxu0 %vm103_vm2, %v949_v40 }
 0x404   :  { %v205_v41 = vpop.f32.mrf.mxu0 }
 0x406   :  { %v7471_v42 = vpop.f32.mrf.mxu0 }
 0x408   :  { %v208_v43 = vpop.f32.mrf.mxu0 }
 0x40a   :  { %v7472_v44 = vpop.f32.mrf.mxu0 }
 0x40c   :  { %v315_v10 = vpop.f32.mrf.mxu0 }
 0x40e   :  { %v7483_v45 = vpop.f32.mrf.mxu0 }
 0x410   :  { %v318_v46 = vpop.f32.mrf.mxu0 }
 0x412   :  { %v7484_v47 = vpop.f32.mrf.mxu0 }
 0x414   :  { %v425_v48 = vpop.f32.mrf.mxu0 }
 0x416   :  { %v7495_v49 = vpop.f32.mrf.mxu0 }
 0x418   :  { %v428_v50 = vpop.f32.mrf.mxu0 }
 0x41a   :  { %v7496_v51 = vpop.f32.mrf.mxu0 }
 0x441   :  { %v535_v52 = vpop.f32.mrf.mxu0 }
 0x443   :  { %v7507_v53 = vpop.f32.mrf.mxu0 }
 0x444   :  { %v1141_v53 = vld [vmem:[%s9847_s3 + $0x80] sm:$0xff] }
 0x445   :  { %v538_v54 = vpop.f32.mrf.mxu0 }
 0x446   :  { %v1149_v54 = vld [vmem:[%s9847_s3 + $0xc0] sm:$0xff] }
 0x447   :  { %v7508_v55 = vpop.f32.mrf.mxu0 }
 0x448   :  { %v1142_v55 = vld [vmem:[%s9847_s3 + $0x88] sm:$0xff] }
 0x457   :  { %v662_v56 = vpop.f32.mrf.mxu0 }
 0x459   :  { %v7519_v57 = vpop.f32.mrf.mxu0 }
 0x45a   :  { %v1150_v57 = vld [vmem:[%s9847_s3 + $0xc8] sm:$0xff] }
 0x45b   :  { %v665_v58 = vpop.f32.mrf.mxu0 }
 0x45c   :  { %v6368_v58 = vcombine.low %v1141_v53, %v1149_v54 }
 0x45d   :  { %v7520_v59 = vpop.f32.mrf.mxu0 }
 0x45e   :  { %v6370_v59 = vcombine.low %v1142_v55, %v1150_v57 }
 0x45f   :  { %v772_v60 = vpop.f32.mrf.mxu0 }
 0x460   :  { %v7696_v62 = vpack.i.bf16 %v772_v60, %v315_v10  ;;  %v6371_v60 = vcombine.high %v1142_v55, %v1150_v57  ;;  %v1155_v55 = vld [vmem:[%s9847_s3 + $0xf0] sm:$0xff]  ;;  %v1156_v57 = vld [vmem:[%s9847_s3 + $0xf8] sm:$0xff] }
 0x461   :  { %v7531_v63 = vpop.f32.mrf.mxu0 }
 0x462   :  { %7697 = vrot.lane.b32.xlu1 %v7696_v62, %s8098_s24  ;;  %1457 = vmatprep.subr.bf16.mxu1 %v6371_v60  ;;  %v1133_v62 = vld [vmem:[%s9847_s3 + $0x40] sm:$0xff]  ;;  %v1126_v63 = vld [vmem:[%s9847_s3 + $0x8] sm:$0xff] }
 0x463   :  { %v775_v0 = vpop.f32.mrf.mxu0  ;;  %v6352_v2 = vcombine.low %v1125_v61, %v1133_v62 }
 0x464   :  { %v6353_v0 = vcombine.high %v1125_v61, %v1133_v62  ;;  %v1131_v62 = vld [vmem:[%s9847_s3 + $0x30] sm:$0xff] }
 0x465   :  { %v7532_v14 = vpop.f32.mrf.mxu0 }
 0x466   :  { %v1134_v14 = vld [vmem:[%s9847_s3 + $0x48] sm:$0xff] }
 0x467   :  { %v882_v3 = vpop.f32.mrf.mxu0 }
 0x468   :  { %v7701_v4 = vpack.i.bf16 %v882_v3, %v425_v48  ;;  %v6354_v3 = vcombine.low %v1126_v63, %v1134_v14 }
 0x469   :  { %v7543_v5 = vpop.f32.mrf.mxu0 }
 0x46a   :  { %7702 = vrot.lane.b32.xlu1 %v7701_v4, %s8099_s27  ;;  %v6355_v4 = vcombine.high %v1126_v63, %v1134_v14  ;;  %v1143_v5 = vld [vmem:[%s9847_s3 + $0x90] sm:$0xff]  ;;  %v1140_v14 = vld [vmem:[%s9847_s3 + $0x78] sm:$0xff] }
 0x46b   :  { %v885_v6 = vpop.f32.mrf.mxu0  ;;  %v1139_v63 = vld [vmem:[%s9847_s3 + $0x70] sm:$0xff] }
 0x46c   :  { %v1151_v6 = vld [vmem:[%s9847_s3 + $0xd0] sm:$0xff] }
 0x46d   :  { %v7544_v7 = vpop.f32.mrf.mxu0 }
 0x46e   :  { %v1144_v7 = vld [vmem:[%s9847_s3 + $0x98] sm:$0xff] }
 0x46f   :  { %v992_v8 = vpop.f32.mrf.mxu0 }
 0x470   :  { %v7706_v9 = vpack.i.bf16 %v992_v8, %v535_v52  ;;  %v8101_v8 = vmov 0  }
 0x471   :  { %v7555_v11 = vpop.f32.mrf.mxu0  ;;  %1434 = vmatprep.mubr.bf16.mxu0 %v8101_v8 }
 0x472   :  { %7707 = vrot.lane.b32.xlu0 %v7706_v9, %s8100_s28  ;;  %v6373_v9 = vcombine.high %v1143_v5, %v1151_v6  ;;  %v1152_v11 = vld [vmem:[%s9847_s3 + $0xd8] sm:$0xff] }
 0x473   :  { %v995_v12 = vpop.f32.mrf.mxu0 }
 0x474   :  { %v6372_v12 = vcombine.low %v1143_v5, %v1151_v6  ;;  %v6364_v6 = vcombine.low %v1131_v62, %v1139_v63 }
 0x475   :  { %v7556_v13 = vpop.f32.mrf.mxu0 }
 0x476   :  { %v6374_v13 = vcombine.low %v1144_v7, %v1152_v11 }
 0x4d4   :  { %v7698_v15 = vpop.permute.xlu1 %7697 }
 0x4d5   :  { %v7700_v17 = vunpack.i.h.bf16 %v7698_v15  ;;  %v7699_v18 = vunpack.i.l.bf16 %v7698_v15  ;;  %v6375_v15 = vcombine.high %v1144_v7, %v1152_v11  ;;  %v7726_v11 = vld [vmem:[%s9848_s4 + $0xf8] sm:$0xff]  }
 0x4d7   :  { %v1010_v22 = vsel %vm103_vm2, %v662_v56, %v7700_v17  ;;  %v553_v23 = vsel %vm103_vm2, %v205_v41, %v7699_v18  ;;  %v8062_v41 = vld [vmem:[%s9844_s0 + $0x8] sm:$0xff]  ;;  %v6369_v56 = vcombine.high %v1141_v53, %v1149_v54  ;;  %v1147_v54 = vld [vmem:[%s9847_s3 + $0xb0] sm:$0xff] }
 0x4d8   :  { %v6381_v60 = vcombine.high %v1147_v54, %v1155_v55 }
 0x4d9   :  { %1414 = vmatprep.subr.bf16.mxu0 %v6369_v56  ;;  %v1148_v56 = vld [vmem:[%s9847_s3 + $0xb8] sm:$0xff] }
 0x4da   :  { %1415 = vmatpush1.bf16.msra.mxu0 %v6368_v58  ;;  %v6383_v61 = vcombine.high %v1148_v56, %v1156_v57 }
 0x4db   :  { %1416 = vmatprep.subr.bf16.mxu0 %v6353_v0  ;;  %v1132_v0 = vld [vmem:[%s9847_s3 + $0x38] sm:$0xff] }
 0x4dc   :  { %v7703_v16 = vpop.permute.xlu1 %7702  ;;  %v6367_v5 = vcombine.high %v1132_v0, %v1140_v14  ;;  %v6366_v7 = vcombine.low %v1132_v0, %v1140_v14 }
 0x4dd   :  { %v7705_v19 = vunpack.i.h.bf16 %v7703_v16  ;;  %v7704_v20 = vunpack.i.l.bf16 %v7703_v16 }
 0x4de   :  { %1417 = vmatpush1.bf16.msra.mxu0 %v6352_v2  ;;  %v6380_v2 = vcombine.low %v1147_v54, %v1155_v55 }
 0x4df   :  { %v1011_v26 = vsel %vm554_vm4, %v1010_v22, %v7705_v19  ;;  %v555_v27 = vsel %vm554_vm4, %v553_v23, %v7704_v20  ;;  %1500 = vmatprep.subr.bf16.mxu0 %v6373_v9  ;;  %v7725_v9 = vld [vmem:[%s9848_s4 + $0x78] sm:$0xff]  }
 0x4e4   :  { %v7708_v21 = vpop.permute.xlu0 %7707 }
 0x4e5   :  { %v7710_v24 = vunpack.i.h.bf16 %v7708_v21  ;;  %v7709_v25 = vunpack.i.l.bf16 %v7708_v21 }
 0x4e7   :  { %v1012_v28 = vsel %vm556_vm5, %v1011_v26, %v7710_v24  ;;  %v557_v29 = vsel %vm556_vm5, %v555_v27, %v7709_v25  ;;  %v6350_v24 = vld [vmem:[%s9850_s6 + $0x1] ss:$0 sm:$0xff] }
 0x4e8   :  { %v1013_v30 = vpack.c.bf16 %v1012_v28, %v557_v29  ;;  %v6351_v28 = vld [vmem:[%s9850_s6 + $0x2] ss:$0 sm:$0xff] }
 0x4ea   :  { %7562 = vmatmul.mubr.msk.bf16.vlgmr.msra.gmra.mxu1 %vm54_vm1, %v1013_v30  ;;  %v1127_v30 = vld [vmem:[%s9847_s3 + $0x10] sm:$0xff] }
 0x4eb   :  { %1458 = vmatpush1.bf16.msra.mxu1 %v6370_v59  ;;  %1477 = vmatprep.mubr.bf16.mxu1 %v8101_v8 }
 0x4ec   :  { %1459 = vmatprep.subr.bf16.mxu1 %v6355_v4  ;;  %v6365_v4 = vcombine.high %v1131_v62, %v1139_v63 }
 0x4ef   :  { %1460 = vmatpush1.bf16.msra.mxu1 %v6354_v3  ;;  %v6382_v3 = vcombine.low %v1148_v56, %v1156_v57 }
 0x4f0   :  { %1543 = vmatprep.subr.bf16.mxu1 %v6375_v15  ;;  %v7729_v15 = vld [vmem:[%s9848_s4 + $0x70] sm:$0xff]  }
 0x5aa   :  { %v1072_v32 = vpop.f32.mrf.mxu1 }
 0x5ab   :  { %v1073_v33 = vadd.f32 %v6346_v31, %v1072_v32  ;;  %v1128_v32 = vld [vmem:[%s9847_s3 + $0x18] sm:$0xff] }
 0x5ac   :  { %v7563_v34 = vpop.f32.mrf.mxu1 }
 0x5ad   :  { %v1079_v36 = vadd.f32 %v8061_v35, %v1073_v33  ;;  %v1136_v33 = vld [vmem:[%s9847_s3 + $0x58] sm:$0xff] }
 0x5ae   :  { %v1075_v37 = vpop.f32.mrf.mxu1 }
 0x5af   :  { %v1076_v38 = vadd.f32 %v6346_v31, %v1075_v37  ;;  %v1083_v39 = vsel %vm54_vm1, %v1079_v36, 0.0  ;;  %v1135_v31 = vld [vmem:[%s9847_s3 + $0x50] sm:$0xff] }
 0x5b0   :  { %1084 = vadd.xlane.f32.xlu1 %v1083_v39  ;;  %v7564_v40 = vpop.f32.mrf.mxu1  ;;  %v6357_v37 = vcombine.high %v1127_v30, %v1135_v31  ;;  %v1145_v39 = vld [vmem:[%s9847_s3 + $0xa0] sm:$0xff] }
 0x5b1   :  { %v1080_v42 = vadd.f32 %v8062_v41, %v1076_v38  ;;  %v6359_v38 = vcombine.high %v1128_v32, %v1136_v33  ;;  %v1153_v40 = vld [vmem:[%s9847_s3 + $0xe0] sm:$0xff]  ;;  %v1146_v41 = vld [vmem:[%s9847_s3 + $0xa8] sm:$0xff] }
 0x5b3   :  { %v1086_v43 = vsel %vm54_vm1, %v1080_v42, 0.0 }
 0x5b4   :  { %1087 = vadd.xlane.f32.xlu0 %v1086_v43  ;;  %v6356_v43 = vcombine.low %v1127_v30, %v1135_v31  ;;  %v7744_v30 = vld [vmem:[%s9848_s4 + $0x98] sm:$0xff]   ;;  %v7745_v31 = vld [vmem:[%s9848_s4 + $0x50] sm:$0xff]  }
 0x639   :  { %v1085_v44 = vpop.xlane.xlu1 %1084 }
 0x63a   :  { %v1090_v10 = vmul.f32 0.03125, %v1085_v44  ;;  %v6358_v44 = vcombine.low %v1128_v32, %v1136_v33  ;;  %v7746_v32 = vld [vmem:[%s9848_s4 + $0xd0] sm:$0xff]  }
 0x63b   :  { %v7747_v33 = vld [vmem:[%s9848_s4 + $0x10] sm:$0xff]  }
 0x63c   :  { %v1092_v45 = vsub.f32 %v1079_v36, %v1090_v10  ;;  %v6377_v10 = vcombine.high %v1145_v39, %v1153_v40 }
 0x63d   :  { %v1088_v46 = vpop.xlane.xlu0 %1087 }
 0x63e   :  { %v1091_v47 = vmul.f32 0.03125, %v1088_v46  ;;  %v1094_v48 = vmul.f32 %v1092_v45, %v1092_v45  ;;  %v1129_v46 = vld [vmem:[%s9847_s3 + $0x20] sm:$0xff] }
 0x640   :  { %v1093_v49 = vsub.f32 %v1080_v42, %v1091_v47  ;;  %v1096_v50 = vsel %vm54_vm1, %v1094_v48, 0.0  ;;  %v1154_v42 = vld [vmem:[%s9847_s3 + $0xe8] sm:$0xff]  ;;  %v1137_v47 = vld [vmem:[%s9847_s3 + $0x60] sm:$0xff] }
 0x641   :  { %1097 = vadd.xlane.f32.xlu0 %v1096_v50  ;;  %v1130_v48 = vld [vmem:[%s9847_s3 + $0x28] sm:$0xff]  ;;  %v6376_v50 = vcombine.low %v1145_v39, %v1153_v40  ;;  %v6360_v58 = vcombine.low %v1129_v46, %v1137_v47 }
 0x642   :  { %v1095_v51 = vmul.f32 %v1093_v49, %v1093_v49  ;;  %v7751_v39 = vld [vmem:[%s9848_s4 + $0x8] sm:$0xff]  }
 0x643   :  { %v7752_v40 = vld [vmem:[%s9848_s4 + $0x88] sm:$0xff]  }
 0x644   :  { %v1099_v52 = vsel %vm54_vm1, %v1095_v51, 0.0  ;;  %v6378_v51 = vcombine.low %v1146_v41, %v1154_v42 }
 0x645   :  { %1100 = vadd.xlane.f32.xlu1 %v1099_v52  ;;  %v6361_v52 = vcombine.high %v1129_v46, %v1137_v47  ;;  %v1159_v46 = vlaneseq }
 0x647   :  { %v8623_v47 = vshrl.u32 %v1159_v46, 7  ;;  %v7764_v46 = vld [vmem:[%s9848_s4 + $0x1b0] sm:$0xff]  }
 0x649   :  { %v8651_v63 = vsub.s32 5, %v8623_v47  ;;  %v8654_v0 = vsub.s32 7, %v8623_v47 }
 0x6ca   :  { %v1098_v16 = vpop.xlane.xlu0 %1097 }
 0x6cb   :  { %v1102_v17 = vmul.f32 0.03125, %v1098_v16  ;;  %v7730_v16 = vld [vmem:[%s9848_s4 + $0xf0] sm:$0xff]  }
 0x6cd   :  { %v1104_v18 = vadd.f32 1e-05, %v1102_v17  ;;  %v7731_v17 = vld [vmem:[%s9848_s4 + $0x30] sm:$0xff]  }
 0x6ce   :  { %v1101_v19 = vpop.xlane.xlu1 %1100 }
 0x6cf   :  { %8017 = vrsqrt.f32 %v1104_v18  ;;  %v1103_v20 = vmul.f32 0.03125, %v1101_v19  ;;  %v7732_v18 = vld [vmem:[%s9848_s4 + $0xb0] sm:$0xff]   ;;  %v7733_v19 = vld [vmem:[%s9848_s4 + $0x68] sm:$0xff]  }
 0x6d1   :  { %v1105_v21 = vadd.f32 1e-05, %v1103_v20  ;;  %v7734_v20 = vld [vmem:[%s9848_s4 + $0xe8] sm:$0xff]  }
 0x6d3   :  { %8019 = vrsqrt.f32 %v1105_v21  ;;  %v7735_v21 = vld [vmem:[%s9848_s4 + $0x28] sm:$0xff]  }
 0x6dc   :  { %v8018_v22 = vpop.eup %8017 }
 0x6dd   :  { %v1108_v23 = vmul.f32 %v8018_v22, %v1092_v45  ;;  %v6379_v45 = vcombine.high %v1146_v41, %v1154_v42  ;;  %v7736_v22 = vld [vmem:[%s9848_s4 + $0xa8] sm:$0xff]   ;;  %v7753_v41 = vld [vmem:[%s9848_s4 + $0x40] sm:$0xff]  }
 0x6de   :  { %v7754_v42 = vld [vmem:[%s9848_s4 + $0xc0] sm:$0xff]  }
 0x6df   :  { %v1114_v26 = vmul.f32 %v6350_v24, %v1108_v23  ;;  %v7737_v23 = vld [vmem:[%s9848_s4 + $0x60] sm:$0xff]  }
 0x6e0   :  { %v8020_v25 = vpop.eup %8019 }
 0x6e1   :  { %v1109_v27 = vmul.f32 %v8020_v25, %v1093_v49  ;;  %v8443_v34 = vadd.f32 %v6351_v28, %v1114_v26  ;;  %v1138_v49 = vld [vmem:[%s9847_s3 + $0x68] sm:$0xff]  ;;  %v7739_v25 = vld [vmem:[%s9848_s4 + $0x20] sm:$0xff]  }
 0x6e2   :  { %v6363_v53 = vcombine.high %v1130_v48, %v1138_v49  ;;  %v6362_v59 = vcombine.low %v1130_v48, %v1138_v49  ;;  %v7740_v26 = vld [vmem:[%s9848_s4 + $0xa0] sm:$0xff]   ;;  %v8626_v48 = vsub.s32 1, %v8623_v47  ;;  %v8629_v49 = vsub.s32 3, %v8623_v47 }
 0x6e3   :  { %v1115_v29 = vmul.f32 %v6350_v24, %v1109_v27  ;;  %v7738_v24 = vld [vmem:[%s9848_s4 + $0xe0] sm:$0xff]   ;;  %v7741_v27 = vld [vmem:[%s9848_s4 + $0x58] sm:$0xff]  }
 0x6e5   :  { %v8445_v35 = vadd.f32 %v6351_v28, %v1115_v29  ;;  %v7742_v28 = vld [vmem:[%s9848_s4 + $0xd8] sm:$0xff]  }
 0x6e6   :  { %v7743_v29 = vld [vmem:[%s9848_s4 + $0x18] sm:$0xff]  }
 0x6e7   :  { %v8449_v36 = vpack.c.bf16 %v8445_v35, %v8443_v34 }
 0x6e9   :  { %6384 = vmatmul.mubr.msk.bf16.vlgmr.msra.gmra.mxu0 %vm54_vm1, %v8449_v36  ;;  %6385 = vmatmul.mubr.msk.bf16.vlgmr.msra.gmra.mxu1 %vm54_vm1, %v8449_v36 }
 0x6ea   :  { %1501 = vmatpush1.bf16.msra.mxu0 %v6372_v12  ;;  %1544 = vmatpush1.bf16.msra.mxu1 %v6374_v13  ;;  %v7727_v12 = vld [vmem:[%s9848_s4 + $0x38] sm:$0xff]  }
 0x6eb   :  { %1502 = vmatprep.subr.bf16.mxu0 %v6357_v37  ;;  %1545 = vmatprep.subr.bf16.mxu1 %v6359_v38  ;;  %v7728_v13 = vld [vmem:[%s9848_s4 + $0xb8] sm:$0xff]   ;;  %v7749_v37 = vld [vmem:[%s9848_s4 + $0x48] sm:$0xff]  }
 0x6ec   :  { %1520 = vmatprep.mubr.bf16.mxu0 %v8101_v8  ;;  %1563 = vmatprep.mubr.bf16.mxu1 %v8101_v8  ;;  %v7750_v38 = vld [vmem:[%s9848_s4 + $0xc8] sm:$0xff]  }
 0x6ee   :  { %1503 = vmatpush1.bf16.msra.mxu0 %v6356_v43  ;;  %1546 = vmatpush1.bf16.msra.mxu1 %v6358_v44  ;;  %v7755_v43 = vld [vmem:[%s9848_s4] sm:$0xff]  }
 0x6ef   :  { %1586 = vmatprep.subr.bf16.mxu0 %v6377_v10  ;;  %1629 = vmatprep.subr.bf16.mxu1 %v6379_v45  ;;  %v7756_v44 = vld [vmem:[%s9848_s4 + $0x80] sm:$0xff]   ;;  %v7757_v10 = vld [vmem:[%s9848_s4 + $0x178] sm:$0xff]  }
 0x6f0   :  { %v7758_v45 = vld [vmem:[%s9848_s4 + $0x1f8] sm:$0xff]  }
 0x6f1   :  { %6386 = vmatmul.mubr.msk.bf16.vlgmr.msra.gmra.mxu0 %vm54_vm1, %v8449_v36  ;;  %6387 = vmatmul.mubr.msk.bf16.vlgmr.msra.gmra.mxu1 %vm54_vm1, %v8449_v36 }
 0x6f2   :  { %1587 = vmatpush1.bf16.msra.mxu0 %v6376_v50  ;;  %1630 = vmatpush1.bf16.msra.mxu1 %v6378_v51  ;;  %v8632_v50 = vsub.s32 0, %v8623_v47  ;;  %v8635_v51 = vsub.s32 2, %v8623_v47 }
 0x6f3   :  { %1588 = vmatprep.subr.bf16.mxu0 %v6361_v52  ;;  %1631 = vmatprep.subr.bf16.mxu1 %v6363_v53  ;;  %v8640_v52 = vld [vmem:[%s9849_s5] sm:$0xff] }
 0x6f4   :  { %1606 = vmatprep.mubr.bf16.mxu0 %v8101_v8  ;;  %1649 = vmatprep.mubr.bf16.mxu1 %v8101_v8  ;;  %v1166_v55 = vrot.slane %v8640_v52, %v8626_v48  ;;  %v1174_v56 = vrot.slane %v8640_v52, %v8629_v49  ;;  %v1162_v57 = vrot.slane %v8640_v52, %v8632_v50 }
 0x6f6   :  { %1589 = vmatpush1.bf16.msra.mxu0 %v6360_v58  ;;  %1632 = vmatpush1.bf16.msra.mxu1 %v6362_v59  ;;  %v1170_v58 = vrot.slane %v8640_v52, %v8635_v51 }
 0x6f7   :  { %1672 = vmatprep.subr.bf16.mxu0 %v6381_v60  ;;  %1715 = vmatprep.subr.bf16.mxu1 %v6383_v61 }
 0x6f9   :  { %6388 = vmatmul.mubr.msk.bf16.vlgmr.msra.gmra.mxu0 %vm54_vm1, %v8449_v36  ;;  %6389 = vmatmul.mubr.msk.bf16.vlgmr.msra.gmra.mxu1 %vm54_vm1, %v8449_v36 }
 0x6fa   :  { %1673 = vmatpush1.bf16.msra.mxu0 %v6380_v2  ;;  %1716 = vmatpush1.bf16.msra.mxu1 %v6382_v3 }
 0x6fb   :  { %1674 = vmatprep.subr.bf16.mxu0 %v6365_v4  ;;  %1717 = vmatprep.subr.bf16.mxu1 %v6367_v5 }
 0x6fc   :  { %1692 = vmatprep.mubr.bf16.mxu0 %v8101_v8  ;;  %1735 = vmatprep.mubr.bf16.mxu1 %v8101_v8 }
 0x6fe   :  { %1675 = vmatpush1.bf16.msra.mxu0 %v6364_v6  ;;  %1718 = vmatpush1.bf16.msra.mxu1 %v6366_v7 }
 0x6ff   :  { %7063 = vmatprep.subr.bf16.mxu0 %v7725_v9  ;;  %7085 = vmatprep.subr.bf16.mxu1 %v7726_v11 }
 0x701   :  { %6390 = vmatmul.mubr.msk.bf16.vlgmr.msra.gmra.mxu0 %vm54_vm1, %v8449_v36  ;;  %6391 = vmatmul.mubr.msk.bf16.vlgmr.msra.gmra.mxu1 %vm54_vm1, %v8449_v36  ;;  %v7748_v36 = vld [vmem:[%s9848_s4 + $0x90] sm:$0xff]  }
 0x702   :  { %7064 = vmatpush3.bf16.msra.mxu0 %v7727_v12  ;;  %7086 = vmatpush3.bf16.msra.mxu1 %v7728_v13 }
 0x703   :  { %7065 = vmatprep.subr.bf16.mxu0 %v7729_v15  ;;  %7087 = vmatprep.subr.bf16.mxu1 %v7730_v16 }
 0x706   :  { %7066 = vmatpush3.bf16.msra.mxu0 %v7731_v17  ;;  %7088 = vmatpush3.bf16.msra.mxu1 %v7732_v18  ;;  %v1182_v18 = vrot.slane %v8640_v52, %v8651_v63 }
 0x707   :  { %7067 = vmatprep.subr.bf16.mxu0 %v7733_v19  ;;  %7089 = vmatprep.subr.bf16.mxu1 %v7734_v20  ;;  %v1190_v19 = vrot.slane %v8640_v52, %v8654_v0 }
 0x70a   :  { %7068 = vmatpush3.bf16.msra.mxu0 %v7735_v21  ;;  %7090 = vmatpush3.bf16.msra.mxu1 %v7736_v22 }
 0x70b   :  { %7069 = vmatprep.subr.bf16.mxu0 %v7737_v23  ;;  %7091 = vmatprep.subr.bf16.mxu1 %v7738_v24 }
 0x70e   :  { %7070 = vmatpush3.bf16.msra.mxu0 %v7739_v25  ;;  %7092 = vmatpush3.bf16.msra.mxu1 %v7740_v26 }
 0x70f   :  { %7071 = vmatprep.subr.bf16.mxu0 %v7741_v27  ;;  %7093 = vmatprep.subr.bf16.mxu1 %v7742_v28 }
 0x712   :  { %7072 = vmatpush3.bf16.msra.mxu0 %v7743_v29  ;;  %7094 = vmatpush3.bf16.msra.mxu1 %v7744_v30  ;;  %v7759_v30 = vld [vmem:[%s9848_s4 + $0x138] sm:$0xff]  }
 0x713   :  { %7073 = vmatprep.subr.bf16.mxu0 %v7745_v31  ;;  %7095 = vmatprep.subr.bf16.mxu1 %v7746_v32  ;;  %v7760_v31 = vld [vmem:[%s9848_s4 + $0x1b8] sm:$0xff]  }
 0x716   :  { %7074 = vmatpush3.bf16.msra.mxu0 %v7747_v33  ;;  %7096 = vmatpush3.bf16.msra.mxu1 %v7748_v36 }
 0x717   :  { %7075 = vmatprep.subr.bf16.mxu0 %v7749_v37  ;;  %7097 = vmatprep.subr.bf16.mxu1 %v7750_v38  ;;  %v7761_v38 = vld [vmem:[%s9848_s4 + $0x170] sm:$0xff]  }
 0x71a   :  { %7076 = vmatpush3.bf16.msra.mxu0 %v7751_v39  ;;  %7098 = vmatpush3.bf16.msra.mxu1 %v7752_v40  ;;  %v7762_v39 = vld [vmem:[%s9848_s4 + $0x1f0] sm:$0xff]  }
 0x71b   :  { %7077 = vmatprep.subr.bf16.mxu0 %v7753_v41  ;;  %7099 = vmatprep.subr.bf16.mxu1 %v7754_v42 }
 0x71e   :  { %7078 = vmatpush3.bf16.msra.mxu0 %v7755_v43  ;;  %7100 = vmatpush3.bf16.msra.mxu1 %v7756_v44 }
 0x71f   :  { %7107 = vmatprep.subr.bf16.mxu0 %v7757_v10  ;;  %7129 = vmatprep.subr.bf16.mxu1 %v7758_v45  ;;  %v7763_v45 = vld [vmem:[%s9848_s4 + $0x130] sm:$0xff]  }
 0x7a9   :  { %v1436_v53 = vpop.f32.mrf.mxu0  ;;  %v1479_v54 = vpop.f32.mrf.mxu1 }
 0x7aa   :  { %v1437_v5 = vadd.f32 %v1436_v53, %v1162_v57  ;;  %v1480_v6 = vadd.f32 %v1479_v54, %v1170_v58  ;;  %v7765_v53 = vld [vmem:[%s9848_s4 + $0x168] sm:$0xff]  }
 0x7ab   :  { %v1438_v59 = vpop.f32.mrf.mxu0  ;;  %v1481_v60 = vpop.f32.mrf.mxu1 }
 0x7ac   :  { %v1439_v14 = vadd.f32 %v1438_v59, %v1166_v55  ;;  %v1482_v2 = vadd.f32 %v1481_v60, %v1174_v56  ;;  %v1746_v24 = vmax.f32 %v1437_v5, 0.0  ;;  %v1748_v25 = vmax.f32 %v1480_v6, 0.0  ;;  %v7772_v6 = vld [vmem:[%s9848_s4 + $0x1a0] sm:$0xff]  }
 0x7ad   :  { %v1440_v61 = vpop.f32.mrf.mxu0  ;;  %v1483_v62 = vpop.f32.mrf.mxu1 }
 0x7ae   :  { %v1441_v3 = vadd.f32 %v1440_v61, %v1162_v57  ;;  %v1484_v4 = vadd.f32 %v1483_v62, %v1170_v58  ;;  %v1747_v20 = vmax.f32 %v1439_v14, 0.0  ;;  %v1749_v21 = vmax.f32 %v1482_v2, 0.0  ;;  %v7766_v58 = vld [vmem:[%s9848_s4 + $0x1e8] sm:$0xff]   ;;  %v7769_v14 = vld [vmem:[%s9848_s4 + $0x160] sm:$0xff]  }
 0x7af   :  { %v1442_v7 = vpop.f32.mrf.mxu0  ;;  %v1485_v9 = vpop.f32.mrf.mxu1  ;;  %v7767_v61 = vld [vmem:[%s9848_s4 + $0x128] sm:$0xff]   ;;  %v7770_v2 = vld [vmem:[%s9848_s4 + $0x1e0] sm:$0xff]  }
 0x7b0   :  { %v1443_v11 = vadd.f32 %v1442_v7, %v1166_v55  ;;  %v1486_v12 = vadd.f32 %v1485_v9, %v1174_v56  ;;  %v1762_v13 = vmax.f32 %v1441_v3, 0.0  ;;  %v1764_v15 = vmax.f32 %v1484_v4, 0.0  ;;  %v7768_v62 = vld [vmem:[%s9848_s4 + $0x1a8] sm:$0xff]   ;;  %v7771_v4 = vld [vmem:[%s9848_s4 + $0x120] sm:$0xff]   ;;  %v7773_v7 = vld [vmem:[%s9848_s4 + $0x158] sm:$0xff]  }
 0x7b1   :  { %v8656_v16 = vpop.f32.mrf.mxu0  ;;  %v8658_v17 = vpop.f32.mrf.mxu1  ;;  %v7774_v9 = vld [vmem:[%s9848_s4 + $0x1d8] sm:$0xff]  }
 0x7b2   :  { %v1763_v22 = vmax.f32 %v1443_v11, 0.0  ;;  %v1765_v23 = vmax.f32 %v1486_v12, 0.0  ;;  %v1778_v32 = vpack.c.bf16 %v1762_v13, %v1746_v24  ;;  %v1780_v33 = vpack.c.bf16 %v1764_v15, %v1748_v25  ;;  %v7775_v12 = vld [vmem:[%s9848_s4 + $0x118] sm:$0xff]   ;;  %v7780_v25 = vld [vmem:[%s9848_s4 + $0x190] sm:$0xff]  }
 0x7b3   :  { %v1524_v26 = vpop.f32.mrf.mxu0  ;;  %v1567_v27 = vpop.f32.mrf.mxu1  ;;  %v7776_v15 = vld [vmem:[%s9848_s4 + $0x198] sm:$0xff]  }
 0x7b4   :  { %v1779_v28 = vpack.c.bf16 %v1763_v22, %v1747_v20  ;;  %v1781_v29 = vpack.c.bf16 %v1765_v23, %v1749_v21  ;;  %v1525_v40 = vadd.f32 %v1524_v26, %v1182_v18  ;;  %v1568_v41 = vadd.f32 %v1567_v27, %v1190_v19  ;;  %v7779_v23 = vld [vmem:[%s9848_s4 + $0x110] sm:$0xff]   ;;  %v7782_v26 = vld [vmem:[%s9848_s4 + $0x1c8] sm:$0xff]  }
 0x7b5   :  { %v8670_v36 = vpop.f32.mrf.mxu0  ;;  %v8672_v37 = vpop.f32.mrf.mxu1  ;;  %v8733_v20 = vsub.s32 4, %v8623_v47  ;;  %v8736_v21 = vsub.s32 6, %v8623_v47  ;;  %v7781_v47 = vld [vmem:[%s9848_s4 + $0x148] sm:$0xff]  }
 0x7b6   :  { %2855 = vmatprep.mubr.bf16.mxu0 %v1779_v28  ;;  %2896 = vmatprep.mubr.bf16.mxu1 %v1781_v29  ;;  %v1751_v54 = vmax.f32 %v1525_v40, 0.0  ;;  %v1753_v55 = vmax.f32 %v1568_v41, 0.0  ;;  %v8761_v29 = vld [vmem:[%s9849_s5 + $0x8] sm:$0xff] }
 0x7b7   :  { %v1528_v42 = vpop.f32.mrf.mxu0  ;;  %v1571_v43 = vpop.f32.mrf.mxu1  ;;  %2856 = vmatmul.mubr.bf16.vlgmr.msra.gmra.mxu0 %v1778_v32  ;;  %2897 = vmatmul.mubr.bf16.vlgmr.msra.gmra.mxu1 %v1780_v33  ;;  %v1178_v27 = vrot.slane %v8640_v52, %v8733_v20  ;;  %v1186_v28 = vrot.slane %v8640_v52, %v8736_v21  ;;  %v1198_v33 = vrot.slane %v8761_v29, %v8626_v48  ;;  %v7784_v52 = vld [vmem:[%s9848_s4 + $0x188] sm:$0xff]  }
 0x7b8   :  { %v1529_v44 = vadd.f32 %v1528_v42, %v1182_v18  ;;  %v1572_v10 = vadd.f32 %v1571_v43, %v1190_v19  ;;  %7108 = vmatpush3.bf16.msra.mxu0 %v7759_v30  ;;  %7130 = vmatpush3.bf16.msra.mxu1 %v7760_v31  ;;  %v7777_v18 = vld [vmem:[%s9848_s4 + $0x150] sm:$0xff]   ;;  %v7783_v31 = vld [vmem:[%s9848_s4 + $0x108] sm:$0xff]   ;;  %v1206_v41 = vrot.slane %v8761_v29, %v8629_v49 }
 0x7b9   :  { %7109 = vmatprep.subr.bf16.mxu0 %v7761_v38  ;;  %7131 = vmatprep.subr.bf16.mxu1 %v7762_v39  ;;  %v8704_v3 = vpop.f32.mrf.mxu0  ;;  %v8709_v5 = vpop.f32.mrf.mxu1  ;;  %v7778_v19 = vld [vmem:[%s9848_s4 + $0x1d0] sm:$0xff]   ;;  %v1527_v32 = vadd.f32 %v8670_v36, %v1178_v27  ;;  %v7785_v39 = vld [vmem:[%s9848_s4 + $0x140] sm:$0xff]   ;;  %v1570_v40 = vadd.f32 %v8672_v37, %v1186_v28  ;;  %v1523_v42 = vadd.f32 %v8656_v16, %v1178_v27  ;;  %v7789_v16 = vld [vmem:[%s9848_s4 + $0x278] sm:$0xff]  }
 0x7ba   :  { %v1767_v56 = vmax.f32 %v1529_v44, 0.0  ;;  %v1769_v57 = vmax.f32 %v1572_v10, 0.0  ;;  %v7786_v36 = vld [vmem:[%s9848_s4 + $0x1c0] sm:$0xff]   ;;  %v1566_v44 = vadd.f32 %v8658_v17, %v1186_v28 }
 0x7bb   :  { %v1610_v11 = vpop.f32.mrf.mxu0  ;;  %v1653_v13 = vpop.f32.mrf.mxu1  ;;  %v1766_v37 = vmax.f32 %v1527_v32, 0.0  ;;  %v7803_v27 = vld [vmem:[%s9848_s4 + $0x220] sm:$0xff]   ;;  %v7806_v32 = vld [vmem:[%s9848_s4 + $0x2d8] sm:$0xff]  }
 0x7bc   :  { %v1783_v59 = vpack.c.bf16 %v1767_v56, %v1751_v54  ;;  %v1785_v60 = vpack.c.bf16 %v1769_v57, %v1753_v55  ;;  %7110 = vmatpush3.bf16.msra.mxu0 %v7763_v45  ;;  %7132 = vmatpush3.bf16.msra.mxu1 %v7764_v46  ;;  %v7787_v45 = vld [vmem:[%s9848_s4 + $0x100] sm:$0xff]   ;;  %v1611_v46 = vadd.f32 %v1610_v11, %v1198_v33  ;;  %v1768_v54 = vmax.f32 %v1570_v40, 0.0  ;;  %v7790_v55 = vld [vmem:[%s9848_s4 + $0x2f8] sm:$0xff]   ;;  %v7809_v40 = vld [vmem:[%s9848_s4 + $0x250] sm:$0xff]  }
 0x7bd   :  { %7111 = vmatprep.subr.bf16.mxu0 %v7765_v53  ;;  %7133 = vmatprep.subr.bf16.mxu1 %v7766_v58  ;;  %v8738_v22 = vpop.f32.mrf.mxu0  ;;  %v8743_v24 = vpop.f32.mrf.mxu1  ;;  %v7788_v53 = vld [vmem:[%s9848_s4 + $0x180] sm:$0xff]   ;;  %v1654_v17 = vadd.f32 %v1653_v13, %v1206_v41  ;;  %v1750_v56 = vmax.f32 %v1523_v42, 0.0  ;;  %v1752_v58 = vmax.f32 %v1566_v44, 0.0  ;;  %v7796_v13 = vld [vmem:[%s9848_s4 + $0x2b0] sm:$0xff]  }
 0x7be   :  { %2937 = vmatprep.mubr.bf16.mxu0 %v1783_v59  ;;  %2978 = vmatprep.mubr.bf16.mxu1 %v1785_v60  ;;  %v7791_v60 = vld [vmem:[%s9848_s4 + $0x238] sm:$0xff]   ;;  %v7811_v42 = vld [vmem:[%s9848_s4 + $0x210] sm:$0xff]  }
 0x7bf   :  { %v1614_v30 = vpop.f32.mrf.mxu0  ;;  %v1657_v38 = vpop.f32.mrf.mxu1  ;;  %v7812_v44 = vld [vmem:[%s9848_s4 + $0x290] sm:$0xff]  }
 0x7c0   :  { %7112 = vmatpush3.bf16.msra.mxu0 %v7767_v61  ;;  %7134 = vmatpush3.bf16.msra.mxu1 %v7768_v62  ;;  %v1615_v43 = vadd.f32 %v1614_v30, %v1198_v33  ;;  %v1658_v10 = vadd.f32 %v1657_v38, %v1206_v41  ;;  %v1782_v61 = vpack.c.bf16 %v1766_v37, %v1750_v56  ;;  %v1755_v62 = vmax.f32 %v1611_v46, 0.0  ;;  %v7804_v30 = vld [vmem:[%s9848_s4 + $0x2a0] sm:$0xff]   ;;  %v7807_v38 = vld [vmem:[%s9848_s4 + $0x218] sm:$0xff]   ;;  %v7810_v41 = vld [vmem:[%s9848_s4 + $0x2d0] sm:$0xff]  }
 0x7c1   :  { %7113 = vmatprep.subr.bf16.mxu0 %v7769_v14  ;;  %7135 = vmatprep.subr.bf16.mxu1 %v7770_v2  ;;  %v7792_v14 = vld [vmem:[%s9848_s4 + $0x2b8] sm:$0xff]   ;;  %v1784_v2 = vpack.c.bf16 %v1768_v54, %v1752_v58  ;;  %v8836_v28 = vpop.f32.mrf.mxu1  ;;  %v1194_v37 = vrot.slane %v8761_v29, %v8632_v50  ;;  %v1202_v46 = vrot.slane %v8761_v29, %v8635_v51  ;;  %v7816_v56 = vld [vmem:[%s9848_s4 + $0x288] sm:$0xff]  }
 0x7c2   :  { %v1771_v57 = vmax.f32 %v1615_v43, 0.0  ;;  %v1773_v59 = vmax.f32 %v1658_v10, 0.0  ;;  %v7813_v10 = vld [vmem:[%s9848_s4 + $0x248] sm:$0xff]  }
 0x7c3   :  { %v1613_v54 = vadd.f32 %v8738_v22, %v1194_v37  ;;  %v1656_v58 = vadd.f32 %v8743_v24, %v1202_v46  ;;  %v7818_v22 = vld [vmem:[%s9848_s4 + $0x2c0] sm:$0xff]  }
 0x7c4   :  { %7114 = vmatpush3.bf16.msra.mxu0 %v7771_v4  ;;  %7136 = vmatpush3.bf16.msra.mxu1 %v7772_v6  ;;  %v1757_v4 = vmax.f32 %v1654_v17, 0.0  ;;  %v7793_v6 = vld [vmem:[%s9848_s4 + $0x270] sm:$0xff]   ;;  %v1214_v17 = vrot.slane %v8761_v29, %v8651_v63 }
 0x7c5   :  { %7115 = vmatprep.subr.bf16.mxu0 %v7773_v7  ;;  %7137 = vmatprep.subr.bf16.mxu1 %v7774_v9  ;;  %v1787_v7 = vpack.c.bf16 %v1771_v57, %v1755_v62  ;;  %v7794_v9 = vld [vmem:[%s9848_s4 + $0x2f0] sm:$0xff]   ;;  %v7817_v57 = vld [vmem:[%s9848_s4 + $0x240] sm:$0xff]   ;;  %v1652_v62 = vadd.f32 %v8709_v5, %v1202_v46  ;;  %v1770_v24 = vmax.f32 %v1613_v54, 0.0  ;;  %v7837_v46 = vld [vmem:[%s9848_s4 + $0x358] sm:$0xff]  }
 0x7c6   :  { %v1789_v11 = vpack.c.bf16 %v1773_v59, %v1757_v4  ;;  %v1222_v59 = vrot.slane %v8761_v29, %v8654_v0  ;;  %v7840_v54 = vld [vmem:[%s9848_s4 + $0x398] sm:$0xff]  }
 0x7c8   :  { %7116 = vmatpush3.bf16.msra.mxu0 %v7775_v12  ;;  %7138 = vmatpush3.bf16.msra.mxu1 %v7776_v15  ;;  %v7795_v12 = vld [vmem:[%s9848_s4 + $0x230] sm:$0xff]   ;;  %v7797_v15 = vld [vmem:[%s9848_s4 + $0x268] sm:$0xff]  }
 0x7c9   :  { %7117 = vmatprep.subr.bf16.mxu0 %v7777_v18  ;;  %7139 = vmatprep.subr.bf16.mxu1 %v7778_v19  ;;  %v7798_v18 = vld [vmem:[%s9848_s4 + $0x2e8] sm:$0xff]  }
 0x7ca   :  { %v7799_v19 = vld [vmem:[%s9848_s4 + $0x228] sm:$0xff]  }
 0x7cc   :  { %7118 = vmatpush3.bf16.msra.mxu0 %v7779_v23  ;;  %7140 = vmatpush3.bf16.msra.mxu1 %v7780_v25  ;;  %v7800_v23 = vld [vmem:[%s9848_s4 + $0x2a8] sm:$0xff]   ;;  %v7801_v25 = vld [vmem:[%s9848_s4 + $0x260] sm:$0xff]  }
 0x7cd   :  { %7119 = vmatprep.subr.bf16.mxu0 %v7781_v47  ;;  %7141 = vmatprep.subr.bf16.mxu1 %v7782_v26  ;;  %v7802_v47 = vld [vmem:[%s9848_s4 + $0x2e0] sm:$0xff]   ;;  %v8831_v26 = vpop.f32.mrf.mxu0 }
 0x7cf   :  { %v1696_v33 = vpop.f32.mrf.mxu0 }
 0x7d0   :  { %7120 = vmatpush3.bf16.msra.mxu0 %v7783_v31  ;;  %7142 = vmatpush3.bf16.msra.mxu1 %v7784_v52  ;;  %v7805_v31 = vld [vmem:[%s9848_s4 + $0x258] sm:$0xff]   ;;  %v1739_v52 = vpop.f32.mrf.mxu1  ;;  %v1697_v4 = vadd.f32 %v1696_v33, %v1214_v17 }
 0x7d1   :  { %7121 = vmatprep.subr.bf16.mxu0 %v7785_v39  ;;  %7143 = vmatprep.subr.bf16.mxu1 %v7786_v36  ;;  %v7808_v39 = vld [vmem:[%s9848_s4 + $0x298] sm:$0xff]   ;;  %v8859_v36 = vpop.f32.mrf.mxu0  ;;  %v1740_v5 = vadd.f32 %v1739_v52, %v1222_v59  ;;  %v7828_v52 = vld [vmem:[%s9848_s4 + $0x3b0] sm:$0xff]  }
 0x7d2   :  { %v8864_v43 = vpop.f32.mrf.mxu1 }
 0x7d4   :  { %7122 = vmatpush3.bf16.msra.mxu0 %v7787_v45  ;;  %7144 = vmatpush3.bf16.msra.mxu1 %v7788_v53  ;;  %v7814_v45 = vld [vmem:[%s9848_s4 + $0x2c8] sm:$0xff]   ;;  %v1700_v53 = vpop.f32.mrf.mxu0 }
 0x7d5   :  { %7151 = vmatprep.subr.bf16.mxu0 %v7789_v16  ;;  %7173 = vmatprep.subr.bf16.mxu1 %v7790_v55  ;;  %v7815_v16 = vld [vmem:[%s9848_s4 + $0x208] sm:$0xff]   ;;  %v1743_v55 = vpop.f32.mrf.mxu1 }
 0x7d7   :  { %2938 = vmatmul.mubr.bf16.vlgmr.msra.gmra.mxu0 %v1782_v61  ;;  %2979 = vmatmul.mubr.bf16.vlgmr.msra.gmra.mxu1 %v1784_v2  ;;  %v1701_v61 = vadd.f32 %v1700_v53, %v1214_v17  ;;  %v7819_v2 = vld [vmem:[%s9848_s4 + $0x200] sm:$0xff]   ;;  %v7838_v53 = vld [vmem:[%s9848_s4 + $0x3d8] sm:$0xff]   ;;  %v7841_v17 = vld [vmem:[%s9848_s4 + $0x350] sm:$0xff]  }
 0x7d8   :  { %7152 = vmatpush3.bf16.msra.mxu0 %v7791_v60  ;;  %3019 = vmatprep.mubr.bf16.mxu0 %v1787_v7  ;;  %v1609_v60 = vadd.f32 %v8704_v3, %v1194_v37  ;;  %v7821_v3 = vld [vmem:[%s9848_s4 + $0x378] sm:$0xff]   ;;  %v1772_v7 = vmax.f32 %v1656_v58, 0.0  ;;  %v7836_v37 = vld [vmem:[%s9848_s4 + $0x3a0] sm:$0xff]   ;;  %v7845_v58 = vld [vmem:[%s9848_s4 + $0x348] sm:$0xff]  }
 0x7d9   :  { %7174 = vmatpush3.bf16.msra.mxu1 %v7792_v14  ;;  %3060 = vmatprep.mubr.bf16.mxu1 %v1789_v11  ;;  %v1744_v14 = vadd.f32 %v1743_v55, %v1222_v59  ;;  %v7842_v55 = vld [vmem:[%s9848_s4 + $0x3d0] sm:$0xff]   ;;  %v7846_v59 = vld [vmem:[%s9848_s4 + $0x3c8] sm:$0xff]  }
 0x7da   :  { %7153 = vmatprep.subr.bf16.mxu0 %v7793_v6  ;;  %7175 = vmatprep.subr.bf16.mxu1 %v7794_v9  ;;  %v7820_v6 = vld [vmem:[%s9848_s4 + $0x280] sm:$0xff]   ;;  %v7822_v9 = vld [vmem:[%s9848_s4 + $0x3f8] sm:$0xff]   ;;  %v1754_v11 = vmax.f32 %v1609_v60, 0.0  ;;  %v1218_v60 = vrot.slane %v8761_v29, %v8736_v21 }
 0x7dc   :  { %7154 = vmatpush3.bf16.msra.mxu0 %v7795_v12  ;;  %v1775_v12 = vmax.f32 %v1701_v61, 0.0  ;;  %v7847_v61 = vld [vmem:[%s9848_s4 + $0x308] sm:$0xff]  }
 0x7dd   :  { %7176 = vmatpush3.bf16.msra.mxu1 %v7796_v13  ;;  %7155 = vmatprep.subr.bf16.mxu0 %v7797_v15  ;;  %v1756_v13 = vmax.f32 %v1652_v62, 0.0  ;;  %v1777_v15 = vmax.f32 %v1744_v14, 0.0  ;;  %v7848_v14 = vld [vmem:[%s9848_s4 + $0x388] sm:$0xff]  }
 0x7de   :  { %7177 = vmatprep.subr.bf16.mxu1 %v7798_v18  ;;  %v7823_v18 = vld [vmem:[%s9848_s4 + $0x338] sm:$0xff]  }
 0x7e0   :  { %7156 = vmatpush3.bf16.msra.mxu0 %v7799_v19  ;;  %v1786_v19 = vpack.c.bf16 %v1770_v24, %v1754_v11  ;;  %v1742_v24 = vadd.f32 %v8864_v43, %v1218_v60  ;;  %v7852_v43 = vld [vmem:[%s9848_s4 + $0x380] sm:$0xff]  }
 0x7e1   :  { %7178 = vmatpush3.bf16.msra.mxu1 %v7800_v23  ;;  %7157 = vmatprep.subr.bf16.mxu0 %v7801_v25  ;;  %v1759_v23 = vmax.f32 %v1697_v4, 0.0  ;;  %v7824_v25 = vld [vmem:[%s9848_s4 + $0x3b8] sm:$0xff]  }
 0x7e2   :  { %7179 = vmatprep.subr.bf16.mxu1 %v7802_v47  ;;  %v1788_v47 = vpack.c.bf16 %v1772_v7, %v1756_v13  ;;  %v1776_v7 = vmax.f32 %v1742_v24, 0.0 }
 0x7e4   :  { %7158 = vmatpush3.bf16.msra.mxu0 %v7803_v27  ;;  %v1761_v27 = vmax.f32 %v1740_v5, 0.0 }
 0x7e5   :  { %7180 = vmatpush3.bf16.msra.mxu1 %v7804_v30  ;;  %7159 = vmatprep.subr.bf16.mxu0 %v7805_v31  ;;  %v7825_v30 = vld [vmem:[%s9848_s4 + $0x370] sm:$0xff]   ;;  %v1791_v31 = vpack.c.bf16 %v1775_v12, %v1759_v23 }
 0x7e6   :  { %7181 = vmatprep.subr.bf16.mxu1 %v7806_v32  ;;  %v7826_v32 = vld [vmem:[%s9848_s4 + $0x3f0] sm:$0xff]   ;;  %v1793_v33 = vpack.c.bf16 %v1777_v15, %v1761_v27 }
 0x7e8   :  { %7160 = vmatpush3.bf16.msra.mxu0 %v7807_v38  ;;  %v7827_v38 = vld [vmem:[%s9848_s4 + $0x330] sm:$0xff]  }
 0x7e9   :  { %7182 = vmatpush3.bf16.msra.mxu1 %v7808_v39  ;;  %7161 = vmatprep.subr.bf16.mxu0 %v7809_v40  ;;  %v7829_v39 = vld [vmem:[%s9848_s4 + $0x368] sm:$0xff]  }
 0x7ea   :  { %7183 = vmatprep.subr.bf16.mxu1 %v7810_v41  ;;  %v7830_v40 = vld [vmem:[%s9848_s4 + $0x3e8] sm:$0xff]  }
 0x7eb   :  { %v7831_v41 = vld [vmem:[%s9848_s4 + $0x328] sm:$0xff]  }
 0x7ec   :  { %7162 = vmatpush3.bf16.msra.mxu0 %v7811_v42  ;;  %v7832_v42 = vld [vmem:[%s9848_s4 + $0x3a8] sm:$0xff]  }
 0x7ed   :  { %7184 = vmatpush3.bf16.msra.mxu1 %v7812_v44  ;;  %7163 = vmatprep.subr.bf16.mxu0 %v7813_v10  ;;  %v7833_v44 = vld [vmem:[%s9848_s4 + $0x360] sm:$0xff]  }
 0x7ee   :  { %7185 = vmatprep.subr.bf16.mxu1 %v7814_v45  ;;  %v7834_v10 = vld [vmem:[%s9848_s4 + $0x3e0] sm:$0xff]  }
 0x7ef   :  { %v7835_v45 = vld [vmem:[%s9848_s4 + $0x320] sm:$0xff]  }
 0x7f0   :  { %7164 = vmatpush3.bf16.msra.mxu0 %v7815_v16  ;;  %v7839_v16 = vld [vmem:[%s9848_s4 + $0x318] sm:$0xff]  }
 0x7f1   :  { %7186 = vmatpush3.bf16.msra.mxu1 %v7816_v56  ;;  %7165 = vmatprep.subr.bf16.mxu0 %v7817_v57  ;;  %v7843_v56 = vld [vmem:[%s9848_s4 + $0x310] sm:$0xff]  }
 0x7f2   :  { %7187 = vmatprep.subr.bf16.mxu1 %v7818_v22  ;;  %v7844_v57 = vld [vmem:[%s9848_s4 + $0x390] sm:$0xff]   ;;  %v1210_v22 = vrot.slane %v8761_v29, %v8733_v20  ;;  %v7850_v29 = vld [vmem:[%s9848_s4 + $0x3c0] sm:$0xff]  }
 0x7f4   :  { %7166 = vmatpush3.bf16.msra.mxu0 %v7819_v2  ;;  %v1699_v62 = vadd.f32 %v8859_v36, %v1210_v22  ;;  %v7849_v2 = vld [vmem:[%s9848_s4 + $0x340] sm:$0xff]   ;;  %v1695_v4 = vadd.f32 %v8831_v26, %v1210_v22  ;;  %v1738_v36 = vadd.f32 %v8836_v28, %v1218_v60 }
 0x7f5   :  { %7188 = vmatpush3.bf16.msra.mxu1 %v7820_v6  ;;  %7195 = vmatprep.subr.bf16.mxu0 %v7821_v3  ;;  %v7851_v6 = vld [vmem:[%s9848_s4 + $0x300] sm:$0xff]  }
 0x7f6   :  { %7217 = vmatprep.subr.bf16.mxu1 %v7822_v9  ;;  %v1774_v3 = vmax.f32 %v1699_v62, 0.0  ;;  %v1758_v5 = vmax.f32 %v1695_v4, 0.0  ;;  %v1760_v9 = vmax.f32 %v1738_v36, 0.0 }
 0x7f7   :  { %3020 = vmatmul.mubr.bf16.vlgmr.msra.gmra.mxu0 %v1786_v19 }
 0x7f8   :  { %3061 = vmatmul.mubr.bf16.vlgmr.msra.gmra.mxu1 %v1788_v47  ;;  %7196 = vmatpush3.bf16.msra.mxu0 %v7823_v18  ;;  %v1790_v26 = vpack.c.bf16 %v1774_v3, %v1758_v5  ;;  %v1792_v28 = vpack.c.bf16 %v1776_v7, %v1760_v9 }
 0x7f9   :  { %3101 = vmatprep.mubr.bf16.mxu0 %v1791_v31  ;;  %7218 = vmatpush3.bf16.msra.mxu1 %v7824_v25 }
 0x7fa   :  { %3142 = vmatprep.mubr.bf16.mxu1 %v1793_v33  ;;  %7197 = vmatprep.subr.bf16.mxu0 %v7825_v30 }
 0x7fb   :  { %7219 = vmatprep.subr.bf16.mxu1 %v7826_v32 }
 0x7fc   :  { %7198 = vmatpush3.bf16.msra.mxu0 %v7827_v38 }
 0x7fd   :  { %7220 = vmatpush3.bf16.msra.mxu1 %v7828_v52  ;;  %7199 = vmatprep.subr.bf16.mxu0 %v7829_v39  ;;  %v6392_v39 = vld [vmem:[%s9850_s6 + $0x3] ss:$0 sm:$0xff] }
 0x7fe   :  { %7221 = vmatprep.subr.bf16.mxu1 %v7830_v40 }
 0x800   :  { %7200 = vmatpush3.bf16.msra.mxu0 %v7831_v41 }
 0x801   :  { %7222 = vmatpush3.bf16.msra.mxu1 %v7832_v42  ;;  %7201 = vmatprep.subr.bf16.mxu0 %v7833_v44 }
 0x802   :  { %7223 = vmatprep.subr.bf16.mxu1 %v7834_v10 }
 0x804   :  { %7202 = vmatpush3.bf16.msra.mxu0 %v7835_v45 }
 0x805   :  { %7224 = vmatpush3.bf16.msra.mxu1 %v7836_v37  ;;  %7203 = vmatprep.subr.bf16.mxu0 %v7837_v46 }
 0x806   :  { %7225 = vmatprep.subr.bf16.mxu1 %v7838_v53 }
 0x808   :  { %7204 = vmatpush3.bf16.msra.mxu0 %v7839_v16 }
 0x809   :  { %7226 = vmatpush3.bf16.msra.mxu1 %v7840_v54  ;;  %7205 = vmatprep.subr.bf16.mxu0 %v7841_v17 }
 0x80a   :  { %7227 = vmatprep.subr.bf16.mxu1 %v7842_v55 }
 0x80c   :  { %7206 = vmatpush3.bf16.msra.mxu0 %v7843_v56 }
 0x80d   :  { %7228 = vmatpush3.bf16.msra.mxu1 %v7844_v57  ;;  %7207 = vmatprep.subr.bf16.mxu0 %v7845_v58 }
 0x80e   :  { %7229 = vmatprep.subr.bf16.mxu1 %v7846_v59 }
 0x810   :  { %7208 = vmatpush3.bf16.msra.mxu0 %v7847_v61 }
 0x811   :  { %7230 = vmatpush3.bf16.msra.mxu1 %v7848_v14  ;;  %7209 = vmatprep.subr.bf16.mxu0 %v7849_v2 }
 0x812   :  { %7231 = vmatprep.subr.bf16.mxu1 %v7850_v29 }
 0x814   :  { %7210 = vmatpush3.bf16.msra.mxu0 %v7851_v6 }
 0x815   :  { %7232 = vmatpush3.bf16.msra.mxu1 %v7852_v43  ;;  %7565 = vmatprep.subr.bf16.mxu0 %v8085_v1 }
 0x816   :  { %7573 = vmatprep.subr.bf16.mxu1 %v8085_v1 }
 0x817   :  { %3102 = vmatmul.mubr.bf16.vlgmr.msra.gmra.mxu0 %v1790_v26 }
 0x818   :  { %3143 = vmatmul.mubr.bf16.vlgmr.msra.gmra.mxu1 %v1792_v28  ;;  %7569 = vmatprep.mubr.msk.bf16.mxu0 %vm8086_vm0, %v8085_v1 }
 0x819   :  { %7575 = vmatprep.mubr.msk.bf16.mxu1 %vm8086_vm0, %v8085_v1 }
 0x877   :  { %v7079_v11 = vpop.f32.mrf.mxu0  ;;  %v7101_v12 = vpop.f32.mrf.mxu1 }
 0x879   :  { %v7080_v13 = vpop.f32.mrf.mxu0  ;;  %v7102_v15 = vpop.f32.mrf.mxu1 }
 0x87a   :  { %v7081_v52 = vadd.f32 %v7080_v13, %v7079_v11  ;;  %v7103_v37 = vadd.f32 %v7102_v15, %v7101_v12 }
 0x87b   :  { %v7082_v18 = vpop.f32.mrf.mxu0  ;;  %v7104_v19 = vpop.f32.mrf.mxu1 }
 0x87c   :  { %v2858_v42 = vadd.f32 %v7081_v52, %v6392_v39 }
 0x87d   :  { %v7083_v23 = vpop.f32.mrf.mxu0  ;;  %v7105_v47 = vpop.f32.mrf.mxu1 }
 0x87e   :  { %v7084_v44 = vadd.f32 %v7083_v23, %v7082_v18  ;;  %v2899_v53 = vadd.f32 %v7103_v37, %v2858_v42  ;;  %v7106_v55 = vadd.f32 %v7105_v47, %v7104_v19 }
 0x880   :  { %v2861_v16 = vadd.f32 %v7084_v44, %v6392_v39 }
 0x882   :  { %v2902_v58 = vadd.f32 %v7106_v55, %v2861_v16  ;;  %v7854_v16 = vld [vmem:[%s9845_s1 + $0x10] sm:$0xff]  }
 0x897   :  { %v7123_v25 = vpop.f32.mrf.mxu0  ;;  %v7145_v27 = vpop.f32.mrf.mxu1 }
 0x899   :  { %v7124_v30 = vpop.f32.mrf.mxu0  ;;  %v7146_v31 = vpop.f32.mrf.mxu1 }
 0x89a   :  { %v7125_v46 = vadd.f32 %v7124_v30, %v7123_v25  ;;  %v7147_v59 = vadd.f32 %v7146_v31, %v7145_v27 }
 0x89b   :  { %v7126_v32 = vpop.f32.mrf.mxu0  ;;  %v7148_v33 = vpop.f32.mrf.mxu1 }
 0x89c   :  { %v2940_v56 = vadd.f32 %v7125_v46, %v2899_v53 }
 0x89d   :  { %v7127_v38 = vpop.f32.mrf.mxu0  ;;  %v7149_v41 = vpop.f32.mrf.mxu1 }
 0x89e   :  { %v7128_v57 = vadd.f32 %v7127_v38, %v7126_v32  ;;  %v2981_v62 = vadd.f32 %v7147_v59, %v2940_v56  ;;  %v7150_v2 = vadd.f32 %v7149_v41, %v7148_v33 }
 0x8a0   :  { %v2943_v14 = vadd.f32 %v7128_v57, %v2902_v58 }
 0x8a2   :  { %v2984_v6 = vadd.f32 %v7150_v2, %v2943_v14  ;;  %v6522_v14 = vld [vmem:[%s9850_s6 + $0x5] ss:$0 sm:$0xff] }
 0x8b7   :  { %v7167_v40 = vpop.f32.mrf.mxu0 }
 0x8b8   :  { %v7189_v10 = vpop.f32.mrf.mxu1 }
 0x8b9   :  { %v7168_v45 = vpop.f32.mrf.mxu0 }
 0x8ba   :  { %v7190_v54 = vpop.f32.mrf.mxu1  ;;  %v7169_v22 = vadd.f32 %v7168_v45, %v7167_v40 }
 0x8bb   :  { %v7170_v17 = vpop.f32.mrf.mxu0  ;;  %v7191_v3 = vadd.f32 %v7190_v54, %v7189_v10 }
 0x8bc   :  { %v7192_v60 = vpop.f32.mrf.mxu1  ;;  %v3022_v24 = vadd.f32 %v7169_v22, %v2981_v62  ;;  %v6521_v22 = vld [vmem:[%s9850_s6 + $0x4] ss:$0 sm:$0xff] }
 0x8bd   :  { %v7171_v61 = vpop.f32.mrf.mxu0 }
 0x8be   :  { %v7172_v29 = vadd.f32 %v7171_v61, %v7170_v17  ;;  %v7193_v4 = vpop.f32.mrf.mxu1  ;;  %v3063_v5 = vadd.f32 %v7191_v3, %v3022_v24 }
 0x8bf   :  { %v7194_v12 = vadd.f32 %v7193_v4, %v7192_v60 }
 0x8c0   :  { %v3025_v9 = vadd.f32 %v7172_v29, %v2984_v6 }
 0x8c2   :  { %v3066_v23 = vadd.f32 %v7194_v12, %v3025_v9 }
 0x8d7   :  { %v7211_v36 = vpop.f32.mrf.mxu0 }
 0x8d8   :  { %v7233_v43 = vpop.f32.mrf.mxu1 }
 0x8d9   :  { %v7212_v7 = vpop.f32.mrf.mxu0 }
 0x8da   :  { %v7213_v26 = vadd.f32 %v7212_v7, %v7211_v36  ;;  %v7234_v28 = vpop.f32.mrf.mxu1  ;;  %v6528_v7 = vld [vmem:[%s9849_s5 + $0x21] ss:$0 sm:$0xff] }
 0x8db   :  { %v7214_v11 = vpop.f32.mrf.mxu0  ;;  %v7235_v15 = vadd.f32 %v7234_v28, %v7233_v43 }
 0x8dc   :  { %v3104_v13 = vadd.f32 %v7213_v26, %v3063_v5  ;;  %v7236_v18 = vpop.f32.mrf.mxu1 }
 0x8dd   :  { %v7215_v19 = vpop.f32.mrf.mxu0 }
 0x8de   :  { %v3145_v25 = vadd.f32 %v7235_v15, %v3104_v13  ;;  %v7216_v47 = vadd.f32 %v7215_v19, %v7214_v11  ;;  %v7237_v27 = vpop.f32.mrf.mxu1 }
 0x8df   :  { %v7238_v31 = vadd.f32 %v7237_v27, %v7236_v18 }
 0x8e0   :  { %v3107_v30 = vadd.f32 %v7216_v47, %v3066_v23  ;;  %v3151_v32 = vadd.f32 %v3145_v25, %v8443_v34 }
 0x8e2   :  { %v3148_v33 = vadd.f32 %v7238_v31, %v3107_v30  ;;  %v3155_v38 = vsel %vm54_vm1, %v3151_v32, 0.0 }
 0x8e3   :  { %3156 = vadd.xlane.f32.xlu0 %v3155_v38 }
 0x8e4   :  { %v3152_v52 = vadd.f32 %v3148_v33, %v8445_v35  ;;  %v7853_v35 = vld [vmem:[%s9845_s1 + $0x18] sm:$0xff]  }
 0x8e5   :  { %7566 = vmatpush3.bf16.msra.mxu0 %v7853_v35 }
 0x8e6   :  { %v3158_v39 = vsel %vm54_vm1, %v3152_v52, 0.0  ;;  %7567 = vmatprep.subr.bf16.mxu0 %v8085_v1 }
 0x8e7   :  { %3159 = vadd.xlane.f32.xlu1 %v3158_v39 }
 0x8e9   :  { %7568 = vmatpush3.bf16.msra.mxu0 %v7854_v16 }
 0x8ea   :  { %7579 = vmatprep.subr.bf16.mxu0 %v8085_v1 }
 0x96c   :  { %v3157_v40 = vpop.xlane.xlu0 %3156 }
 0x96d   :  { %v3161_v41 = vmul.f32 0.03125, %v3157_v40 }
 0x96f   :  { %v3163_v42 = vsub.f32 %v3151_v32, %v3161_v41 }
 0x970   :  { %v3160_v44 = vpop.xlane.xlu1 %3159 }
 0x971   :  { %v3162_v10 = vmul.f32 0.03125, %v3160_v44  ;;  %v3165_v45 = vmul.f32 %v3163_v42, %v3163_v42 }
 0x973   :  { %v3164_v37 = vsub.f32 %v3152_v52, %v3162_v10  ;;  %v3167_v46 = vsel %vm54_vm1, %v3165_v45, 0.0 }
 0x974   :  { %3168 = vadd.xlane.f32.xlu0 %v3167_v46 }
 0x975   :  { %v3166_v34 = vmul.f32 %v3164_v37, %v3164_v37 }
 0x977   :  { %v3170_v53 = vsel %vm54_vm1, %v3166_v34, 0.0 }
 0x978   :  { %3171 = vadd.xlane.f32.xlu1 %v3170_v53 }
 0x9fd   :  { %v3169_v54 = vpop.xlane.xlu0 %3168 }
 0x9fe   :  { %v3173_v17 = vmul.f32 0.03125, %v3169_v54 }
 0xa00   :  { %v3175_v55 = vadd.f32 1e-05, %v3173_v17 }
 0xa01   :  { %v3172_v56 = vpop.xlane.xlu1 %3171 }
 0xa02   :  { %8021 = vrsqrt.f32 %v3175_v55  ;;  %v3174_v57 = vmul.f32 0.03125, %v3172_v56 }
 0xa04   :  { %v3176_v58 = vadd.f32 1e-05, %v3174_v57 }
 0xa06   :  { %8023 = vrsqrt.f32 %v3176_v58 }
 0xa0f   :  { %v8022_v59 = vpop.eup %8021 }
 0xa10   :  { %v3179_v60 = vmul.f32 %v8022_v59, %v3163_v42 }
 0xa12   :  { %v3185_v61 = vmul.f32 %v6521_v22, %v3179_v60 }
 0xa13   :  { %v8024_v62 = vpop.eup %8023 }
 0xa14   :  { %v3180_v2 = vmul.f32 %v8024_v62, %v3164_v37  ;;  %v3191_v29 = vadd.f32 %v6522_v14, %v3185_v61 }
 0xa16   :  { %v3186_v24 = vmul.f32 %v6521_v22, %v3180_v2  ;;  %v3264_v6 = vrot.slane %v3191_v29, 7 }
 0xa18   :  { %v3192_v4 = vadd.f32 %v6522_v14, %v3186_v24 }
 0xa1a   :  { %v3195_v36 = vpack.c.bf16 %v3192_v4, %v3191_v29  ;;  %v3267_v3 = vrot.slane %v3192_v4, 6 }
 0xa1c   :  { %7570 = vmatmul.mubr.msk.bf16.vlgmr.msra.gmra.mxu0 %vm54_vm1, %v3195_v36  ;;  %v9040_v43 = vsel %vm3269_vm6, %v3264_v6, %v3267_v3 }
 0xa1d   :  { %7581 = vmatprep.mubr.msk.bf16.mxu0 %vm8086_vm0, %v8085_v1 }
 0xadc   :  { %v3256_v5 = vpop.f32.mrf.mxu0 }
 0xadd   :  { %v3257_v9 = vadd.f32 %v6528_v7, %v3256_v5 }
 0xade   :  { %v7571_v26 = vpop.f32.mrf.mxu0 }
 0xadf   :  { %v9047_v28 = vpack.c.bf16 %v3257_v9, %v3257_v9 }
 0xae0   :  { %v3259_v11 = vpop.f32.mrf.mxu0 }
 0xae1   :  { %3388 = vrot.lane.b32.xlu1 %v9047_v28, %s8090_s14  ;;  %3277 = vrot.lane.b32.xlu0 %v9047_v28, %s8088_s12  ;;  %v3273_v12 = vshrl.u32 %v9047_v28, 16  ;;  %v3260_v15 = vadd.f32 %v6528_v7, %v3259_v11 }
 0xae2   :  { %v7572_v13 = vpop.f32.mrf.mxu0 }
 0xae3   :  { %v3275_v18 = vrot.slane %v3273_v12, 3  ;;  %v9057_v19 = vpack.c.bf16 %v3260_v15, %v3260_v15 }
 0xae5   :  { %3498 = vrot.lane.b32.xlu0 %v9047_v28, %s8089_s13  ;;  %3386 = vrot.lane.b32.xlu1 %v3275_v18, %s8087_s11  ;;  %v3733_v23 = vshrl.u32 %v9057_v19, 16 }
 0xae7   :  { %v3735_v25 = vrot.slane %v3733_v23, 3 }
 0xae9   :  { %3608 = vrot.lane.b32.xlu0 %v9047_v28, %s8091_s15  ;;  %3496 = vrot.lane.b32.xlu1 %v3275_v18, %s8092_s16 }
 0xaed   :  { %3606 = vrot.lane.b32.xlu1 %v3275_v18, %s8093_s17  ;;  %3737 = vrot.lane.b32.xlu0 %v9057_v19, %s8088_s12 }
 0xaf1   :  { %3847 = vrot.lane.b32.xlu1 %v9057_v19, %s8090_s14  ;;  %3845 = vrot.lane.b32.xlu0 %v3735_v25, %s8087_s11 }
 0xaf5   :  { %3957 = vrot.lane.b32.xlu1 %v9057_v19, %s8089_s13  ;;  %3955 = vrot.lane.b32.xlu0 %v3735_v25, %s8092_s16 }
 0xaf9   :  { %4067 = vrot.lane.b32.xlu1 %v9057_v19, %s8091_s15  ;;  %4065 = vrot.lane.b32.xlu0 %v3735_v25, %s8093_s17 }
 0xb53   :  { %v3278_v47 = vpop.permute.xlu0 %3277  ;;  %v3389_v30 = vpop.permute.xlu1 %3388 }
 0xb54   :  { %v3283_v27 = vsel %vm103_vm2, %v3278_v47, 0  ;;  %v3394_v31 = vsel %vm103_vm2, %v3389_v30, 0 }
 0xb55   :  { %7574 = vmatpush3.bf16.xpose.msra.mxu1 %v3283_v27 }
 0xb56   :  { %7585 = vmatprep.subr.bf16.mxu1 %v8085_v1 }
 0xb57   :  { %v3499_v32 = vpop.permute.xlu0 %3498  ;;  %v3387_v33 = vpop.permute.xlu1 %3386 }
 0xb58   :  { %v3504_v38 = vsel %vm103_vm2, %v3499_v32, 0 }
 0xb5b   :  { %v3609_v52 = vpop.permute.xlu0 %3608  ;;  %v3497_v39 = vpop.permute.xlu1 %3496 }
 0xb5c   :  { %7576 = vmatmul.mubr.msk.bf16.vlgmr.msra.gmra.mxu1 %vm103_vm2, %v3275_v18  ;;  %v3614_v40 = vsel %vm103_vm2, %v3609_v52, 0 }
 0xb5d   :  { %7586 = vmatpush3.bf16.xpose.msra.mxu1 %v3394_v31  ;;  %7587 = vmatprep.mubr.msk.bf16.mxu1 %vm8086_vm0, %v8085_v1 }
 0xb5e   :  { %7597 = vmatprep.subr.bf16.mxu1 %v8085_v1 }
 0xb5f   :  { %v3738_v41 = vpop.permute.xlu0 %3737  ;;  %v3607_v42 = vpop.permute.xlu1 %3606 }
 0xb60   :  { %v3743_v44 = vsel %vm103_vm2, %v3738_v41, 0 }
 0xb63   :  { %v3848_v10 = vpop.permute.xlu1 %3847  ;;  %v3846_v46 = vpop.permute.xlu0 %3845 }
 0xb64   :  { %7588 = vmatmul.mubr.msk.bf16.vlgmr.msra.gmra.mxu1 %vm103_vm2, %v3387_v33  ;;  %v3853_v45 = vsel %vm103_vm2, %v3848_v10, 0 }
 0xb65   :  { %7598 = vmatpush3.bf16.xpose.msra.mxu1 %v3504_v38  ;;  %7599 = vmatprep.mubr.msk.bf16.mxu1 %vm8086_vm0, %v8085_v1 }
 0xb66   :  { %7609 = vmatprep.subr.bf16.mxu1 %v8085_v1 }
 0xb67   :  { %v3958_v37 = vpop.permute.xlu1 %3957  ;;  %v3956_v35 = vpop.permute.xlu0 %3955 }
 0xb68   :  { %v3963_v34 = vsel %vm103_vm2, %v3958_v37, 0 }
 0xb6b   :  { %v4068_v53 = vpop.permute.xlu1 %4067  ;;  %v4066_v54 = vpop.permute.xlu0 %4065 }
 0xb6c   :  { %7600 = vmatmul.mubr.msk.bf16.vlgmr.msra.gmra.mxu1 %vm103_vm2, %v3497_v39  ;;  %v4073_v16 = vsel %vm103_vm2, %v4068_v53, 0 }
 0xb6d   :  { %7610 = vmatpush3.bf16.xpose.msra.mxu1 %v3614_v40  ;;  %7611 = vmatprep.mubr.msk.bf16.mxu1 %vm8086_vm0, %v8085_v1 }
 0xb6e   :  { %7621 = vmatprep.subr.bf16.mxu1 %v8085_v1 }
 0xb74   :  { %7612 = vmatmul.mubr.msk.bf16.vlgmr.msra.gmra.mxu1 %vm103_vm2, %v3607_v42 }
 0xb75   :  { %7622 = vmatpush3.bf16.xpose.msra.mxu1 %v3743_v44  ;;  %7623 = vmatprep.mubr.msk.bf16.mxu1 %vm8086_vm0, %v8085_v1 }
 0xb76   :  { %7633 = vmatprep.subr.bf16.mxu1 %v8085_v1 }
 0xb7c   :  { %7624 = vmatmul.mubr.msk.bf16.vlgmr.msra.gmra.mxu1 %vm103_vm2, %v3735_v25 }
 0xb7d   :  { %7634 = vmatpush3.bf16.xpose.msra.mxu1 %v3853_v45  ;;  %7635 = vmatprep.mubr.msk.bf16.mxu1 %vm8086_vm0, %v8085_v1 }
 0xb7e   :  { %7645 = vmatprep.subr.bf16.mxu1 %v8085_v1 }
 0xb84   :  { %7636 = vmatmul.mubr.msk.bf16.vlgmr.msra.gmra.mxu1 %vm103_vm2, %v3846_v46 }
 0xb85   :  { %7646 = vmatpush3.bf16.xpose.msra.mxu1 %v3963_v34  ;;  %7647 = vmatprep.mubr.msk.bf16.mxu1 %vm8086_vm0, %v8085_v1 }
 0xb86   :  { %7657 = vmatprep.subr.bf16.mxu1 %v8085_v1 }
 0xb8c   :  { %7648 = vmatmul.mubr.msk.bf16.vlgmr.msra.gmra.mxu1 %vm103_vm2, %v3956_v35 }
 0xb8d   :  { %7658 = vmatpush3.bf16.xpose.msra.mxu1 %v4073_v16  ;;  %7659 = vmatprep.mubr.msk.bf16.mxu1 %vm8086_vm0, %v8085_v1 }
 0xb8e   :  { %7669 = vmatprep.subr.bf16.mxu1 %v8085_v1 }
 0xb94   :  { %7660 = vmatmul.mubr.msk.bf16.vlgmr.msra.gmra.mxu1 %vm103_vm2, %v4066_v54 }
 0xb95   :  { %7673 = vmatprep.mubr.msk.bf16.mxu1 %vm8086_vm0, %v8085_v1 }
 0xc1c   :  { %v3319_v17 = vpop.f32.mrf.mxu1 }
 0xc1d   :  { %v3326_v55 = vsel %vm3325_vm7, %v3319_v17, -inf }
 0xc1e   :  { %v7577_v56 = vpop.f32.mrf.mxu1  ;;  %3327 = vmax.xlane.f32.xlu1 %v3326_v55 }
 0xc20   :  { %v3322_v57 = vpop.f32.mrf.mxu1 }
 0xc22   :  { %v7578_v58 = vpop.f32.mrf.mxu1 }
 0xc24   :  { %v3430_v59 = vpop.f32.mrf.mxu1 }
 0xc25   :  { %v3436_v22 = vsel %vm3325_vm7, %v3430_v59, -inf }
 0xc26   :  { %v7589_v60 = vpop.f32.mrf.mxu1  ;;  %3437 = vmax.xlane.f32.xlu0 %v3436_v22 }
 0xc28   :  { %v3433_v61 = vpop.f32.mrf.mxu1 }
 0xc2a   :  { %v7590_v62 = vpop.f32.mrf.mxu1 }
 0xc2c   :  { %v3540_v14 = vpop.f32.mrf.mxu1 }
 0xc2d   :  { %v3546_v2 = vsel %vm3325_vm7, %v3540_v14, -inf }
 0xc2e   :  { %v7601_v24 = vpop.f32.mrf.mxu1  ;;  %3547 = vmax.xlane.f32.xlu0 %v3546_v2 }
 0xc30   :  { %v3543_v29 = vpop.f32.mrf.mxu1 }
 0xc32   :  { %v7602_v4 = vpop.f32.mrf.mxu1 }
 0xc34   :  { %v3650_v36 = vpop.f32.mrf.mxu1 }
 0xc35   :  { %v3656_v6 = vsel %vm3325_vm7, %v3650_v36, -inf }
 0xc36   :  { %v7613_v3 = vpop.f32.mrf.mxu1  ;;  %3657 = vmax.xlane.f32.xlu1 %v3656_v6 }
 0xc38   :  { %v3653_v7 = vpop.f32.mrf.mxu1 }
 0xc3a   :  { %v7614_v5 = vpop.f32.mrf.mxu1 }
 0xc3c   :  { %v3779_v9 = vpop.f32.mrf.mxu1 }
 0xc3d   :  { %v3785_v26 = vsel %vm3325_vm7, %v3779_v9, -inf }
 0xc3e   :  { %3786 = vmax.xlane.f32.xlu0 %v3785_v26  ;;  %v7625_v11 = vpop.f32.mrf.mxu1 }
 0xc40   :  { %v3782_v12 = vpop.f32.mrf.mxu1 }
 0xc42   :  { %v7626_v13 = vpop.f32.mrf.mxu1 }
 0xc44   :  { %v9120_v15 = vpop.f32.mrf.mxu1 }
 0xc45   :  { %v3895_v18 = vsel %vm3325_vm7, %v9120_v15, -inf }
 0xc46   :  { %3896 = vmax.xlane.f32.xlu1 %v3895_v18  ;;  %v7637_v23 = vpop.f32.mrf.mxu1 }
 0xc48   :  { %v3892_v25 = vpop.f32.mrf.mxu1 }
 0xc4a   :  { %v7638_v47 = vpop.f32.mrf.mxu1 }
 0xc4c   :  { %v3999_v27 = vpop.f32.mrf.mxu1 }
 0xc4d   :  { %v4005_v30 = vsel %vm3325_vm7, %v3999_v27, -inf }
 0xc4e   :  { %4006 = vmax.xlane.f32.xlu0 %v4005_v30  ;;  %v7649_v31 = vpop.f32.mrf.mxu1 }
 0xc50   :  { %v4002_v32 = vpop.f32.mrf.mxu1 }
 0xc52   :  { %v7650_v33 = vpop.f32.mrf.mxu1 }
 0xc54   :  { %v9125_v38 = vpop.f32.mrf.mxu1 }
 0xc55   :  { %v4115_v41 = vsel %vm3325_vm7, %v9125_v38, -inf }
 0xc56   :  { %v7661_v52 = vpop.f32.mrf.mxu1 }
 0xc57   :  { %3448 = vrot.lane.b32.xlu1 %v9047_v28, %s8094_s18 }
 0xc58   :  { %v4112_v39 = vpop.f32.mrf.mxu1 }
 0xc5a   :  { %v7662_v40 = vpop.f32.mrf.mxu1 }
 0xc64   :  { %3338 = vrot.lane.b32.xlu0 %v9047_v28, %s8095_s19 }
 0xc7b   :  { %4116 = vmax.xlane.f32.xlu1 %v4115_v41 }
 0xc8c   :  { %3558 = vrot.lane.b32.xlu1 %v9047_v28, %s8096_s20 }
 0xca7   :  { %v3328_v42 = vpop.xlane.xlu1 %3327 }
 0xca8   :  { %v3329_v44 = vsub.f32 %v3319_v17, %v3328_v42 }
 0xcaa   :  { %v3330_v10 = vmul.f32 1.442695, %v3329_v44 }
 0xcac   :  { %8025 = vpow2.f32 %v3330_v10 }
 0xcaf   :  { %v3438_v45 = vpop.xlane.xlu0 %3437 }
 0xcb0   :  { %v3439_v37 = vsub.f32 %v3430_v59, %v3438_v45 }
 0xcb2   :  { %v3440_v46 = vmul.f32 1.442695, %v3439_v37 }
 0xcb4   :  { %8027 = vpow2.f32 %v3440_v46 }
 0xcb7   :  { %v3548_v34 = vpop.xlane.xlu0 %3547 }
 0xcb8   :  { %v3549_v53 = vsub.f32 %v3540_v14, %v3548_v34 }
 0xcb9   :  { %v8026_v35 = vpop.eup %8025 }
 0xcba   :  { %v3550_v16 = vmul.f32 1.442695, %v3549_v53  ;;  %v3332_v54 = vsel %vm3325_vm7, %v8026_v35, 0.0 }
 0xcbb   :  { %3333 = vadd.xlane.f32.xlu0 %v3332_v54 }
 0xcbc   :  { %8029 = vpow2.f32 %v3550_v16 }
 0xcbf   :  { %v3658_v55 = vpop.xlane.xlu1 %3657 }
 0xcc0   :  { %v3659_v56 = vsub.f32 %v3650_v36, %v3658_v55 }
 0xcc1   :  { %v9136_v57 = vpop.eup %8027 }
 0xcc2   :  { %v3660_v58 = vmul.f32 1.442695, %v3659_v56  ;;  %v3442_v17 = vsel %vm3325_vm7, %v9136_v57, 0.0 }
 0xcc3   :  { %3443 = vadd.xlane.f32.xlu1 %v3442_v17 }
 0xcc4   :  { %8031 = vpow2.f32 %v3660_v58 }
 0xcc7   :  { %v3787_v59 = vpop.xlane.xlu0 %3786 }
 0xcc8   :  { %v3788_v22 = vsub.f32 %v3779_v9, %v3787_v59 }
 0xcc9   :  { %v9140_v60 = vpop.eup %8029 }
 0xcca   :  { %v3789_v61 = vmul.f32 1.442695, %v3788_v22  ;;  %v3552_v62 = vsel %vm3325_vm7, %v9140_v60, 0.0 }
 0xccb   :  { %3553 = vadd.xlane.f32.xlu0 %v3552_v62 }
 0xccc   :  { %8033 = vpow2.f32 %v3789_v61 }
 0xccf   :  { %v3897_v5 = vpop.xlane.xlu1 %3896 }
 0xcd0   :  { %v3898_v9 = vsub.f32 %v9120_v15, %v3897_v5 }
 0xcd1   :  { %v9144_v14 = vpop.eup %8031 }
 0xcd2   :  { %v3662_v2 = vsel %vm3325_vm7, %v9144_v14, 0.0  ;;  %v3899_v12 = vmul.f32 1.442695, %v3898_v9 }
 0xcd3   :  { %3663 = vadd.xlane.f32.xlu1 %v3662_v2  ;;  %v3449_v23 = vpop.permute.xlu1 %3448 }
 0xcd4   :  { %v3454_v40 = vsel %vm167_vm3, %v3449_v23, 0 }
 0xcd7   :  { %v4007_v24 = vpop.xlane.xlu0 %4006 }
 0xcd8   :  { %v4008_v29 = vsub.f32 %v3999_v27, %v4007_v24 }
 0xcd9   :  { %v9148_v4 = vpop.eup %8033 }
 0xcda   :  { %v4009_v36 = vmul.f32 1.442695, %v4008_v29  ;;  %v3791_v6 = vsel %vm3325_vm7, %v9148_v4, 0.0 }
 0xcdb   :  { %v3339_v3 = vpop.permute.xlu0 %3338  ;;  %3792 = vadd.xlane.f32.xlu1 %v3791_v6 }
 0xcdc   :  { %8035 = vpow2.f32 %v4009_v36  ;;  %v3344_v7 = vsel %vm167_vm3, %v3339_v3, 0 }
 0xcdd   :  { %7580 = vmatpush3.bf16.msra.mxu0 %v3344_v7  ;;  %8037 = vpow2.f32 %v3899_v12 }
 0xcde   :  { %7591 = vmatprep.subr.bf16.mxu0 %v8085_v1 }
 0xce1   :  { %3668 = vrot.lane.b32.xlu0 %v9047_v28, %s8097_s21 }
 0xce9   :  { %v9157_v26 = vpop.eup %8035 }
 0xcea   :  { %v4011_v11 = vsel %vm3325_vm7, %v9157_v26, 0.0  ;;  %v9161_v13 = vpop.eup %8037 }
 0xceb   :  { %4012 = vadd.xlane.f32.xlu1 %v4011_v11  ;;  %v3901_v18 = vsel %vm3325_vm7, %v9161_v13, 0.0 }
 0xd00   :  { %3902 = vadd.xlane.f32.xlu0 %v3901_v18 }
 0xd04   :  { %v4117_v25 = vpop.xlane.xlu1 %4116 }
 0xd05   :  { %v4118_v28 = vsub.f32 %v9125_v38, %v4117_v25 }
 0xd07   :  { %v4119_v47 = vmul.f32 1.442695, %v4118_v28 }
 0xd08   :  { %v3559_v31 = vpop.permute.xlu1 %3558 }
 0xd09   :  { %8039 = vpow2.f32 %v4119_v47  ;;  %v3564_v10 = vsel %vm167_vm3, %v3559_v31, 0 }
 0xd16   :  { %v9166_v15 = vpop.eup %8039  ;;  %3907 = vrot.lane.b32.xlu0 %v9057_v19, %s8094_s18 }
 0xd17   :  { %v4121_v27 = vsel %vm3325_vm7, %v9166_v15, 0.0 }
 0xd18   :  { %4122 = vadd.xlane.f32.xlu1 %v4121_v27 }
 0xd1a   :  { %4017 = vrot.lane.b32.xlu0 %v9057_v19, %s8096_s20 }
 0xd1e   :  { %4127 = vrot.lane.b32.xlu0 %v9057_v19, %s8097_s21 }
 0xd29   :  { %3797 = vrot.lane.b32.xlu1 %v9057_v19, %s8095_s19 }
 0xd44   :  { %v3334_v30 = vpop.xlane.xlu0 %3333 }
 0xd45   :  { %8041 = vrcp.f32 %v3334_v30 }
 0xd4c   :  { %v3444_v32 = vpop.xlane.xlu1 %3443 }
 0xd4d   :  { %8043 = vrcp.f32 %v3444_v32 }
 0xd52   :  { %v8042_v33 = vpop.eup %8041 }
 0xd53   :  { %v3336_v38 = vmul.f32 %v8042_v33, %v8026_v35 }
 0xd54   :  { %v3554_v52 = vpop.xlane.xlu0 %3553 }
 0xd55   :  { %8045 = vrcp.f32 %v3554_v52  ;;  %v3337_v39 = vpack.c.bf16 %v3336_v38, %v3336_v38 }
 0xd57   :  { %7582 = vmatmul.mubr.msk.bf16.vlgmr.msra.gmra.mxu0 %vm103_vm2, %v3337_v39 }
 0xd58   :  { %7592 = vmatpush3.bf16.msra.mxu0 %v3454_v40  ;;  %7593 = vmatprep.mubr.msk.bf16.mxu0 %vm8086_vm0, %v8085_v1  ;;  %v3669_v46 = vpop.permute.xlu0 %3668 }
 0xd59   :  { %7603 = vmatprep.subr.bf16.mxu0 %v8085_v1  ;;  %v3674_v53 = vsel %vm167_vm3, %v3669_v46, 0  ;;  %v7855_v46 = vld [vmem:[%s9846_s2 + $0x18] sm:$0xff]  }
 0xd5a   :  { %v8044_v19 = vpop.eup %8043  ;;  %7670 = vmatpush3.bf16.msra.mxu1 %v7855_v46  ;;  %v6572_v46 = vld [vmem:[%s9847_s3 + $0x148] sm:$0xff] }
 0xd5b   :  { %v3446_v41 = vmul.f32 %v8044_v19, %v9136_v57  ;;  %7671 = vmatprep.subr.bf16.mxu1 %v8085_v1 }
 0xd5c   :  { %v3664_v42 = vpop.xlane.xlu1 %3663 }
 0xd5d   :  { %8047 = vrcp.f32 %v3664_v42  ;;  %v3447_v44 = vpack.c.bf16 %v3446_v41, %v3446_v41 }
 0xd5f   :  { %7594 = vmatmul.mubr.msk.bf16.vlgmr.msra.gmra.mxu0 %vm103_vm2, %v3447_v44 }
 0xd60   :  { %7604 = vmatpush3.bf16.msra.mxu0 %v3564_v10  ;;  %7605 = vmatprep.mubr.msk.bf16.mxu0 %vm8086_vm0, %v8085_v1 }
 0xd61   :  { %7615 = vmatprep.subr.bf16.mxu0 %v8085_v1 }
 0xd62   :  { %v8046_v45 = vpop.eup %8045 }
 0xd63   :  { %v3556_v37 = vmul.f32 %v8046_v45, %v9140_v60 }
 0xd64   :  { %v3793_v55 = vpop.xlane.xlu1 %3792 }
 0xd65   :  { %v3557_v34 = vpack.c.bf16 %v3556_v37, %v3556_v37  ;;  %8049 = vrcp.f32 %v3793_v55 }
 0xd67   :  { %7606 = vmatmul.mubr.msk.bf16.vlgmr.msra.gmra.mxu0 %vm103_vm2, %v3557_v34 }
 0xd68   :  { %7616 = vmatpush3.bf16.msra.mxu0 %v3674_v53  ;;  %7617 = vmatprep.mubr.msk.bf16.mxu0 %vm8086_vm0, %v8085_v1 }
 0xd69   :  { %7627 = vmatprep.subr.bf16.mxu0 %v8085_v1 }
 0xd6a   :  { %v8048_v35 = vpop.eup %8047 }
 0xd6b   :  { %v3666_v16 = vmul.f32 %v8048_v35, %v9144_v14  ;;  %v7856_v35 = vld [vmem:[%s9846_s2 + $0x10] sm:$0xff]  }
 0xd6c   :  { %7672 = vmatpush3.bf16.msra.mxu1 %v7856_v35 }
 0xd6d   :  { %v3667_v54 = vpack.c.bf16 %v3666_v16, %v3666_v16 }
 0xd6f   :  { %7618 = vmatmul.mubr.msk.bf16.vlgmr.msra.gmra.mxu0 %vm103_vm2, %v3667_v54 }
 0xd70   :  { %7629 = vmatprep.mubr.msk.bf16.mxu0 %vm8086_vm0, %v8085_v1 }
 0xd72   :  { %v8050_v58 = vpop.eup %8049 }
 0xd73   :  { %v3795_v59 = vmul.f32 %v8050_v58, %v9148_v4 }
 0xd74   :  { %v4013_v57 = vpop.xlane.xlu1 %4012 }
 0xd75   :  { %v3796_v62 = vpack.c.bf16 %v3795_v59, %v3795_v59 }
 0xd89   :  { %v3903_v56 = vpop.xlane.xlu0 %3902 }
 0xd8a   :  { %8051 = vrcp.f32 %v3903_v56 }
 0xd8b   :  { %8053 = vrcp.f32 %v4013_v57 }
 0xd8d   :  { %v3908_v61 = vpop.permute.xlu0 %3907 }
 0xd8e   :  { %v3913_v2 = vsel %vm167_vm3, %v3908_v61, 0 }
 0xd91   :  { %v4018_v29 = vpop.permute.xlu0 %4017 }
 0xd92   :  { %v4023_v6 = vsel %vm167_vm3, %v4018_v29, 0 }
 0xd95   :  { %v4128_v7 = vpop.permute.xlu0 %4127 }
 0xd96   :  { %v4133_v11 = vsel %vm167_vm3, %v4128_v7, 0 }
 0xd97   :  { %v8052_v14 = vpop.eup %8051 }
 0xd98   :  { %v3905_v24 = vmul.f32 %v8052_v14, %v9161_v13  ;;  %v8054_v36 = vpop.eup %8053 }
 0xd99   :  { %v4015_v3 = vmul.f32 %v8054_v36, %v9157_v26 }
 0xd9a   :  { %v3906_v4 = vpack.c.bf16 %v3905_v24, %v3905_v24 }
 0xd9b   :  { %v4016_v5 = vpack.c.bf16 %v4015_v3, %v4015_v3 }
 0xda1   :  { %v4123_v17 = vpop.xlane.xlu1 %4122 }
 0xda2   :  { %8055 = vrcp.f32 %v4123_v17 }
 0xda5   :  { %v3798_v22 = vpop.permute.xlu1 %3797 }
 0xda6   :  { %v3803_v60 = vsel %vm167_vm3, %v3798_v22, 0 }
 0xda7   :  { %7628 = vmatpush3.bf16.msra.mxu0 %v3803_v60 }
 0xda8   :  { %7639 = vmatprep.subr.bf16.mxu0 %v8085_v1 }
 0xdaa   :  { %7630 = vmatmul.mubr.msk.bf16.vlgmr.msra.gmra.mxu0 %vm103_vm2, %v3796_v62 }
 0xdab   :  { %7640 = vmatpush3.bf16.msra.mxu0 %v3913_v2  ;;  %7641 = vmatprep.mubr.msk.bf16.mxu0 %vm8086_vm0, %v8085_v1 }
 0xdac   :  { %7651 = vmatprep.subr.bf16.mxu0 %v8085_v1 }
 0xdaf   :  { %v8056_v9 = vpop.eup %8055 }
 0xdb0   :  { %v4125_v12 = vmul.f32 %v8056_v9, %v9166_v15 }
 0xdb2   :  { %7642 = vmatmul.mubr.msk.bf16.vlgmr.msra.gmra.mxu0 %vm103_vm2, %v3906_v4  ;;  %v4126_v13 = vpack.c.bf16 %v4125_v12, %v4125_v12 }
 0xdb3   :  { %7652 = vmatpush3.bf16.msra.mxu0 %v4023_v6  ;;  %7653 = vmatprep.mubr.msk.bf16.mxu0 %vm8086_vm0, %v8085_v1 }
 0xdb4   :  { %7663 = vmatprep.subr.bf16.mxu0 %v8085_v1 }
 0xdba   :  { %7654 = vmatmul.mubr.msk.bf16.vlgmr.msra.gmra.mxu0 %vm103_vm2, %v4016_v5 }
 0xdbb   :  { %7664 = vmatpush3.bf16.msra.mxu0 %v4133_v11  ;;  %7665 = vmatprep.mubr.msk.bf16.mxu0 %vm8086_vm0, %v8085_v1 }
 0xdc2   :  { %7666 = vmatmul.mubr.msk.bf16.vlgmr.msra.gmra.mxu0 %vm103_vm2, %v4126_v13  ;;  %v6553_v13 = vld [vmem:[%s9850_s6 + $0x8] ss:$0 sm:$0xff] }
 0xdc3   :  { %4601 = vmatprep.mubr.bf16.mxu0 %v8101_v8 }
 0xe17   :  { %v3380_v18 = vpop.f32.mrf.mxu0 }
 0xe19   :  { %v7583_v26 = vpop.f32.mrf.mxu0 }
 0xe1b   :  { %v3383_v23 = vpop.f32.mrf.mxu0 }
 0xe1d   :  { %v7584_v25 = vpop.f32.mrf.mxu0 }
 0xe1f   :  { %v3490_v28 = vpop.f32.mrf.mxu0 }
 0xe21   :  { %v7595_v47 = vpop.f32.mrf.mxu0 }
 0xe23   :  { %v3493_v27 = vpop.f32.mrf.mxu0 }
 0xe25   :  { %v7596_v30 = vpop.f32.mrf.mxu0 }
 0xe27   :  { %v3600_v31 = vpop.f32.mrf.mxu0 }
 0xe29   :  { %v7607_v32 = vpop.f32.mrf.mxu0 }
 0xe2b   :  { %v3603_v33 = vpop.f32.mrf.mxu0 }
 0xe2d   :  { %v7608_v38 = vpop.f32.mrf.mxu0 }
 0xe2f   :  { %v3710_v52 = vpop.f32.mrf.mxu0 }
 0xe31   :  { %v7619_v39 = vpop.f32.mrf.mxu0 }
 0xe32   :  { %v6580_v39 = vld [vmem:[%s9847_s3 + $0x188] sm:$0xff] }
 0xe33   :  { %v3713_v15 = vpop.f32.mrf.mxu0 }
 0xe35   :  { %v7620_v40 = vpop.f32.mrf.mxu0 }
 0xe36   :  { %v6588_v40 = vld [vmem:[%s9847_s3 + $0x1c8] sm:$0xff] }
 0xe6a   :  { %v3839_v19 = vpop.f32.mrf.mxu0 }
 0xe6c   :  { %v7631_v41 = vpop.f32.mrf.mxu0 }
 0xe6d   :  { %v6613_v41 = vcombine.low %v6580_v39, %v6588_v40 }
 0xe6e   :  { %v3842_v42 = vpop.f32.mrf.mxu0 }
 0xe6f   :  { %v6614_v42 = vcombine.high %v6580_v39, %v6588_v40  ;;  %v6593_v39 = vld [vmem:[%s9847_s3 + $0x1f0] sm:$0xff]  ;;  %v6594_v40 = vld [vmem:[%s9847_s3 + $0x1f8] sm:$0xff] }
 0xe70   :  { %v7632_v44 = vpop.f32.mrf.mxu0 }
 0xe71   :  { %4622 = vmatprep.subr.bf16.mxu1 %v6614_v42  ;;  %v6563_v44 = vld [vmem:[%s9847_s3 + $0x100] sm:$0xff] }
 0xe72   :  { %v3949_v10 = vpop.f32.mrf.mxu0 }
 0xe73   :  { %v7711_v45 = vpack.i.bf16 %v3490_v28, %v3949_v10  ;;  %v6571_v10 = vld [vmem:[%s9847_s3 + $0x140] sm:$0xff] }
 0xe74   :  { %v7643_v37 = vpop.f32.mrf.mxu0 }
 0xe75   :  { %7712 = vrot.lane.b32.xlu1 %v7711_v45, %s8098_s24  ;;  %v6564_v45 = vld [vmem:[%s9847_s3 + $0x108] sm:$0xff]  ;;  %v6596_v37 = vcombine.high %v6563_v44, %v6571_v10 }
 0xe76   :  { %v3952_v34 = vpop.f32.mrf.mxu0  ;;  %v6598_v35 = vcombine.high %v6564_v45, %v6572_v46 }
 0xe77   :  { %v6595_v34 = vcombine.low %v6563_v44, %v6571_v10  ;;  %v6569_v10 = vld [vmem:[%s9847_s3 + $0x130] sm:$0xff] }
 0xe78   :  { %v7644_v53 = vpop.f32.mrf.mxu0 }
 0xe79   :  { %v6597_v53 = vcombine.low %v6564_v45, %v6572_v46  ;;  %v6577_v45 = vld [vmem:[%s9847_s3 + $0x170] sm:$0xff]  ;;  %v6578_v46 = vld [vmem:[%s9847_s3 + $0x178] sm:$0xff] }
 0xe7a   :  { %v4059_v16 = vpop.f32.mrf.mxu0 }
 0xe7b   :  { %v7716_v54 = vpack.i.bf16 %v3600_v31, %v4059_v16  ;;  %v6581_v16 = vld [vmem:[%s9847_s3 + $0x190] sm:$0xff] }
 0xe7c   :  { %v7655_v55 = vpop.f32.mrf.mxu0 }
 0xe7d   :  { %7717 = vrot.lane.b32.xlu0 %v7716_v54, %s8099_s27  ;;  %v6589_v54 = vld [vmem:[%s9847_s3 + $0x1d0] sm:$0xff]  ;;  %v6582_v55 = vld [vmem:[%s9847_s3 + $0x198] sm:$0xff] }
 0xe7e   :  { %v4062_v56 = vpop.f32.mrf.mxu0 }
 0xe7f   :  { %v6615_v56 = vcombine.low %v6581_v16, %v6589_v54 }
 0xe80   :  { %v7656_v57 = vpop.f32.mrf.mxu0 }
 0xe81   :  { %3725 = vrot.lane.b32.xlu0 %v3710_v52, %s8100_s28  ;;  %v6579_v52 = vld [vmem:[%s9847_s3 + $0x180] sm:$0xff]  ;;  %v6616_v57 = vcombine.high %v6581_v16, %v6589_v54  ;;  %v6607_v54 = vcombine.low %v6569_v10, %v6577_v45 }
 0xe82   :  { %v4169_v58 = vpop.f32.mrf.mxu0 }
 0xe83   :  { %4184 = vrot.lane.b32.xlu1 %v4169_v58, %s8100_s28  ;;  %v6590_v58 = vld [vmem:[%s9847_s3 + $0x1d8] sm:$0xff] }
 0xe84   :  { %v7667_v17 = vpop.f32.mrf.mxu0 }
 0xe85   :  { %v6617_v17 = vcombine.low %v6582_v55, %v6590_v58 }
 0xe86   :  { %v4172_v1 = vpop.f32.mrf.mxu0 }
 0xe87   :  { %v6618_v1 = vcombine.high %v6582_v55, %v6590_v58  ;;  %v7859_v58 = vld [vmem:[%s9848_s4 + $0x438] sm:$0xff]  }
 0xe88   :  { %v7668_v59 = vpop.f32.mrf.mxu0 }
 0xee7   :  { %v7713_v22 = vpop.permute.xlu1 %7712 }
 0xee8   :  { %v7715_v61 = vunpack.i.h.bf16 %v7713_v22  ;;  %v7714_v62 = vunpack.i.l.bf16 %v7713_v22 }
 0xeea   :  { %v3728_v24 = vsel %vm103_vm2, %v3380_v18, %v7715_v61  ;;  %v4187_v29 = vsel %vm103_vm2, %v3839_v19, %v7714_v62  ;;  %v6559_v62 = vld [vmem:[%s9850_s6 + $0x9] ss:$0 sm:$0xff] }
 0xeef   :  { %v7718_v60 = vpop.permute.xlu0 %7717 }
 0xef0   :  { %v7720_v14 = vunpack.i.h.bf16 %v7718_v60  ;;  %v7719_v2 = vunpack.i.l.bf16 %v7718_v60 }
 0xef2   :  { %v3729_v36 = vsel %vm554_vm4, %v3728_v24, %v7720_v14  ;;  %v4188_v6 = vsel %vm554_vm4, %v4187_v29, %v7719_v2  ;;  %v6560_v2 = vld [vmem:[%s9850_s6 + $0xa] ss:$0 sm:$0xff]  ;;  %v6565_v29 = vld [vmem:[%s9847_s3 + $0x110] sm:$0xff] }
 0xef3   :  { %v3726_v4 = vpop.permute.xlu0 %3725 }
 0xef4   :  { %v3730_v9 = vsel %vm556_vm5, %v3729_v36, %v3726_v4  ;;  %v6573_v4 = vld [vmem:[%s9847_s3 + $0x150] sm:$0xff]  ;;  %v6566_v36 = vld [vmem:[%s9847_s3 + $0x118] sm:$0xff] }
 0xef5   :  { %v4185_v3 = vpop.permute.xlu1 %4184 }
 0xef6   :  { %v4189_v7 = vsel %vm556_vm5, %v4188_v6, %v4185_v3  ;;  %v6574_v6 = vld [vmem:[%s9847_s3 + $0x158] sm:$0xff] }
 0xef7   :  { %v4191_v5 = vrot.slane %v4189_v7, 7 }
 0xef9   :  { %v4193_v11 = vsel %vm3269_vm6, %v3730_v9, %v4191_v5  ;;  %v6600_v5 = vcombine.high %v6565_v29, %v6573_v4  ;;  %v6602_v9 = vcombine.high %v6566_v36, %v6574_v6 }
 0xefa   :  { %v4194_v12 = vpack.c.bf16 %v4193_v11, %v4193_v11  ;;  %v6583_v11 = vld [vmem:[%s9847_s3 + $0x1a0] sm:$0xff] }
 0xefc   :  { %7674 = vmatmul.mubr.msk.bf16.vlgmr.msra.gmra.mxu1 %vm54_vm1, %v4194_v12  ;;  %v6591_v12 = vld [vmem:[%s9847_s3 + $0x1e0] sm:$0xff] }
 0xefd   :  { %4642 = vmatprep.mubr.bf16.mxu1 %v8101_v8  ;;  %4623 = vmatpush1.bf16.msra.mxu1 %v6613_v41 }
 0xefe   :  { %4624 = vmatprep.subr.bf16.mxu1 %v6598_v35  ;;  %v6608_v35 = vcombine.high %v6569_v10, %v6577_v45 }
 0xf01   :  { %4625 = vmatpush1.bf16.msra.mxu1 %v6597_v53 }
 0xf02   :  { %4704 = vmatprep.subr.bf16.mxu1 %v6618_v1  ;;  %v7861_v1 = vld [vmem:[%s9848_s4 + $0x470] sm:$0xff]  }
 0xfbc   :  { %v4255_v18 = vpop.f32.mrf.mxu1 }
 0xfbd   :  { %v4256_v26 = vadd.f32 %v6553_v13, %v4255_v18  ;;  %v6584_v13 = vld [vmem:[%s9847_s3 + $0x1a8] sm:$0xff] }
 0xfbe   :  { %v7675_v23 = vpop.f32.mrf.mxu1  ;;  %v6592_v18 = vld [vmem:[%s9847_s3 + $0x1e8] sm:$0xff] }
 0xfbf   :  { %v4261_v25 = vadd.f32 %v4256_v26, %v9040_v43  ;;  %v6587_v43 = vld [vmem:[%s9847_s3 + $0x1c0] sm:$0xff]  ;;  %v6599_v26 = vcombine.low %v6565_v29, %v6573_v4  ;;  %v6601_v23 = vcombine.low %v6566_v36, %v6574_v6  ;;  %v7873_v36 = vld [vmem:[%s9848_s4 + $0x458] sm:$0xff]  }
 0xfc0   :  { %v4258_v28 = vpop.f32.mrf.mxu1  ;;  %v6612_v15 = vcombine.high %v6579_v52, %v6587_v43  ;;  %v6611_v19 = vcombine.low %v6579_v52, %v6587_v43  ;;  %v6585_v43 = vld [vmem:[%s9847_s3 + $0x1b0] sm:$0xff]  ;;  %v7871_v29 = vld [vmem:[%s9848_s4 + $0x420] sm:$0xff]   ;;  %v7874_v6 = vld [vmem:[%s9848_s4 + $0x4d8] sm:$0xff]  }
 0xfc1   :  { %v4265_v47 = vsel %vm4264_vm8, %v4261_v25, 0.0  ;;  %v6622_v28 = vcombine.high %v6584_v13, %v6592_v18  ;;  %v6624_v42 = vcombine.high %v6585_v43, %v6593_v39  ;;  %v7872_v4 = vld [vmem:[%s9848_s4 + $0x4a0] sm:$0xff]  }
 0xfc2   :  { %4266 = vadd.xlane.f32.xlu1 %v4265_v47  ;;  %v7676_v27 = vpop.f32.mrf.mxu1  ;;  %4581 = vmatprep.subr.bf16.mxu0 %v6612_v15  ;;  %v6567_v47 = vld [vmem:[%s9847_s3 + $0x120] sm:$0xff]  ;;  %v6586_v15 = vld [vmem:[%s9847_s3 + $0x1b8] sm:$0xff] }
 0xfc3   :  { %4582 = vmatpush1.bf16.msra.mxu0 %v6611_v19  ;;  %v6575_v27 = vld [vmem:[%s9847_s3 + $0x160] sm:$0xff]  ;;  %v6626_v44 = vcombine.high %v6586_v15, %v6594_v40  ;;  %v6625_v53 = vcombine.low %v6586_v15, %v6594_v40 }
 0xfc4   :  { %4583 = vmatprep.subr.bf16.mxu0 %v6596_v37  ;;  %v6603_v19 = vcombine.low %v6567_v47, %v6575_v27  ;;  %v6570_v37 = vld [vmem:[%s9847_s3 + $0x138] sm:$0xff] }
 0xfc5   :  { %v6610_v16 = vcombine.high %v6570_v37, %v6578_v46  ;;  %v6609_v55 = vcombine.low %v6570_v37, %v6578_v46 }
 0xfc7   :  { %4584 = vmatpush1.bf16.msra.mxu0 %v6595_v34  ;;  %v6623_v34 = vcombine.low %v6585_v43, %v6593_v39 }
 0xfc8   :  { %4663 = vmatprep.subr.bf16.mxu0 %v6616_v57  ;;  %v7858_v57 = vld [vmem:[%s9848_s4 + $0x4f8] sm:$0xff]  }
0x104b   :  { %v4267_v30 = vpop.xlane.xlu1 %4266 }
0x104c   :  { %v4268_v31 = vmul.f32 0.03125, %v4267_v30  ;;  %v6568_v30 = vld [vmem:[%s9847_s3 + $0x128] sm:$0xff] }
0x104e   :  { %v4269_v32 = vsub.f32 %v4261_v25, %v4268_v31  ;;  %v6620_v25 = vcombine.high %v6583_v11, %v6591_v12  ;;  %v6576_v31 = vld [vmem:[%s9847_s3 + $0x168] sm:$0xff] }
0x104f   :  { %v6606_v52 = vcombine.high %v6568_v30, %v6576_v31  ;;  %v6605_v41 = vcombine.low %v6568_v30, %v6576_v31  ;;  %v7888_v30 = vld [vmem:[%s9848_s4 + $0x480] sm:$0xff]   ;;  %v7889_v31 = vld [vmem:[%s9848_s4 + $0x578] sm:$0xff]  }
0x1050   :  { %v4270_v33 = vmul.f32 %v4269_v32, %v4269_v32 }
0x1052   :  { %v4271_v38 = vsel %vm4264_vm8, %v4270_v33, 0.0  ;;  %v6621_v33 = vcombine.low %v6584_v13, %v6592_v18  ;;  %v7880_v13 = vld [vmem:[%s9848_s4 + $0x490] sm:$0xff]   ;;  %v7881_v18 = vld [vmem:[%s9848_s4 + $0x448] sm:$0xff]  }
0x1053   :  { %4272 = vadd.xlane.f32.xlu0 %v4271_v38  ;;  %v6604_v38 = vcombine.high %v6567_v47, %v6575_v27  ;;  %v7886_v47 = vld [vmem:[%s9848_s4 + $0x4c0] sm:$0xff]  }
0x1054   :  { %v7887_v27 = vld [vmem:[%s9848_s4 + $0x400] sm:$0xff]  }
0x10dc   :  { %v4273_v59 = vpop.xlane.xlu0 %4272 }
0x10dd   :  { %v4274_v22 = vmul.f32 0.03125, %v4273_v59  ;;  %v7863_v59 = vld [vmem:[%s9848_s4 + $0x430] sm:$0xff]  }
0x10df   :  { %v4275_v60 = vadd.f32 1e-05, %v4274_v22  ;;  %v7864_v22 = vld [vmem:[%s9848_s4 + $0x4b0] sm:$0xff]  }
0x10e1   :  { %8057 = vrsqrt.f32 %v4275_v60  ;;  %v7865_v60 = vld [vmem:[%s9848_s4 + $0x468] sm:$0xff]  }
0x10ee   :  { %v8058_v61 = vpop.eup %8057 }
0x10ef   :  { %v4277_v14 = vmul.f32 %v8058_v61, %v4269_v32  ;;  %v6619_v32 = vcombine.low %v6583_v11, %v6591_v12  ;;  %v7866_v61 = vld [vmem:[%s9848_s4 + $0x4e8] sm:$0xff]   ;;  %v7878_v11 = vld [vmem:[%s9848_s4 + $0x4d0] sm:$0xff]  }
0x10f0   :  { %v7879_v12 = vld [vmem:[%s9848_s4 + $0x410] sm:$0xff]  }
0x10f1   :  { %v4282_v24 = vmul.f32 %v6559_v62, %v4277_v14  ;;  %v7867_v62 = vld [vmem:[%s9848_s4 + $0x428] sm:$0xff]  }
0x10f2   :  { %v7868_v14 = vld [vmem:[%s9848_s4 + $0x4a8] sm:$0xff]  }
0x10f3   :  { %v9301_v3 = vadd.f32 %v6560_v2, %v4282_v24  ;;  %v7869_v2 = vld [vmem:[%s9848_s4 + $0x460] sm:$0xff]  }
0x10f4   :  { %v7870_v24 = vld [vmem:[%s9848_s4 + $0x4e0] sm:$0xff]  }
0x10f5   :  { %v9305_v7 = vpack.c.bf16 %v9301_v3, %v9301_v3 }
0x10f7   :  { %6627 = vmatmul.mubr.msk.bf16.vlgmr.msra.gmra.mxu0 %vm54_vm1, %v9305_v7  ;;  %6628 = vmatmul.mubr.msk.bf16.vlgmr.msra.gmra.mxu1 %vm54_vm1, %v9305_v7 }
0x10f8   :  { %4664 = vmatpush1.bf16.msra.mxu0 %v6615_v56  ;;  %4705 = vmatpush1.bf16.msra.mxu1 %v6617_v17  ;;  %v7857_v56 = vld [vmem:[%s9848_s4 + $0x478] sm:$0xff]  }
0x10f9   :  { %4665 = vmatprep.subr.bf16.mxu0 %v6600_v5  ;;  %4706 = vmatprep.subr.bf16.mxu1 %v6602_v9  ;;  %v7860_v17 = vld [vmem:[%s9848_s4 + $0x4b8] sm:$0xff]   ;;  %v7877_v9 = vld [vmem:[%s9848_s4 + $0x450] sm:$0xff]  }
0x10fa   :  { %4683 = vmatprep.mubr.bf16.mxu0 %v8101_v8  ;;  %4724 = vmatprep.mubr.bf16.mxu1 %v8101_v8  ;;  %v7876_v5 = vld [vmem:[%s9848_s4 + $0x498] sm:$0xff]  }
0x10fc   :  { %4666 = vmatpush1.bf16.msra.mxu0 %v6599_v26  ;;  %4707 = vmatpush1.bf16.msra.mxu1 %v6601_v23  ;;  %v7882_v26 = vld [vmem:[%s9848_s4 + $0x4c8] sm:$0xff]  }
0x10fd   :  { %4745 = vmatprep.subr.bf16.mxu0 %v6620_v25  ;;  %4786 = vmatprep.subr.bf16.mxu1 %v6622_v28  ;;  %v7883_v23 = vld [vmem:[%s9848_s4 + $0x408] sm:$0xff]   ;;  %v7885_v28 = vld [vmem:[%s9848_s4 + $0x440] sm:$0xff]  }
0x10fe   :  { %v7884_v25 = vld [vmem:[%s9848_s4 + $0x488] sm:$0xff]  }
0x10ff   :  { %6629 = vmatmul.mubr.msk.bf16.vlgmr.msra.gmra.mxu0 %vm54_vm1, %v9305_v7  ;;  %6630 = vmatmul.mubr.msk.bf16.vlgmr.msra.gmra.mxu1 %vm54_vm1, %v9305_v7 }
0x1100   :  { %4746 = vmatpush1.bf16.msra.mxu0 %v6619_v32  ;;  %4787 = vmatpush1.bf16.msra.mxu1 %v6621_v33  ;;  %v7890_v32 = vld [vmem:[%s9848_s4 + $0x5f8] sm:$0xff]  }
0x1101   :  { %4747 = vmatprep.subr.bf16.mxu0 %v6604_v38  ;;  %4788 = vmatprep.subr.bf16.mxu1 %v6606_v52  ;;  %v9482_v33 = vld [vmem:[%s9849_s5 + $0x11] sm:$0xff] }
0x1102   :  { %4765 = vmatprep.mubr.bf16.mxu0 %v8101_v8  ;;  %4806 = vmatprep.mubr.bf16.mxu1 %v8101_v8  ;;  %v4329_v38 = vrot.slane %v9482_v33, %v8632_v50  ;;  %v4337_v52 = vrot.slane %v9482_v33, %v8635_v51  ;;  %v4333_v43 = vrot.slane %v9482_v33, %v8626_v48 }
0x1103   :  { %v4341_v39 = vrot.slane %v9482_v33, %v8629_v49 }
0x1104   :  { %4748 = vmatpush1.bf16.msra.mxu0 %v6603_v19  ;;  %4789 = vmatpush1.bf16.msra.mxu1 %v6605_v41 }
0x1105   :  { %4827 = vmatprep.subr.bf16.mxu0 %v6624_v42  ;;  %4868 = vmatprep.subr.bf16.mxu1 %v6626_v44 }
0x1107   :  { %6631 = vmatmul.mubr.msk.bf16.vlgmr.msra.gmra.mxu0 %vm54_vm1, %v9305_v7  ;;  %6632 = vmatmul.mubr.msk.bf16.vlgmr.msra.gmra.mxu1 %vm54_vm1, %v9305_v7 }
0x1108   :  { %4828 = vmatpush1.bf16.msra.mxu0 %v6623_v34  ;;  %4869 = vmatpush1.bf16.msra.mxu1 %v6625_v53 }
0x1109   :  { %4829 = vmatprep.subr.bf16.mxu0 %v6608_v35  ;;  %4870 = vmatprep.subr.bf16.mxu1 %v6610_v16 }
0x110a   :  { %4847 = vmatprep.mubr.bf16.mxu0 %v8101_v8  ;;  %4888 = vmatprep.mubr.bf16.mxu1 %v8101_v8  ;;  %v7862_v8 = vld [vmem:[%s9848_s4 + $0x4f0] sm:$0xff]  }
0x110c   :  { %4830 = vmatpush1.bf16.msra.mxu0 %v6607_v54  ;;  %4871 = vmatpush1.bf16.msra.mxu1 %v6609_v55 }
0x110d   :  { %7277 = vmatprep.subr.bf16.mxu0 %v7857_v56  ;;  %7299 = vmatprep.subr.bf16.mxu1 %v7858_v57 }
0x110f   :  { %6633 = vmatmul.mubr.msk.bf16.vlgmr.msra.gmra.mxu0 %vm54_vm1, %v9305_v7  ;;  %6634 = vmatmul.mubr.msk.bf16.vlgmr.msra.gmra.mxu1 %vm54_vm1, %v9305_v7  ;;  %v7875_v7 = vld [vmem:[%s9848_s4 + $0x418] sm:$0xff]  }
0x1110   :  { %7278 = vmatpush3.bf16.msra.mxu0 %v7859_v58  ;;  %7300 = vmatpush3.bf16.msra.mxu1 %v7860_v17  ;;  %v4349_v58 = vrot.slane %v9482_v33, %v8651_v63  ;;  %v4357_v17 = vrot.slane %v9482_v33, %v8654_v0 }
0x1111   :  { %7279 = vmatprep.subr.bf16.mxu0 %v7861_v1  ;;  %7301 = vmatprep.subr.bf16.mxu1 %v7862_v8  ;;  %v7891_v1 = vld [vmem:[%s9848_s4 + $0x538] sm:$0xff]  }
0x1112   :  { %v7892_v8 = vld [vmem:[%s9848_s4 + $0x5b8] sm:$0xff]  }
0x1114   :  { %7280 = vmatpush3.bf16.msra.mxu0 %v7863_v59  ;;  %7302 = vmatpush3.bf16.msra.mxu1 %v7864_v22 }
0x1115   :  { %7281 = vmatprep.subr.bf16.mxu0 %v7865_v60  ;;  %7303 = vmatprep.subr.bf16.mxu1 %v7866_v61 }
0x1118   :  { %7282 = vmatpush3.bf16.msra.mxu0 %v7867_v62  ;;  %7304 = vmatpush3.bf16.msra.mxu1 %v7868_v14  ;;  %v7893_v62 = vld [vmem:[%s9848_s4 + $0x570] sm:$0xff]  }
0x1119   :  { %7283 = vmatprep.subr.bf16.mxu0 %v7869_v2  ;;  %7305 = vmatprep.subr.bf16.mxu1 %v7870_v24  ;;  %v7894_v14 = vld [vmem:[%s9848_s4 + $0x5f0] sm:$0xff]  }
0x111c   :  { %7284 = vmatpush3.bf16.msra.mxu0 %v7871_v29  ;;  %7306 = vmatpush3.bf16.msra.mxu1 %v7872_v4 }
0x111d   :  { %7285 = vmatprep.subr.bf16.mxu0 %v7873_v36  ;;  %7307 = vmatprep.subr.bf16.mxu1 %v7874_v6  ;;  %v7895_v36 = vld [vmem:[%s9848_s4 + $0x530] sm:$0xff]  }
0x111e   :  { %v7896_v6 = vld [vmem:[%s9848_s4 + $0x5b0] sm:$0xff]  }
0x1120   :  { %7286 = vmatpush3.bf16.msra.mxu0 %v7875_v7  ;;  %7308 = vmatpush3.bf16.msra.mxu1 %v7876_v5 }
0x1121   :  { %7287 = vmatprep.subr.bf16.mxu0 %v7877_v9  ;;  %7309 = vmatprep.subr.bf16.mxu1 %v7878_v11  ;;  %v7897_v9 = vld [vmem:[%s9848_s4 + $0x568] sm:$0xff]  }
0x1122   :  { %v7898_v11 = vld [vmem:[%s9848_s4 + $0x5e8] sm:$0xff]  }
0x1124   :  { %7288 = vmatpush3.bf16.msra.mxu0 %v7879_v12  ;;  %7310 = vmatpush3.bf16.msra.mxu1 %v7880_v13 }
0x1125   :  { %7289 = vmatprep.subr.bf16.mxu0 %v7881_v18  ;;  %7311 = vmatprep.subr.bf16.mxu1 %v7882_v26 }
0x1128   :  { %7290 = vmatpush3.bf16.msra.mxu0 %v7883_v23  ;;  %7312 = vmatpush3.bf16.msra.mxu1 %v7884_v25 }
0x1129   :  { %7291 = vmatprep.subr.bf16.mxu0 %v7885_v28  ;;  %7313 = vmatprep.subr.bf16.mxu1 %v7886_v47  ;;  %v7899_v28 = vld [vmem:[%s9848_s4 + $0x528] sm:$0xff]  }
0x112a   :  { %v7900_v47 = vld [vmem:[%s9848_s4 + $0x5a8] sm:$0xff]  }
0x112c   :  { %7292 = vmatpush3.bf16.msra.mxu0 %v7887_v27  ;;  %7314 = vmatpush3.bf16.msra.mxu1 %v7888_v30 }
0x112d   :  { %7321 = vmatprep.subr.bf16.mxu0 %v7889_v31  ;;  %7343 = vmatprep.subr.bf16.mxu1 %v7890_v32  ;;  %v7901_v31 = vld [vmem:[%s9848_s4 + $0x560] sm:$0xff]  }
0x112e   :  { %v7902_v32 = vld [vmem:[%s9848_s4 + $0x5e0] sm:$0xff]  }
0x11b7   :  { %v4603_v15 = vpop.f32.mrf.mxu0  ;;  %v4644_v40 = vpop.f32.mrf.mxu1 }
0x11b8   :  { %v4604_v19 = vadd.f32 %v4603_v15, %v4329_v38  ;;  %v4645_v41 = vadd.f32 %v4644_v40, %v4337_v52  ;;  %v9549_v15 = vld [vmem:[%s9849_s5 + $0x19] sm:$0xff]  ;;  %s6315_s5 = sshll.u32 %s8102_s9, 4  ;;  %s6316_s5 = int_to_ptr.vmem [resolvable:$true] %s6315_s5 }
0x11b9   :  { %v4605_v42 = vpop.f32.mrf.mxu0  ;;  %v4646_v44 = vpop.f32.mrf.mxu1  ;;  %s8063_s3 = scalar_lea.vmem %s6316_s5, 32  ;;  %p8068_p1 = scmp.lt.s32.totalorder %s6316_s5, %s6316_s5 }
0x11ba   :  { %v4606_v10 = vadd.f32 %v4605_v42, %v4333_v43  ;;  %v4647_v45 = vadd.f32 %v4646_v44, %v4341_v39  ;;  %v4897_v37 = vmax.f32 %v4604_v19, 0.0  ;;  %v4899_v46 = vmax.f32 %v4645_v41, 0.0  ;;  %v7903_v43 = vld [vmem:[%s9848_s4 + $0x520] sm:$0xff]   ;;  %v7905_v41 = vld [vmem:[%s9848_s4 + $0x558] sm:$0xff]   ;;  %p8064_p0 = scmp.ne.s32.totalorder %s6316_s5, %s8063_s3  ;;  %p8069_p2 = scmp.lt.s32.totalorder %s8063_s3, %s8063_s3 }
0x11bb   :  { %v4607_v34 = vpop.f32.mrf.mxu0  ;;  %v4648_v53 = vpop.f32.mrf.mxu1  ;;  %v7904_v39 = vld [vmem:[%s9848_s4 + $0x5a0] sm:$0xff]   ;;  %v7906_v42 = vld [vmem:[%s9848_s4 + $0x5d8] sm:$0xff]   ;;  %v4385_v44 = vrot.slane %v9549_v15, %v8736_v21 }
0x11bc   :  { %v4898_v35 = vmax.f32 %v4606_v10, 0.0  ;;  %v4900_v16 = vmax.f32 %v4647_v45, 0.0  ;;  %v4913_v59 = vpack.c.bf16 %v4897_v37, %v4897_v37  ;;  %v4915_v22 = vpack.c.bf16 %v4899_v46, %v4899_v46  ;;  %v7907_v37 = vld [vmem:[%s9848_s4 + $0x518] sm:$0xff]   ;;  %p8070_p3 = por %p8069_p2, %p8068_p1 }
0x11bd   :  { %v4608_v54 = vpop.f32.mrf.mxu0  ;;  %v4649_v55 = vpop.f32.mrf.mxu1  ;;  %v7908_v46 = vld [vmem:[%s9848_s4 + $0x598] sm:$0xff]  }
0x11be   :  { %v4914_v56 = vpack.c.bf16 %v4898_v35, %v4898_v35  ;;  %v4916_v57 = vpack.c.bf16 %v4900_v16, %v4900_v16  ;;  %v7909_v35 = vld [vmem:[%s9848_s4 + $0x550] sm:$0xff]   ;;  %p8071_p4 = pnand %p8070_p3, %p8064_p0 }
0x11bf   :  { %v9502_v60 = vpop.f32.mrf.mxu0  ;;  %v9504_v61 = vpop.f32.mrf.mxu1  ;;  %v7910_v16 = vld [vmem:[%s9848_s4 + $0x5d0] sm:$0xff]  }
0x11c0   :  { %5991 = vmatprep.mubr.bf16.mxu0 %v4914_v56  ;;  %6031 = vmatprep.mubr.bf16.mxu1 %v4916_v57  ;;  %v7911_v57 = vld [vmem:[%s9848_s4 + $0x510] sm:$0xff]  }
0x11c1   :  { %v4687_v2 = vpop.f32.mrf.mxu0  ;;  %v4728_v24 = vpop.f32.mrf.mxu1  ;;  %5992 = vmatmul.mubr.bf16.vlgmr.msra.gmra.mxu0 %v4913_v59  ;;  %6032 = vmatmul.mubr.bf16.vlgmr.msra.gmra.mxu1 %v4915_v22  ;;  %v7913_v22 = vld [vmem:[%s9848_s4 + $0x548] sm:$0xff]  }
0x11c2   :  { %v4688_v29 = vadd.f32 %v4687_v2, %v4349_v58  ;;  %v4729_v4 = vadd.f32 %v4728_v24, %v4357_v17  ;;  %7322 = vmatpush3.bf16.msra.mxu0 %v7891_v1  ;;  %7344 = vmatpush3.bf16.msra.mxu1 %v7892_v8  ;;  %v7912_v58 = vld [vmem:[%s9848_s4 + $0x590] sm:$0xff]   ;;  %v4345_v17 = vrot.slane %v9482_v33, %v8733_v20 }
0x11c3   :  { %v4689_v7 = vpop.f32.mrf.mxu0  ;;  %v4730_v5 = vpop.f32.mrf.mxu1  ;;  %7323 = vmatprep.subr.bf16.mxu0 %v7893_v62  ;;  %7345 = vmatprep.subr.bf16.mxu1 %v7894_v14  ;;  %v4353_v1 = vrot.slane %v9482_v33, %v8736_v21  ;;  %v7914_v62 = vld [vmem:[%s9848_s4 + $0x5c8] sm:$0xff]   ;;  %v4365_v14 = vrot.slane %v9549_v15, %v8626_v48  ;;  %v4373_v2 = vrot.slane %v9549_v15, %v8629_v49  ;;  %v7917_v48 = vld [vmem:[%s9848_s4 + $0x540] sm:$0xff]  }
0x11c4   :  { %v4902_v12 = vmax.f32 %v4688_v29, 0.0  ;;  %v4904_v13 = vmax.f32 %v4729_v4, 0.0  ;;  %v7915_v33 = vld [vmem:[%s9848_s4 + $0x508] sm:$0xff]   ;;  %v4686_v4 = vadd.f32 %v9502_v60, %v4345_v17  ;;  %v7918_v49 = vld [vmem:[%s9848_s4 + $0x5c0] sm:$0xff]   ;;  %v4361_v17 = vrot.slane %v9549_v15, %v8632_v50 }
0x11c5   :  { %v4690_v18 = vpop.f32.mrf.mxu0  ;;  %v4731_v26 = vpop.f32.mrf.mxu1  ;;  %v7916_v29 = vld [vmem:[%s9848_s4 + $0x588] sm:$0xff]   ;;  %v7919_v60 = vld [vmem:[%s9848_s4 + $0x500] sm:$0xff]   ;;  %v4381_v50 = vrot.slane %v9549_v15, %v8651_v63 }
0x11c6   :  { %v4918_v23 = vpack.c.bf16 %v4902_v12, %v4902_v12  ;;  %v4920_v25 = vpack.c.bf16 %v4904_v13, %v4904_v13  ;;  %7324 = vmatpush3.bf16.msra.mxu0 %v7895_v36  ;;  %7346 = vmatpush3.bf16.msra.mxu1 %v7896_v6  ;;  %v4727_v36 = vadd.f32 %v9504_v61, %v4353_v1  ;;  %v7920_v61 = vld [vmem:[%s9848_s4 + $0x580] sm:$0xff]   ;;  %v4901_v5 = vmax.f32 %v4686_v4, 0.0  ;;  %v7922_v12 = vld [vmem:[%s9848_s4 + $0x6f8] sm:$0xff]   ;;  %v7944_v1 = vld [vmem:[%s9848_s4 + $0x690] sm:$0xff]  }
0x11c7   :  { %v9530_v27 = vpop.f32.mrf.mxu0  ;;  %v9532_v30 = vpop.f32.mrf.mxu1  ;;  %7325 = vmatprep.subr.bf16.mxu0 %v7897_v9  ;;  %7347 = vmatprep.subr.bf16.mxu1 %v7898_v11  ;;  %v7921_v11 = vld [vmem:[%s9848_s4 + $0x678] sm:$0xff]   ;;  %v7949_v63 = vld [vmem:[%s9848_s4 + $0x640] sm:$0xff]  }
0x11c8   :  { %6071 = vmatprep.mubr.bf16.mxu0 %v4918_v23  ;;  %6111 = vmatprep.mubr.bf16.mxu1 %v4920_v25  ;;  %v4903_v9 = vmax.f32 %v4727_v36, 0.0  ;;  %v7923_v26 = vld [vmem:[%s9848_s4 + $0x638] sm:$0xff]   ;;  %v4917_v23 = vpack.c.bf16 %v4901_v5, %v4901_v5 }
0x11c9   :  { %v4769_v38 = vpop.f32.mrf.mxu0  ;;  %v4810_v52 = vpop.f32.mrf.mxu1  ;;  %v7953_v4 = vld [vmem:[%s9848_s4 + $0x778] sm:$0xff]  }
0x11ca   :  { %7326 = vmatpush3.bf16.msra.mxu0 %v7899_v28  ;;  %7348 = vmatpush3.bf16.msra.mxu1 %v7900_v47  ;;  %v4770_v6 = vadd.f32 %v4769_v38, %v4365_v14  ;;  %v4811_v7 = vadd.f32 %v4810_v52, %v4373_v2  ;;  %v4919_v25 = vpack.c.bf16 %v4903_v9, %v4903_v9  ;;  %v7924_v28 = vld [vmem:[%s9848_s4 + $0x6b8] sm:$0xff]   ;;  %v7927_v52 = vld [vmem:[%s9848_s4 + $0x630] sm:$0xff]   ;;  %v7947_v14 = vld [vmem:[%s9848_s4 + $0x608] sm:$0xff]  }
0x11cb   :  { %v4771_v40 = vpop.f32.mrf.mxu0  ;;  %v4812_v19 = vpop.f32.mrf.mxu1  ;;  %7327 = vmatprep.subr.bf16.mxu0 %v7901_v31  ;;  %7349 = vmatprep.subr.bf16.mxu1 %v7902_v32  ;;  %v7925_v31 = vld [vmem:[%s9848_s4 + $0x670] sm:$0xff]   ;;  %v4768_v2 = vadd.f32 %v9530_v27, %v4361_v17 }
0x11cc   :  { %v4906_v13 = vmax.f32 %v4770_v6, 0.0  ;;  %v4908_v18 = vmax.f32 %v4811_v7, 0.0  ;;  %v7926_v32 = vld [vmem:[%s9848_s4 + $0x6f0] sm:$0xff]   ;;  %v7930_v40 = vld [vmem:[%s9848_s4 + $0x6e8] sm:$0xff]   ;;  %v7956_v7 = vld [vmem:[%s9848_s4 + $0x7b8] sm:$0xff]  }
0x11cd   :  { %v4772_v10 = vpop.f32.mrf.mxu0  ;;  %v4813_v45 = vpop.f32.mrf.mxu1  ;;  %v7931_v19 = vld [vmem:[%s9848_s4 + $0x628] sm:$0xff]   ;;  %v7958_v9 = vld [vmem:[%s9848_s4 + $0x7f0] sm:$0xff]  }
0x11ce   :  { %7328 = vmatpush3.bf16.msra.mxu0 %v7903_v43  ;;  %7350 = vmatpush3.bf16.msra.mxu1 %v7904_v39  ;;  %v4922_v47 = vpack.c.bf16 %v4906_v13, %v4906_v13  ;;  %v4924_v38 = vpack.c.bf16 %v4908_v18, %v4908_v18  ;;  %v7928_v43 = vld [vmem:[%s9848_s4 + $0x6b0] sm:$0xff]   ;;  %v7929_v39 = vld [vmem:[%s9848_s4 + $0x668] sm:$0xff]   ;;  %v7935_v10 = vld [vmem:[%s9848_s4 + $0x620] sm:$0xff]  }
0x11cf   :  { %v9565_v34 = vpop.f32.mrf.mxu0  ;;  %v4890_v53 = vpop.f32.mrf.mxu1  ;;  %7329 = vmatprep.subr.bf16.mxu0 %v7905_v41  ;;  %7351 = vmatprep.subr.bf16.mxu1 %v7906_v42  ;;  %v7932_v41 = vld [vmem:[%s9848_s4 + $0x6a8] sm:$0xff]   ;;  %v7933_v42 = vld [vmem:[%s9848_s4 + $0x660] sm:$0xff]   ;;  %v7960_v13 = vld [vmem:[%s9848_s4 + $0x7b0] sm:$0xff]  }
0x11d0   :  { %v9573_v54 = vadd.f32 %v4890_v53, %v4385_v44  ;;  %v7934_v44 = vld [vmem:[%s9848_s4 + $0x6e0] sm:$0xff]   ;;  %v7939_v53 = vld [vmem:[%s9848_s4 + $0x618] sm:$0xff]   ;;  %v7961_v18 = vld [vmem:[%s9848_s4 + $0x768] sm:$0xff]  }
0x11d1   :  { %v9575_v55 = vpop.f32.mrf.mxu0  ;;  %v9577_v56 = vpop.f32.mrf.mxu1  ;;  %v7936_v45 = vld [vmem:[%s9848_s4 + $0x6a0] sm:$0xff]  }
0x11d2   :  { %7330 = vmatpush3.bf16.msra.mxu0 %v7907_v37  ;;  %7352 = vmatpush3.bf16.msra.mxu1 %v7908_v46  ;;  %v7937_v37 = vld [vmem:[%s9848_s4 + $0x658] sm:$0xff]  }
0x11d3   :  { %v4853_v8 = vpop.f32.mrf.mxu0  ;;  %v4894_v59 = vpop.f32.mrf.mxu1  ;;  %7331 = vmatprep.subr.bf16.mxu0 %v7909_v35  ;;  %7353 = vmatprep.subr.bf16.mxu1 %v7910_v16  ;;  %v7938_v46 = vld [vmem:[%s9848_s4 + $0x6d8] sm:$0xff]   ;;  %v7941_v16 = vld [vmem:[%s9848_s4 + $0x650] sm:$0xff]  }
0x11d4   :  { %v7940_v35 = vld [vmem:[%s9848_s4 + $0x698] sm:$0xff]   ;;  %v7945_v8 = vld [vmem:[%s9848_s4 + $0x648] sm:$0xff]   ;;  %v4369_v59 = vrot.slane %v9549_v15, %v8635_v51 }
0x11d5   :  { %v4854_v24 = vpop.f32.mrf.mxu0  ;;  %v4895_v21 = vpop.f32.mrf.mxu1  ;;  %v7948_v51 = vld [vmem:[%s9848_s4 + $0x688] sm:$0xff]  }
0x11d6   :  { %7332 = vmatpush3.bf16.msra.mxu0 %v7911_v57  ;;  %7354 = vmatpush3.bf16.msra.mxu1 %v7912_v58  ;;  %v7942_v57 = vld [vmem:[%s9848_s4 + $0x6d0] sm:$0xff]   ;;  %v4809_v24 = vadd.f32 %v9532_v30, %v4369_v59  ;;  %v4852_v21 = vadd.f32 %v9575_v55, %v4381_v50  ;;  %v7952_v30 = vld [vmem:[%s9848_s4 + $0x680] sm:$0xff]   ;;  %v7954_v55 = vld [vmem:[%s9848_s4 + $0x7f8] sm:$0xff]  }
0x11d7   :  { %7333 = vmatprep.subr.bf16.mxu0 %v7913_v22  ;;  %7355 = vmatprep.subr.bf16.mxu1 %v7914_v62  ;;  %v7943_v58 = vld [vmem:[%s9848_s4 + $0x610] sm:$0xff]   ;;  %v7946_v22 = vld [vmem:[%s9848_s4 + $0x6c8] sm:$0xff]   ;;  %v4389_v62 = vrot.slane %v9549_v15, %v8654_v0  ;;  %v7950_v0 = vld [vmem:[%s9848_s4 + $0x6c0] sm:$0xff]  }
0x11d8   :  { %v4907_v36 = vmax.f32 %v4809_v24, 0.0  ;;  %v6892_v59 = vld [vmem:[%s9850_s6 + $0xb] ss:$0 sm:$0xff] }
0x11d9   :  { %v4893_v27 = vadd.f32 %v9577_v56, %v4389_v62  ;;  %v4910_v56 = vmax.f32 %v4852_v21, 0.0 }
0x11da   :  { %7334 = vmatpush3.bf16.msra.mxu0 %v7915_v33  ;;  %7356 = vmatpush3.bf16.msra.mxu1 %v7916_v29  ;;  %v7951_v33 = vld [vmem:[%s9848_s4 + $0x600] sm:$0xff]   ;;  %v4905_v29 = vmax.f32 %v4768_v2, 0.0 }
0x11db   :  { %7335 = vmatprep.subr.bf16.mxu0 %v7917_v48  ;;  %7357 = vmatprep.subr.bf16.mxu1 %v7918_v49  ;;  %v4912_v48 = vmax.f32 %v4893_v27, 0.0  ;;  %v7955_v49 = vld [vmem:[%s9848_s4 + $0x738] sm:$0xff]   ;;  %v4926_v5 = vpack.c.bf16 %v4910_v56, %v4910_v56 }
0x11dc   :  { %v4921_v6 = vpack.c.bf16 %v4905_v29, %v4905_v29 }
0x11de   :  { %7336 = vmatpush3.bf16.msra.mxu0 %v7919_v60  ;;  %7358 = vmatpush3.bf16.msra.mxu1 %v7920_v61  ;;  %v4923_v60 = vpack.c.bf16 %v4907_v36, %v4907_v36  ;;  %v7957_v61 = vld [vmem:[%s9848_s4 + $0x770] sm:$0xff]  }
0x11df   :  { %7365 = vmatprep.subr.bf16.mxu0 %v7921_v11  ;;  %7387 = vmatprep.subr.bf16.mxu1 %v7922_v12  ;;  %v4928_v11 = vpack.c.bf16 %v4912_v48, %v4912_v48  ;;  %v7959_v12 = vld [vmem:[%s9848_s4 + $0x730] sm:$0xff]  }
0x11e1   :  { %6072 = vmatmul.mubr.bf16.vlgmr.msra.gmra.mxu0 %v4917_v23  ;;  %6112 = vmatmul.mubr.bf16.vlgmr.msra.gmra.mxu1 %v4919_v25  ;;  %v7963_v23 = vld [vmem:[%s9848_s4 + $0x728] sm:$0xff]  }
0x11e2   :  { %7366 = vmatpush3.bf16.msra.mxu0 %v7923_v26  ;;  %6151 = vmatprep.mubr.bf16.mxu0 %v4922_v47  ;;  %v7962_v26 = vld [vmem:[%s9848_s4 + $0x7e8] sm:$0xff]   ;;  %v7966_v47 = vld [vmem:[%s9848_s4 + $0x7e0] sm:$0xff]  }
0x11e3   :  { %7388 = vmatpush3.bf16.msra.mxu1 %v7924_v28  ;;  %6191 = vmatprep.mubr.bf16.mxu1 %v4924_v38  ;;  %v7964_v25 = vld [vmem:[%s9848_s4 + $0x7a8] sm:$0xff]   ;;  %v7965_v28 = vld [vmem:[%s9848_s4 + $0x760] sm:$0xff]   ;;  %v7969_v38 = vld [vmem:[%s9848_s4 + $0x758] sm:$0xff]  }
0x11e4   :  { %7367 = vmatprep.subr.bf16.mxu0 %v7925_v31  ;;  %7389 = vmatprep.subr.bf16.mxu1 %v7926_v32  ;;  %v7967_v31 = vld [vmem:[%s9848_s4 + $0x720] sm:$0xff]  }
0x11e5   :  { %v7968_v32 = vld [vmem:[%s9848_s4 + $0x7a0] sm:$0xff]  }
0x11e6   :  { %7368 = vmatpush3.bf16.msra.mxu0 %v7927_v52  ;;  %v7970_v52 = vld [vmem:[%s9848_s4 + $0x7d8] sm:$0xff]  }
0x11e7   :  { %7390 = vmatpush3.bf16.msra.mxu1 %v7928_v43  ;;  %7369 = vmatprep.subr.bf16.mxu0 %v7929_v39  ;;  %v7971_v43 = vld [vmem:[%s9848_s4 + $0x718] sm:$0xff]  }
0x11e8   :  { %7391 = vmatprep.subr.bf16.mxu1 %v7930_v40  ;;  %v7972_v39 = vld [vmem:[%s9848_s4 + $0x798] sm:$0xff]   ;;  %v7973_v40 = vld [vmem:[%s9848_s4 + $0x750] sm:$0xff]  }
0x11ea   :  { %7370 = vmatpush3.bf16.msra.mxu0 %v7931_v19  ;;  %v7974_v19 = vld [vmem:[%s9848_s4 + $0x7d0] sm:$0xff]  }
0x11eb   :  { %7392 = vmatpush3.bf16.msra.mxu1 %v7932_v41  ;;  %7371 = vmatprep.subr.bf16.mxu0 %v7933_v42  ;;  %v7975_v41 = vld [vmem:[%s9848_s4 + $0x710] sm:$0xff]   ;;  %v4377_v42 = vrot.slane %v9549_v15, %v8733_v20  ;;  %v7979_v20 = vld [vmem:[%s9848_s4 + $0x708] sm:$0xff]  }
0x11ec   :  { %7393 = vmatprep.subr.bf16.mxu1 %v7934_v44  ;;  %v7976_v44 = vld [vmem:[%s9848_s4 + $0x790] sm:$0xff]  }
0x11ed   :  { %v4850_v15 = vadd.f32 %v9565_v34, %v4377_v42  ;;  %v7983_v34 = vld [vmem:[%s9848_s4 + $0x700] sm:$0xff]  }
0x11ee   :  { %7372 = vmatpush3.bf16.msra.mxu0 %v7935_v10  ;;  %v7977_v10 = vld [vmem:[%s9848_s4 + $0x748] sm:$0xff]  }
0x11ef   :  { %7394 = vmatpush3.bf16.msra.mxu1 %v7936_v45  ;;  %7373 = vmatprep.subr.bf16.mxu0 %v7937_v37  ;;  %v7978_v45 = vld [vmem:[%s9848_s4 + $0x7c8] sm:$0xff]  }
0x11f0   :  { %7395 = vmatprep.subr.bf16.mxu1 %v7938_v46  ;;  %v7980_v37 = vld [vmem:[%s9848_s4 + $0x788] sm:$0xff]   ;;  %v7981_v46 = vld [vmem:[%s9848_s4 + $0x740] sm:$0xff]  }
0x11f2   :  { %7374 = vmatpush3.bf16.msra.mxu0 %v7939_v53  ;;  %v7982_v53 = vld [vmem:[%s9848_s4 + $0x7c0] sm:$0xff]  }
0x11f3   :  { %7396 = vmatpush3.bf16.msra.mxu1 %v7940_v35  ;;  %7375 = vmatprep.subr.bf16.mxu0 %v7941_v16  ;;  %v4909_v35 = vmax.f32 %v4850_v15, 0.0  ;;  %v7984_v16 = vld [vmem:[%s9848_s4 + $0x780] sm:$0xff]  }
0x11f4   :  { %7397 = vmatprep.subr.bf16.mxu1 %v7942_v57  ;;  %v4911_v57 = vmax.f32 %v9573_v54, 0.0 }
0x11f6   :  { %7376 = vmatpush3.bf16.msra.mxu0 %v7943_v58  ;;  %v4925_v58 = vpack.c.bf16 %v4909_v35, %v4909_v35  ;;  %v4927_v17 = vpack.c.bf16 %v4911_v57, %v4911_v57  ;;  %v7023_v57 = vld [vmem:[%s9850_s6 + $0xc] ss:$0 sm:$0xff] }
0x11f7   :  { %7398 = vmatpush3.bf16.msra.mxu1 %v7944_v1  ;;  %7377 = vmatprep.subr.bf16.mxu0 %v7945_v8 }
0x11f8   :  { %7399 = vmatprep.subr.bf16.mxu1 %v7946_v22 }
0x11fa   :  { %7378 = vmatpush3.bf16.msra.mxu0 %v7947_v14 }
0x11fb   :  { %7400 = vmatpush3.bf16.msra.mxu1 %v7948_v51  ;;  %7379 = vmatprep.subr.bf16.mxu0 %v7949_v63 }
0x11fc   :  { %7401 = vmatprep.subr.bf16.mxu1 %v7950_v0 }
0x11fe   :  { %7380 = vmatpush3.bf16.msra.mxu0 %v7951_v33 }
0x11ff   :  { %7402 = vmatpush3.bf16.msra.mxu1 %v7952_v30  ;;  %7409 = vmatprep.subr.bf16.mxu0 %v7953_v4 }
0x1200   :  { %7431 = vmatprep.subr.bf16.mxu1 %v7954_v55 }
0x1201   :  { %6152 = vmatmul.mubr.bf16.vlgmr.msra.gmra.mxu0 %v4921_v6 }
0x1202   :  { %6192 = vmatmul.mubr.bf16.vlgmr.msra.gmra.mxu1 %v4923_v60  ;;  %7410 = vmatpush3.bf16.msra.mxu0 %v7955_v49 }
0x1203   :  { %6231 = vmatprep.mubr.bf16.mxu0 %v4926_v5  ;;  %7432 = vmatpush3.bf16.msra.mxu1 %v7956_v7 }
0x1204   :  { %6271 = vmatprep.mubr.bf16.mxu1 %v4928_v11  ;;  %7411 = vmatprep.subr.bf16.mxu0 %v7957_v61 }
0x1205   :  { %7433 = vmatprep.subr.bf16.mxu1 %v7958_v9 }
0x1206   :  { %7412 = vmatpush3.bf16.msra.mxu0 %v7959_v12 }
0x1207   :  { %7434 = vmatpush3.bf16.msra.mxu1 %v7960_v13  ;;  %7413 = vmatprep.subr.bf16.mxu0 %v7961_v18 }
0x1208   :  { %7435 = vmatprep.subr.bf16.mxu1 %v7962_v26 }
0x120a   :  { %7414 = vmatpush3.bf16.msra.mxu0 %v7963_v23 }
0x120b   :  { %7436 = vmatpush3.bf16.msra.mxu1 %v7964_v25  ;;  %7415 = vmatprep.subr.bf16.mxu0 %v7965_v28 }
0x120c   :  { %7437 = vmatprep.subr.bf16.mxu1 %v7966_v47 }
0x120e   :  { %7416 = vmatpush3.bf16.msra.mxu0 %v7967_v31 }
0x120f   :  { %7438 = vmatpush3.bf16.msra.mxu1 %v7968_v32  ;;  %7417 = vmatprep.subr.bf16.mxu0 %v7969_v38 }
0x1210   :  { %7439 = vmatprep.subr.bf16.mxu1 %v7970_v52 }
0x1212   :  { %7418 = vmatpush3.bf16.msra.mxu0 %v7971_v43 }
0x1213   :  { %7440 = vmatpush3.bf16.msra.mxu1 %v7972_v39  ;;  %7419 = vmatprep.subr.bf16.mxu0 %v7973_v40 }
0x1214   :  { %7441 = vmatprep.subr.bf16.mxu1 %v7974_v19 }
0x1216   :  { %7420 = vmatpush3.bf16.msra.mxu0 %v7975_v41 }
0x1217   :  { %7442 = vmatpush3.bf16.msra.mxu1 %v7976_v44  ;;  %7421 = vmatprep.subr.bf16.mxu0 %v7977_v10 }
0x1218   :  { %7443 = vmatprep.subr.bf16.mxu1 %v7978_v45 }
0x121a   :  { %7422 = vmatpush3.bf16.msra.mxu0 %v7979_v20 }
0x121b   :  { %7444 = vmatpush3.bf16.msra.mxu1 %v7980_v37  ;;  %7423 = vmatprep.subr.bf16.mxu0 %v7981_v46 }
0x121c   :  { %7445 = vmatprep.subr.bf16.mxu1 %v7982_v53 }
0x121e   :  { %7424 = vmatpush3.bf16.msra.mxu0 %v7983_v34 }
0x121f   :  { %7446 = vmatpush3.bf16.msra.mxu1 %v7984_v16 }
0x1221   :  { %6232 = vmatmul.mubr.bf16.vlgmr.msra.gmra.mxu0 %v4925_v58  ;;  %v7024_v58 = vld [vmem:[%s9850_s6 + $0xd] ss:$0 sm:$0xff] }
0x1222   :  { %6272 = vmatmul.mubr.bf16.vlgmr.msra.gmra.mxu1 %v4927_v17 }
0x1281   :  { %v7293_v1 = vpop.f32.mrf.mxu0  ;;  %v7315_v8 = vpop.f32.mrf.mxu1 }
0x1283   :  { %v7294_v22 = vpop.f32.mrf.mxu0  ;;  %v7316_v50 = vpop.f32.mrf.mxu1 }
0x1284   :  { %v7295_v62 = vadd.f32 %v7294_v22, %v7293_v1  ;;  %v7317_v14 = vadd.f32 %v7316_v50, %v7315_v8 }
0x1285   :  { %v7296_v2 = vpop.f32.mrf.mxu0  ;;  %v7318_v51 = vpop.f32.mrf.mxu1 }
0x1286   :  { %v5994_v54 = vadd.f32 %v7295_v62, %v6892_v59 }
0x1287   :  { %v7297_v63 = vpop.f32.mrf.mxu0  ;;  %v7319_v24 = vpop.f32.mrf.mxu1 }
0x1288   :  { %v6034_v0 = vadd.f32 %v7317_v14, %v5994_v54 }
0x12a1   :  { %v7337_v21 = vpop.f32.mrf.mxu0  ;;  %v7359_v27 = vpop.f32.mrf.mxu1 }
0x12a3   :  { %v7338_v33 = vpop.f32.mrf.mxu0  ;;  %v7360_v29 = vpop.f32.mrf.mxu1 }
0x12a4   :  { %v7339_v9 = vadd.f32 %v7338_v33, %v7337_v21  ;;  %v7361_v12 = vadd.f32 %v7360_v29, %v7359_v27 }
0x12a5   :  { %v7340_v30 = vpop.f32.mrf.mxu0  ;;  %v7362_v4 = vpop.f32.mrf.mxu1 }
0x12a6   :  { %v6074_v11 = vadd.f32 %v7339_v9, %v6034_v0 }
0x12a7   :  { %v7341_v36 = vpop.f32.mrf.mxu0  ;;  %v7363_v55 = vpop.f32.mrf.mxu1 }
0x12a8   :  { %v6114_v18 = vadd.f32 %v7361_v12, %v6074_v11 }
0x12c1   :  { %v7381_v56 = vpop.f32.mrf.mxu0 }
0x12c2   :  { %v7403_v48 = vpop.f32.mrf.mxu1 }
0x12c3   :  { %v7382_v49 = vpop.f32.mrf.mxu0 }
0x12c4   :  { %v7404_v6 = vpop.f32.mrf.mxu1  ;;  %v7383_v13 = vadd.f32 %v7382_v49, %v7381_v56 }
0x12c5   :  { %v7384_v7 = vpop.f32.mrf.mxu0  ;;  %v7405_v25 = vadd.f32 %v7404_v6, %v7403_v48 }
0x12c6   :  { %v7406_v60 = vpop.f32.mrf.mxu1  ;;  %v6154_v26 = vadd.f32 %v7383_v13, %v6114_v18 }
0x12c7   :  { %v7385_v61 = vpop.f32.mrf.mxu0 }
0x12c8   :  { %v7407_v5 = vpop.f32.mrf.mxu1  ;;  %v6194_v31 = vadd.f32 %v7405_v25, %v6154_v26 }
0x12e1   :  { %v7425_v23 = vpop.f32.mrf.mxu0 }
0x12e2   :  { %v7447_v28 = vpop.f32.mrf.mxu1 }
0x12e3   :  { %v7426_v47 = vpop.f32.mrf.mxu0 }
0x12e4   :  { %v7427_v32 = vadd.f32 %v7426_v47, %v7425_v23  ;;  %v7448_v38 = vpop.f32.mrf.mxu1 }
0x12e5   :  { %v7428_v52 = vpop.f32.mrf.mxu0  ;;  %v7449_v39 = vadd.f32 %v7448_v38, %v7447_v28 }
0x12e6   :  { %v6234_v43 = vadd.f32 %v7427_v32, %v6194_v31  ;;  %v7450_v40 = vpop.f32.mrf.mxu1 }
0x12e7   :  { %v7429_v19 = vpop.f32.mrf.mxu0 }
0x12e8   :  { %v6274_v41 = vadd.f32 %v7449_v39, %v6234_v43  ;;  %v7451_v42 = vpop.f32.mrf.mxu1 }
0x12ea   :  { %v6279_v44 = vadd.f32 %v6274_v41, %v9301_v3 }
0x12ec   :  { %v6282_v10 = vsel %vm4264_vm8, %v6279_v44, 0.0 }
0x12ed   :  { %6283 = vadd.xlane.f32.xlu0 %v6282_v10 }
0x1376   :  { %v6284_v45 = vpop.xlane.xlu0 %6283 }
0x1377   :  { %v6285_v20 = vmul.f32 0.03125, %v6284_v45 }
0x1379   :  { %v6286_v15 = vsub.f32 %v6279_v44, %v6285_v20 }
0x137b   :  { %v6287_v37 = vmul.f32 %v6286_v15, %v6286_v15 }
0x137d   :  { %v6288_v46 = vsel %vm4264_vm8, %v6287_v37, 0.0 }
0x137e   :  { %6289 = vadd.xlane.f32.xlu1 %v6288_v46 }
0x1407   :  { %v6290_v53 = vpop.xlane.xlu1 %6289 }
0x1408   :  { %v6291_v34 = vmul.f32 0.03125, %v6290_v53 }
0x140a   :  { %v6292_v35 = vadd.f32 1e-05, %v6291_v34 }
0x140c   :  { %8059 = vrsqrt.f32 %v6292_v35 }
0x1419   :  { %v8060_v16 = vpop.eup %8059 }
0x141a   :  { %v6294_v3 = vmul.f32 %v8060_v16, %v6286_v15 }
0x141c   :  { %v6299_v17 = vmul.f32 %v7023_v57, %v6294_v3 }
0x141e   :  { %v6304_v1 = vadd.f32 %v7024_v58, %v6299_v17 }
0x1420   :  { %6306 = vst.msk [vmem:[#allocation2] sm:$0x1] %vm6305_vm9, %v6304_v1 }
0x1421   :  { %6309 = vst.msk [vmem:[#allocation2] sm:$0x2] %vm6308_vm10, %v6304_v1 }
0x1422   :  { %8074 = shalt.err (!%p8071_p4)
}
0x1423   :  { %s8103_s10 = smov 1  }
0x1424   :  { %6321 = dma.vmem_to_hbm [thread:$0]  %s6316_s5, 32, %s9851_s7, [#allocation3], %s8099_s27, %s8099_s27, %s8103_s10  }
0x1425   :  { %8083 = dma.done.wait [#allocation3], 32  }
0x1426   :  { %8084 = vsyncadd [#allocation3], 4294967264 }
0x1427   :  { %6325 = vsyncpa [#allocation3], 1 }

</bundles_post_ra>
